<compile_context>
chip_gen: v7x
topology: tpu7x:2x2x1
jax: 0.10.0
libtpu: 0.0.40
codegen_flags: <defaults>
</compile_context>

<pallas_src>
import jax
import jax.numpy as jnp
from jax.experimental import pallas as pl
from jax.experimental.pallas import tpu as pltpu

N_FEATURES = 495          # hard-coded by x.view(-1, 1, 495) in the PyTorch forward
HIDDEN = 8                # hidden_size
DROPOUT_RATE = 0.5        # nn.Dropout: identity at inference time

# Sequence lengths through the three conv(+pool) stages and their lane paddings.
L1OUT, L2OUT, L3OUT = 247, 123, 61
LP1, LP2, LP3 = 512, 256, 128      # lane-padded lengths of the three conv inputs


def _fused_cnn_kernel(x_ref, w1x_ref, b1_ref, sel1_ref,
                      w2_ref, b2_ref, sel2_ref,
                      w3_ref, b3_ref,
                      wf1_ref, bf1_ref, wf2_ref, bf2_ref,
                      out_ref, act3_ref):
    f32 = jnp.float32
    bt = x_ref.shape[0]                       # samples in this grid step

    def dot(a, b):
        return jnp.dot(a, b, preferred_element_type=f32)

    def shift_right(a):                       # out[:, l] = a[:, l-1], out[:, 0] = 0
        z = jnp.zeros((a.shape[0], 1), f32)
        return jnp.concatenate([z, a[:, :-1]], axis=1)

    def shift_left(a):                        # out[:, l] = a[:, l+1], out[:, -1] = 0
        z = jnp.zeros((a.shape[0], 1), f32)
        return jnp.concatenate([a[:, 1:], z], axis=1)

    def pool_bias_relu(conv, b_ref):
        # max(relu(a+b), relu(c+b)) == relu(max(a, c) + b)  (bias hoisted out of the max).
        pooled = jnp.maximum(conv, shift_left(conv))
        return jnp.maximum(pooled + b_ref[...], 0.0)

    # ------ layer 1: Conv1d(1,H,3,p=1) + ReLU + MaxPool(2,2), one matmul for the tile ----
    x = x_ref[...]                                            # (bt, 512) positions in lanes
    xcat = jnp.concatenate([shift_right(x), x, shift_left(x)], axis=0)    # (3*bt, 512)
    conv1 = dot(w1x_ref[...], xcat)                           # block-diag weight -> (bt*H, 512)
    a2 = dot(pool_bias_relu(conv1, b1_ref), sel1_ref[...])    # pool-select+repad -> (bt*H, 256)

    # ------ layers 2 & 3: per-sample im2col matmul (taps concatenated along K) -----------
    def conv_layer(a, w):
        cin = w.shape[1] // 3
        tm1, tp1 = shift_right(a), shift_left(a)
        pieces = []
        for b in range(bt):                                   # static, aligned row slices
            r0 = b * cin
            rhs = jnp.concatenate(
                [tm1[r0:r0 + cin], a[r0:r0 + cin], tp1[r0:r0 + cin]], axis=0)
            pieces.append(dot(w, rhs))                        # (Cout, L)
        return jnp.concatenate(pieces, axis=0)                # (bt*Cout, L)

    conv2 = conv_layer(a2, w2_ref[...])                       # (bt*2H, 256)
    a3 = dot(pool_bias_relu(conv2, b2_ref), sel2_ref[...])    # (bt*2H, 128)
    conv3 = conv_layer(a3, w3_ref[...])                       # (bt*4H, 128)
    # Layer-3 MaxPool selection is folded into wf1 (zero-padded weight rows), so store
    # the un-downsampled activation and let fc1 consume it directly.
    act3_ref[...] = pool_bias_relu(conv3, b3_ref)             # (bt*4H, 128)

    # ------ fc1 + ReLU + dropout(identity) + fc2 + sigmoid: ONE fc1 matmul ---------------
    c3 = act3_ref.shape[0] // bt                              # 4H channels
    lhs = jnp.concatenate(
        [act3_ref[pl.ds(c, bt, stride=c3), :] for c in range(c3)], axis=1)   # (bt, 4H*128)
    h = jnp.maximum(dot(lhs, wf1_ref[...]) + bf1_ref[...], 0.0)              # (bt, 2H)
    # TODO(synk): nn.Dropout(p=0.5) only acts in training mode; inference is identity.
    z = dot(h, wf2_ref[...]) + bf2_ref[...]                   # (bt, 1)
    ez = jnp.exp(-jnp.abs(z))                                 # numerically stable sigmoid
    out_ref[...] = (jnp.where(z >= 0.0, 1.0, ez) / (1.0 + ez)).astype(out_ref.dtype)


def _const_spec(shape):
    zeros = (0,) * len(shape)
    return pl.BlockSpec(shape, lambda i, _z=zeros: _z)


def _make_sel(lp_in, lp_out, n_valid):
    """0/1 matrix S with S[2p, p] = 1 for p < n_valid: lane downsample + re-zero tail."""
    rows = jnp.arange(lp_in)[:, None]
    cols = jnp.arange(lp_out)[None, :]
    return ((rows == 2 * cols) & (cols < n_valid)).astype(jnp.float32)


def complex_cnn_forward(params, x, batch_tile=32):
    """x: any array with a multiple of N_FEATURES elements (PyTorch view(-1,1,495))."""
    x = jnp.asarray(x, jnp.float32).reshape(-1, N_FEATURES)
    batch = x.shape[0]
    bt = max(8, min(batch_tile, ((batch + 7) // 8) * 8))
    bt = ((bt + 7) // 8) * 8
    b_pad = ((batch + bt - 1) // bt) * bt
    n_tiles = b_pad // bt

    hidden = params["w1"].shape[1]
    h2, h4 = 2 * hidden, 4 * hidden
    f32 = jnp.float32

    # Lane-dense input: positions in lanes, zero padded on the right + padded batch rows.
    xp = jnp.pad(x, ((0, b_pad - batch), (0, LP1 - N_FEATURES)))          # (b_pad, 512)

    # Layer-1 block-diagonal weight: conv1[b*H+o, :] = sum_k w1[k,o] * tap_k(x[b]).
    eye = jnp.eye(bt, dtype=f32)
    w1x = (eye[:, None, None, :] *
           params["w1"].T[None, :, :, None]).reshape(bt * hidden, 3 * bt)

    # im2col weights for layers 2/3: (Cout, 3*Cin), column index = k*Cin + ci.
    w2c = params["w2"].transpose(2, 0, 1).reshape(h2, 3 * hidden)
    w3c = params["w3"].transpose(2, 0, 1).reshape(h4, 3 * h2)

    # Per-(sample, channel) bias columns matching the (bt*C, L) row layout.
    b1t = jnp.tile(params["b1"].reshape(hidden, 1), (bt, 1))
    b2t = jnp.tile(params["b2"].reshape(h2, 1), (bt, 1))
    b3t = jnp.tile(params["b3"].reshape(h4, 1), (bt, 1))

    # fc1 weight with the layer-3 MaxPool selection folded in:
    #   wf1sel[c*128 + 2*j, o] = wf1[j, c, o] for j < 61; every other row is zero.
    wf1sel = jnp.zeros((h4, LP3, h2), f32)
    wf1sel = wf1sel.at[:, 0:2 * L3OUT:2, :].set(params["wf1"].transpose(1, 0, 2))
    wf1sel = wf1sel.reshape(h4 * LP3, h2)

    sel1 = _make_sel(LP1, LP2, L1OUT)
    sel2 = _make_sel(LP2, LP3, L2OUT)

    inputs = (xp, w1x, b1t, sel1, w2c, b2t, sel2, w3c, b3t,
              wf1sel, params["bf1"], params["wf2"], params["bf2"])
    in_specs = [pl.BlockSpec((bt, LP1), lambda i: (i, 0))]
    in_specs += [_const_spec(a.shape) for a in inputs[1:]]

    out = pl.pallas_call(
        _fused_cnn_kernel,
        out_shape=jax.ShapeDtypeStruct((b_pad, 1), jnp.float32),
        grid=(n_tiles,),
        in_specs=in_specs,
        out_specs=pl.BlockSpec((bt, 1), lambda i: (i, 0)),
        scratch_shapes=[pltpu.VMEM((bt * h4, LP3), jnp.float32)],   # layer-3 activation
        compiler_params=pltpu.CompilerParams(
            dimension_semantics=("parallel",),
            vmem_limit_bytes=32 * 1024 * 1024,
        ),
    )(*inputs)
    return out[:batch]


def init_params(key, hidden):
    """Deterministic synthetic parameters in the canonical layouts documented above."""
    def uniform(k, shape, fan_in):
        bound = 1.0 / (fan_in ** 0.5)
        return jax.random.uniform(k, shape, jnp.float32, -bound, bound)

    h = hidden
    keys = jax.random.split(key, 10)
    fc_in = 4 * h * L3OUT
    return {
        "w1": uniform(keys[0], (3, h), 1 * 3),
        "b1": uniform(keys[1], (1, h), 1 * 3),
        "w2": uniform(keys[2], (3, h, 2 * h), h * 3),
        "b2": uniform(keys[3], (1, 2 * h), h * 3),
        "w3": uniform(keys[4], (3, 2 * h, 4 * h), 2 * h * 3),
        "b3": uniform(keys[5], (1, 4 * h), 2 * h * 3),
        "wf1": uniform(keys[6], (L3OUT, 4 * h, 2 * h), fc_in),
        "bf1": uniform(keys[7], (1, 2 * h), fc_in),
        "wf2": uniform(keys[8], (2 * h, 1), 2 * h),
        "bf2": uniform(keys[9], (1, 1), 2 * h),
    }


def _reference_forward(params, x):
    """Pure-JAX reference matching the PyTorch forward semantics."""
    x = jnp.asarray(x, jnp.float32).reshape(-1, N_FEATURES)

    def conv_relu_pool(a, w, b):          # a: (B, L, Cin); w: (3, Cin, Cout)
        length = a.shape[1]
        ap = jnp.pad(a, ((0, 0), (1, 1), (0, 0)))
        conv = sum(jnp.einsum("blc,cd->bld", ap[:, k:k + length, :], w[k],
                              precision=jax.lax.Precision.HIGHEST)
                   for k in range(3)) + b[0]
        conv = jnp.maximum(conv, 0.0)
        lout = length // 2
        conv = conv[:, :2 * lout, :].reshape(a.shape[0], lout, 2, -1)
        return jnp.max(conv, axis=2)

    a = x[:, :, None]
    a = conv_relu_pool(a, params["w1"][:, None, :], params["b1"])
    a = conv_relu_pool(a, params["w2"], params["b2"])
    a = conv_relu_pool(a, params["w3"], params["b3"])
    h = jnp.einsum("bjc,jco->bo", a, params["wf1"],
                   precision=jax.lax.Precision.HIGHEST) + params["bf1"]
    h = jnp.maximum(h, 0.0)
    z = h @ params["wf2"] + params["bf2"]
    return jax.nn.sigmoid(z)


if __name__ == "__main__":
    key = jax.random.PRNGKey(0)
    pkey, xkey = jax.random.split(key)
    params = init_params(pkey, HIDDEN)

    x = jax.random.normal(xkey, (2, N_FEATURES), jnp.float32)   # batch = 2
    out = jax.jit(complex_cnn_forward)(params, x)
    jax.block_until_ready(out)

    ref = _reference_forward(params, x)
    assert out.shape == (2, 1), out.shape
    assert bool(jnp.all(jnp.isfinite(out)))
    assert bool(jnp.allclose(out, ref, atol=1e-2)), (out, ref)
    print("KERNEL_OK")
</pallas_src>

<mosaic_0001>
module attributes {stable_mosaic.version = 11 : i64} {
  func.func @_fused_cnn_kernel(%arg0: i32, %arg1: memref<8x512xf32, #tpu.memory_space<vmem>>, %arg2: memref<64x24xf32, #tpu.memory_space<vmem>>, %arg3: memref<64x1xf32, #tpu.memory_space<vmem>>, %arg4: memref<512x256xf32, #tpu.memory_space<vmem>>, %arg5: memref<16x24xf32, #tpu.memory_space<vmem>>, %arg6: memref<128x1xf32, #tpu.memory_space<vmem>>, %arg7: memref<256x128xf32, #tpu.memory_space<vmem>>, %arg8: memref<32x48xf32, #tpu.memory_space<vmem>>, %arg9: memref<256x1xf32, #tpu.memory_space<vmem>>, %arg10: memref<4096x16xf32, #tpu.memory_space<vmem>>, %arg11: memref<1x16xf32, #tpu.memory_space<vmem>>, %arg12: memref<16x1xf32, #tpu.memory_space<vmem>>, %arg13: memref<1x1xf32, #tpu.memory_space<vmem>>, %arg14: memref<8x1xf32, #tpu.memory_space<vmem>>, %arg15: memref<256x128xf32, #tpu.memory_space<vmem>>) attributes {dimension_semantics = [#tpu.dimension_semantics<parallel>], iteration_bounds = array<i64: 1>, scalar_prefetch = 0 : i64, scratch_operands = 1 : i64, tpu.core_type = #tpu.core_type<tc>, window_params = [{transform_indices = @transform_0, window_bounds = array<i64: 8, 512>}, {pipeline_mode = #tpu.pipeline_mode<synchronous>, transform_indices = @transform_1, window_bounds = array<i64: 64, 24>}, {pipeline_mode = #tpu.pipeline_mode<synchronous>, transform_indices = @transform_2, window_bounds = array<i64: 64, 1>}, {pipeline_mode = #tpu.pipeline_mode<synchronous>, transform_indices = @transform_3, window_bounds = array<i64: 512, 256>}, {pipeline_mode = #tpu.pipeline_mode<synchronous>, transform_indices = @transform_4, window_bounds = array<i64: 16, 24>}, {pipeline_mode = #tpu.pipeline_mode<synchronous>, transform_indices = @transform_5, window_bounds = array<i64: 128, 1>}, {pipeline_mode = #tpu.pipeline_mode<synchronous>, transform_indices = @transform_6, window_bounds = array<i64: 256, 128>}, {pipeline_mode = #tpu.pipeline_mode<synchronous>, transform_indices = @transform_7, window_bounds = array<i64: 32, 48>}, {pipeline_mode = #tpu.pipeline_mode<synchronous>, transform_indices = @transform_8, window_bounds = array<i64: 256, 1>}, {pipeline_mode = #tpu.pipeline_mode<synchronous>, transform_indices = @transform_9, window_bounds = array<i64: 4096, 16>}, {pipeline_mode = #tpu.pipeline_mode<synchronous>, transform_indices = @transform_10, window_bounds = array<i64: 1, 16>}, {pipeline_mode = #tpu.pipeline_mode<synchronous>, transform_indices = @transform_11, window_bounds = array<i64: 16, 1>}, {pipeline_mode = #tpu.pipeline_mode<synchronous>, transform_indices = @transform_12, window_bounds = array<i64: 1, 1>}, {transform_indices = @transform_13, window_bounds = array<i64: 8, 1>}]} {
    %c0 = arith.constant 0 : index
    %c0_0 = arith.constant 0 : index
    %0 = vector.load %arg1[%c0, %c0_0] : memref<8x512xf32, #tpu.memory_space<vmem>>, vector<8x512xf32>
    %cst = arith.constant 0.000000e+00 : f32
    %1 = vector.broadcast %cst : f32 to vector<8x1xf32>
    %2 = vector.extract_strided_slice %0 {offsets = [0, 0], sizes = [8, 511], strides = [1, 1]} : vector<8x512xf32> to vector<8x511xf32>
    %3 = tpu.concatenate %1, %2 in 1 : vector<8x1xf32>, vector<8x511xf32> -> vector<8x512xf32>
    %cst_1 = arith.constant 0.000000e+00 : f32
    %4 = vector.broadcast %cst_1 : f32 to vector<8x1xf32>
    %5 = vector.extract_strided_slice %0 {offsets = [0, 1], sizes = [8, 511], strides = [1, 1]} : vector<8x512xf32> to vector<8x511xf32>
    %6 = tpu.concatenate %5, %4 in 1 : vector<8x511xf32>, vector<8x1xf32> -> vector<8x512xf32>
    %7 = tpu.concatenate %3, %0, %6 in 0 : vector<8x512xf32>, vector<8x512xf32>, vector<8x512xf32> -> vector<24x512xf32>
    %c0_2 = arith.constant 0 : index
    %c0_3 = arith.constant 0 : index
    %8 = vector.load %arg2[%c0_2, %c0_3] : memref<64x24xf32, #tpu.memory_space<vmem>>, vector<64x24xf32>
    %cst_4 = arith.constant dense<0.000000e+00> : vector<64x512xf32>
    %9 = tpu.matmul %8, %7, %cst_4 {dimension_numbers = #tpu.dot_dimension_numbers<[1], [0], [0], [1], [0, 0, 1, 1], [], []>} : vector<64x24xf32>, vector<24x512xf32>, vector<64x512xf32> -> vector<64x512xf32>
    %cst_5 = arith.constant 0.000000e+00 : f32
    %10 = vector.broadcast %cst_5 : f32 to vector<64x1xf32>
    %11 = vector.extract_strided_slice %9 {offsets = [0, 1], sizes = [64, 511], strides = [1, 1]} : vector<64x512xf32> to vector<64x511xf32>
    %12 = tpu.concatenate %11, %10 in 1 : vector<64x511xf32>, vector<64x1xf32> -> vector<64x512xf32>
    %13 = arith.maximumf %9, %12 : vector<64x512xf32>
    %c0_6 = arith.constant 0 : index
    %c0_7 = arith.constant 0 : index
    %14 = vector.load %arg3[%c0_6, %c0_7] : memref<64x1xf32, #tpu.memory_space<vmem>>, vector<64x1xf32>
    %15 = vector.broadcast %14 : vector<64x1xf32> to vector<64x512xf32>
    %16 = arith.addf %13, %15 : vector<64x512xf32>
    %cst_8 = arith.constant 0.000000e+00 : f32
    %17 = vector.broadcast %cst_8 : f32 to vector<64x512xf32>
    %18 = arith.maximumf %16, %17 : vector<64x512xf32>
    %c0_9 = arith.constant 0 : index
    %c0_10 = arith.constant 0 : index
    %19 = vector.load %arg4[%c0_9, %c0_10] : memref<512x256xf32, #tpu.memory_space<vmem>>, vector<512x256xf32>
    %cst_11 = arith.constant dense<0.000000e+00> : vector<64x256xf32>
    %20 = tpu.matmul %18, %19, %cst_11 {dimension_numbers = #tpu.dot_dimension_numbers<[1], [0], [0], [1], [0, 0, 1, 1], [], []>} : vector<64x512xf32>, vector<512x256xf32>, vector<64x256xf32> -> vector<64x256xf32>
    %c0_12 = arith.constant 0 : index
    %c0_13 = arith.constant 0 : index
    %21 = vector.load %arg5[%c0_12, %c0_13] : memref<16x24xf32, #tpu.memory_space<vmem>>, vector<16x24xf32>
    %cst_14 = arith.constant 0.000000e+00 : f32
    %22 = vector.broadcast %cst_14 : f32 to vector<64x1xf32>
    %23 = vector.extract_strided_slice %20 {offsets = [0, 0], sizes = [64, 255], strides = [1, 1]} : vector<64x256xf32> to vector<64x255xf32>
    %24 = tpu.concatenate %22, %23 in 1 : vector<64x1xf32>, vector<64x255xf32> -> vector<64x256xf32>
    %cst_15 = arith.constant 0.000000e+00 : f32
    %25 = vector.broadcast %cst_15 : f32 to vector<64x1xf32>
    %26 = vector.extract_strided_slice %20 {offsets = [0, 1], sizes = [64, 255], strides = [1, 1]} : vector<64x256xf32> to vector<64x255xf32>
    %27 = tpu.concatenate %26, %25 in 1 : vector<64x255xf32>, vector<64x1xf32> -> vector<64x256xf32>
    %28 = vector.extract_strided_slice %24 {offsets = [0, 0], sizes = [8, 256], strides = [1, 1]} : vector<64x256xf32> to vector<8x256xf32>
    %29 = vector.extract_strided_slice %20 {offsets = [0, 0], sizes = [8, 256], strides = [1, 1]} : vector<64x256xf32> to vector<8x256xf32>
    %30 = vector.extract_strided_slice %27 {offsets = [0, 0], sizes = [8, 256], strides = [1, 1]} : vector<64x256xf32> to vector<8x256xf32>
    %31 = tpu.concatenate %28, %29, %30 in 0 : vector<8x256xf32>, vector<8x256xf32>, vector<8x256xf32> -> vector<24x256xf32>
    %cst_16 = arith.constant dense<0.000000e+00> : vector<16x256xf32>
    %32 = tpu.matmul %21, %31, %cst_16 {dimension_numbers = #tpu.dot_dimension_numbers<[1], [0], [0], [1], [0, 0, 1, 1], [], []>} : vector<16x24xf32>, vector<24x256xf32>, vector<16x256xf32> -> vector<16x256xf32>
    %33 = vector.extract_strided_slice %24 {offsets = [8, 0], sizes = [8, 256], strides = [1, 1]} : vector<64x256xf32> to vector<8x256xf32>
    %34 = vector.extract_strided_slice %20 {offsets = [8, 0], sizes = [8, 256], strides = [1, 1]} : vector<64x256xf32> to vector<8x256xf32>
    %35 = vector.extract_strided_slice %27 {offsets = [8, 0], sizes = [8, 256], strides = [1, 1]} : vector<64x256xf32> to vector<8x256xf32>
    %36 = tpu.concatenate %33, %34, %35 in 0 : vector<8x256xf32>, vector<8x256xf32>, vector<8x256xf32> -> vector<24x256xf32>
    %cst_17 = arith.constant dense<0.000000e+00> : vector<16x256xf32>
    %37 = tpu.matmul %21, %36, %cst_17 {dimension_numbers = #tpu.dot_dimension_numbers<[1], [0], [0], [1], [0, 0, 1, 1], [], []>} : vector<16x24xf32>, vector<24x256xf32>, vector<16x256xf32> -> vector<16x256xf32>
    %38 = vector.extract_strided_slice %24 {offsets = [16, 0], sizes = [8, 256], strides = [1, 1]} : vector<64x256xf32> to vector<8x256xf32>
    %39 = vector.extract_strided_slice %20 {offsets = [16, 0], sizes = [8, 256], strides = [1, 1]} : vector<64x256xf32> to vector<8x256xf32>
    %40 = vector.extract_strided_slice %27 {offsets = [16, 0], sizes = [8, 256], strides = [1, 1]} : vector<64x256xf32> to vector<8x256xf32>
    %41 = tpu.concatenate %38, %39, %40 in 0 : vector<8x256xf32>, vector<8x256xf32>, vector<8x256xf32> -> vector<24x256xf32>
    %cst_18 = arith.constant dense<0.000000e+00> : vector<16x256xf32>
    %42 = tpu.matmul %21, %41, %cst_18 {dimension_numbers = #tpu.dot_dimension_numbers<[1], [0], [0], [1], [0, 0, 1, 1], [], []>} : vector<16x24xf32>, vector<24x256xf32>, vector<16x256xf32> -> vector<16x256xf32>
    %43 = vector.extract_strided_slice %24 {offsets = [24, 0], sizes = [8, 256], strides = [1, 1]} : vector<64x256xf32> to vector<8x256xf32>
    %44 = vector.extract_strided_slice %20 {offsets = [24, 0], sizes = [8, 256], strides = [1, 1]} : vector<64x256xf32> to vector<8x256xf32>
    %45 = vector.extract_strided_slice %27 {offsets = [24, 0], sizes = [8, 256], strides = [1, 1]} : vector<64x256xf32> to vector<8x256xf32>
    %46 = tpu.concatenate %43, %44, %45 in 0 : vector<8x256xf32>, vector<8x256xf32>, vector<8x256xf32> -> vector<24x256xf32>
    %cst_19 = arith.constant dense<0.000000e+00> : vector<16x256xf32>
    %47 = tpu.matmul %21, %46, %cst_19 {dimension_numbers = #tpu.dot_dimension_numbers<[1], [0], [0], [1], [0, 0, 1, 1], [], []>} : vector<16x24xf32>, vector<24x256xf32>, vector<16x256xf32> -> vector<16x256xf32>
    %48 = vector.extract_strided_slice %24 {offsets = [32, 0], sizes = [8, 256], strides = [1, 1]} : vector<64x256xf32> to vector<8x256xf32>
    %49 = vector.extract_strided_slice %20 {offsets = [32, 0], sizes = [8, 256], strides = [1, 1]} : vector<64x256xf32> to vector<8x256xf32>
    %50 = vector.extract_strided_slice %27 {offsets = [32, 0], sizes = [8, 256], strides = [1, 1]} : vector<64x256xf32> to vector<8x256xf32>
    %51 = tpu.concatenate %48, %49, %50 in 0 : vector<8x256xf32>, vector<8x256xf32>, vector<8x256xf32> -> vector<24x256xf32>
    %cst_20 = arith.constant dense<0.000000e+00> : vector<16x256xf32>
    %52 = tpu.matmul %21, %51, %cst_20 {dimension_numbers = #tpu.dot_dimension_numbers<[1], [0], [0], [1], [0, 0, 1, 1], [], []>} : vector<16x24xf32>, vector<24x256xf32>, vector<16x256xf32> -> vector<16x256xf32>
    %53 = vector.extract_strided_slice %24 {offsets = [40, 0], sizes = [8, 256], strides = [1, 1]} : vector<64x256xf32> to vector<8x256xf32>
    %54 = vector.extract_strided_slice %20 {offsets = [40, 0], sizes = [8, 256], strides = [1, 1]} : vector<64x256xf32> to vector<8x256xf32>
    %55 = vector.extract_strided_slice %27 {offsets = [40, 0], sizes = [8, 256], strides = [1, 1]} : vector<64x256xf32> to vector<8x256xf32>
    %56 = tpu.concatenate %53, %54, %55 in 0 : vector<8x256xf32>, vector<8x256xf32>, vector<8x256xf32> -> vector<24x256xf32>
    %cst_21 = arith.constant dense<0.000000e+00> : vector<16x256xf32>
    %57 = tpu.matmul %21, %56, %cst_21 {dimension_numbers = #tpu.dot_dimension_numbers<[1], [0], [0], [1], [0, 0, 1, 1], [], []>} : vector<16x24xf32>, vector<24x256xf32>, vector<16x256xf32> -> vector<16x256xf32>
    %58 = vector.extract_strided_slice %24 {offsets = [48, 0], sizes = [8, 256], strides = [1, 1]} : vector<64x256xf32> to vector<8x256xf32>
    %59 = vector.extract_strided_slice %20 {offsets = [48, 0], sizes = [8, 256], strides = [1, 1]} : vector<64x256xf32> to vector<8x256xf32>
    %60 = vector.extract_strided_slice %27 {offsets = [48, 0], sizes = [8, 256], strides = [1, 1]} : vector<64x256xf32> to vector<8x256xf32>
    %61 = tpu.concatenate %58, %59, %60 in 0 : vector<8x256xf32>, vector<8x256xf32>, vector<8x256xf32> -> vector<24x256xf32>
    %cst_22 = arith.constant dense<0.000000e+00> : vector<16x256xf32>
    %62 = tpu.matmul %21, %61, %cst_22 {dimension_numbers = #tpu.dot_dimension_numbers<[1], [0], [0], [1], [0, 0, 1, 1], [], []>} : vector<16x24xf32>, vector<24x256xf32>, vector<16x256xf32> -> vector<16x256xf32>
    %63 = vector.extract_strided_slice %24 {offsets = [56, 0], sizes = [8, 256], strides = [1, 1]} : vector<64x256xf32> to vector<8x256xf32>
    %64 = vector.extract_strided_slice %20 {offsets = [56, 0], sizes = [8, 256], strides = [1, 1]} : vector<64x256xf32> to vector<8x256xf32>
    %65 = vector.extract_strided_slice %27 {offsets = [56, 0], sizes = [8, 256], strides = [1, 1]} : vector<64x256xf32> to vector<8x256xf32>
    %66 = tpu.concatenate %63, %64, %65 in 0 : vector<8x256xf32>, vector<8x256xf32>, vector<8x256xf32> -> vector<24x256xf32>
    %cst_23 = arith.constant dense<0.000000e+00> : vector<16x256xf32>
    %67 = tpu.matmul %21, %66, %cst_23 {dimension_numbers = #tpu.dot_dimension_numbers<[1], [0], [0], [1], [0, 0, 1, 1], [], []>} : vector<16x24xf32>, vector<24x256xf32>, vector<16x256xf32> -> vector<16x256xf32>
    %68 = tpu.concatenate %32, %37, %42, %47, %52, %57, %62, %67 in 0 : vector<16x256xf32>, vector<16x256xf32>, vector<16x256xf32>, vector<16x256xf32>, vector<16x256xf32>, vector<16x256xf32>, vector<16x256xf32>, vector<16x256xf32> -> vector<128x256xf32>
    %cst_24 = arith.constant 0.000000e+00 : f32
    %69 = vector.broadcast %cst_24 : f32 to vector<128x1xf32>
    %70 = vector.extract_strided_slice %68 {offsets = [0, 1], sizes = [128, 255], strides = [1, 1]} : vector<128x256xf32> to vector<128x255xf32>
    %71 = tpu.concatenate %70, %69 in 1 : vector<128x255xf32>, vector<128x1xf32> -> vector<128x256xf32>
    %72 = arith.maximumf %68, %71 : vector<128x256xf32>
    %c0_25 = arith.constant 0 : index
    %c0_26 = arith.constant 0 : index
    %73 = vector.load %arg6[%c0_25, %c0_26] : memref<128x1xf32, #tpu.memory_space<vmem>>, vector<128x1xf32>
    %74 = vector.broadcast %73 : vector<128x1xf32> to vector<128x256xf32>
    %75 = arith.addf %72, %74 : vector<128x256xf32>
    %cst_27 = arith.constant 0.000000e+00 : f32
    %76 = vector.broadcast %cst_27 : f32 to vector<128x256xf32>
    %77 = arith.maximumf %75, %76 : vector<128x256xf32>
    %c0_28 = arith.constant 0 : index
    %c0_29 = arith.constant 0 : index
    %78 = vector.load %arg7[%c0_28, %c0_29] : memref<256x128xf32, #tpu.memory_space<vmem>>, vector<256x128xf32>
    %cst_30 = arith.constant dense<0.000000e+00> : vector<128x128xf32>
    %79 = tpu.matmul %77, %78, %cst_30 {dimension_numbers = #tpu.dot_dimension_numbers<[1], [0], [0], [1], [0, 0, 1, 1], [], []>} : vector<128x256xf32>, vector<256x128xf32>, vector<128x128xf32> -> vector<128x128xf32>
    %c0_31 = arith.constant 0 : index
    %c0_32 = arith.constant 0 : index
    %80 = vector.load %arg8[%c0_31, %c0_32] : memref<32x48xf32, #tpu.memory_space<vmem>>, vector<32x48xf32>
    %cst_33 = arith.constant 0.000000e+00 : f32
    %81 = vector.broadcast %cst_33 : f32 to vector<128x1xf32>
    %82 = vector.extract_strided_slice %79 {offsets = [0, 0], sizes = [128, 127], strides = [1, 1]} : vector<128x128xf32> to vector<128x127xf32>
    %83 = tpu.concatenate %81, %82 in 1 : vector<128x1xf32>, vector<128x127xf32> -> vector<128x128xf32>
    %cst_34 = arith.constant 0.000000e+00 : f32
    %84 = vector.broadcast %cst_34 : f32 to vector<128x1xf32>
    %85 = vector.extract_strided_slice %79 {offsets = [0, 1], sizes = [128, 127], strides = [1, 1]} : vector<128x128xf32> to vector<128x127xf32>
    %86 = tpu.concatenate %85, %84 in 1 : vector<128x127xf32>, vector<128x1xf32> -> vector<128x128xf32>
    %87 = vector.extract_strided_slice %83 {offsets = [0, 0], sizes = [16, 128], strides = [1, 1]} : vector<128x128xf32> to vector<16x128xf32>
    %88 = vector.extract_strided_slice %79 {offsets = [0, 0], sizes = [16, 128], strides = [1, 1]} : vector<128x128xf32> to vector<16x128xf32>
    %89 = vector.extract_strided_slice %86 {offsets = [0, 0], sizes = [16, 128], strides = [1, 1]} : vector<128x128xf32> to vector<16x128xf32>
    %90 = tpu.concatenate %87, %88, %89 in 0 : vector<16x128xf32>, vector<16x128xf32>, vector<16x128xf32> -> vector<48x128xf32>
    %cst_35 = arith.constant dense<0.000000e+00> : vector<32x128xf32>
    %91 = tpu.matmul %80, %90, %cst_35 {dimension_numbers = #tpu.dot_dimension_numbers<[1], [0], [0], [1], [0, 0, 1, 1], [], []>} : vector<32x48xf32>, vector<48x128xf32>, vector<32x128xf32> -> vector<32x128xf32>
    %92 = vector.extract_strided_slice %83 {offsets = [16, 0], sizes = [16, 128], strides = [1, 1]} : vector<128x128xf32> to vector<16x128xf32>
    %93 = vector.extract_strided_slice %79 {offsets = [16, 0], sizes = [16, 128], strides = [1, 1]} : vector<128x128xf32> to vector<16x128xf32>
    %94 = vector.extract_strided_slice %86 {offsets = [16, 0], sizes = [16, 128], strides = [1, 1]} : vector<128x128xf32> to vector<16x128xf32>
    %95 = tpu.concatenate %92, %93, %94 in 0 : vector<16x128xf32>, vector<16x128xf32>, vector<16x128xf32> -> vector<48x128xf32>
    %cst_36 = arith.constant dense<0.000000e+00> : vector<32x128xf32>
    %96 = tpu.matmul %80, %95, %cst_36 {dimension_numbers = #tpu.dot_dimension_numbers<[1], [0], [0], [1], [0, 0, 1, 1], [], []>} : vector<32x48xf32>, vector<48x128xf32>, vector<32x128xf32> -> vector<32x128xf32>
    %97 = vector.extract_strided_slice %83 {offsets = [32, 0], sizes = [16, 128], strides = [1, 1]} : vector<128x128xf32> to vector<16x128xf32>
    %98 = vector.extract_strided_slice %79 {offsets = [32, 0], sizes = [16, 128], strides = [1, 1]} : vector<128x128xf32> to vector<16x128xf32>
    %99 = vector.extract_strided_slice %86 {offsets = [32, 0], sizes = [16, 128], strides = [1, 1]} : vector<128x128xf32> to vector<16x128xf32>
    %100 = tpu.concatenate %97, %98, %99 in 0 : vector<16x128xf32>, vector<16x128xf32>, vector<16x128xf32> -> vector<48x128xf32>
    %cst_37 = arith.constant dense<0.000000e+00> : vector<32x128xf32>
    %101 = tpu.matmul %80, %100, %cst_37 {dimension_numbers = #tpu.dot_dimension_numbers<[1], [0], [0], [1], [0, 0, 1, 1], [], []>} : vector<32x48xf32>, vector<48x128xf32>, vector<32x128xf32> -> vector<32x128xf32>
    %102 = vector.extract_strided_slice %83 {offsets = [48, 0], sizes = [16, 128], strides = [1, 1]} : vector<128x128xf32> to vector<16x128xf32>
    %103 = vector.extract_strided_slice %79 {offsets = [48, 0], sizes = [16, 128], strides = [1, 1]} : vector<128x128xf32> to vector<16x128xf32>
    %104 = vector.extract_strided_slice %86 {offsets = [48, 0], sizes = [16, 128], strides = [1, 1]} : vector<128x128xf32> to vector<16x128xf32>
    %105 = tpu.concatenate %102, %103, %104 in 0 : vector<16x128xf32>, vector<16x128xf32>, vector<16x128xf32> -> vector<48x128xf32>
    %cst_38 = arith.constant dense<0.000000e+00> : vector<32x128xf32>
    %106 = tpu.matmul %80, %105, %cst_38 {dimension_numbers = #tpu.dot_dimension_numbers<[1], [0], [0], [1], [0, 0, 1, 1], [], []>} : vector<32x48xf32>, vector<48x128xf32>, vector<32x128xf32> -> vector<32x128xf32>
    %107 = vector.extract_strided_slice %83 {offsets = [64, 0], sizes = [16, 128], strides = [1, 1]} : vector<128x128xf32> to vector<16x128xf32>
    %108 = vector.extract_strided_slice %79 {offsets = [64, 0], sizes = [16, 128], strides = [1, 1]} : vector<128x128xf32> to vector<16x128xf32>
    %109 = vector.extract_strided_slice %86 {offsets = [64, 0], sizes = [16, 128], strides = [1, 1]} : vector<128x128xf32> to vector<16x128xf32>
    %110 = tpu.concatenate %107, %108, %109 in 0 : vector<16x128xf32>, vector<16x128xf32>, vector<16x128xf32> -> vector<48x128xf32>
    %cst_39 = arith.constant dense<0.000000e+00> : vector<32x128xf32>
    %111 = tpu.matmul %80, %110, %cst_39 {dimension_numbers = #tpu.dot_dimension_numbers<[1], [0], [0], [1], [0, 0, 1, 1], [], []>} : vector<32x48xf32>, vector<48x128xf32>, vector<32x128xf32> -> vector<32x128xf32>
    %112 = vector.extract_strided_slice %83 {offsets = [80, 0], sizes = [16, 128], strides = [1, 1]} : vector<128x128xf32> to vector<16x128xf32>
    %113 = vector.extract_strided_slice %79 {offsets = [80, 0], sizes = [16, 128], strides = [1, 1]} : vector<128x128xf32> to vector<16x128xf32>
    %114 = vector.extract_strided_slice %86 {offsets = [80, 0], sizes = [16, 128], strides = [1, 1]} : vector<128x128xf32> to vector<16x128xf32>
    %115 = tpu.concatenate %112, %113, %114 in 0 : vector<16x128xf32>, vector<16x128xf32>, vector<16x128xf32> -> vector<48x128xf32>
    %cst_40 = arith.constant dense<0.000000e+00> : vector<32x128xf32>
    %116 = tpu.matmul %80, %115, %cst_40 {dimension_numbers = #tpu.dot_dimension_numbers<[1], [0], [0], [1], [0, 0, 1, 1], [], []>} : vector<32x48xf32>, vector<48x128xf32>, vector<32x128xf32> -> vector<32x128xf32>
    %117 = vector.extract_strided_slice %83 {offsets = [96, 0], sizes = [16, 128], strides = [1, 1]} : vector<128x128xf32> to vector<16x128xf32>
    %118 = vector.extract_strided_slice %79 {offsets = [96, 0], sizes = [16, 128], strides = [1, 1]} : vector<128x128xf32> to vector<16x128xf32>
    %119 = vector.extract_strided_slice %86 {offsets = [96, 0], sizes = [16, 128], strides = [1, 1]} : vector<128x128xf32> to vector<16x128xf32>
    %120 = tpu.concatenate %117, %118, %119 in 0 : vector<16x128xf32>, vector<16x128xf32>, vector<16x128xf32> -> vector<48x128xf32>
    %cst_41 = arith.constant dense<0.000000e+00> : vector<32x128xf32>
    %121 = tpu.matmul %80, %120, %cst_41 {dimension_numbers = #tpu.dot_dimension_numbers<[1], [0], [0], [1], [0, 0, 1, 1], [], []>} : vector<32x48xf32>, vector<48x128xf32>, vector<32x128xf32> -> vector<32x128xf32>
    %122 = vector.extract_strided_slice %83 {offsets = [112, 0], sizes = [16, 128], strides = [1, 1]} : vector<128x128xf32> to vector<16x128xf32>
    %123 = vector.extract_strided_slice %79 {offsets = [112, 0], sizes = [16, 128], strides = [1, 1]} : vector<128x128xf32> to vector<16x128xf32>
    %124 = vector.extract_strided_slice %86 {offsets = [112, 0], sizes = [16, 128], strides = [1, 1]} : vector<128x128xf32> to vector<16x128xf32>
    %125 = tpu.concatenate %122, %123, %124 in 0 : vector<16x128xf32>, vector<16x128xf32>, vector<16x128xf32> -> vector<48x128xf32>
    %cst_42 = arith.constant dense<0.000000e+00> : vector<32x128xf32>
    %126 = tpu.matmul %80, %125, %cst_42 {dimension_numbers = #tpu.dot_dimension_numbers<[1], [0], [0], [1], [0, 0, 1, 1], [], []>} : vector<32x48xf32>, vector<48x128xf32>, vector<32x128xf32> -> vector<32x128xf32>
    %127 = tpu.concatenate %91, %96, %101, %106, %111, %116, %121, %126 in 0 : vector<32x128xf32>, vector<32x128xf32>, vector<32x128xf32>, vector<32x128xf32>, vector<32x128xf32>, vector<32x128xf32>, vector<32x128xf32>, vector<32x128xf32> -> vector<256x128xf32>
    %cst_43 = arith.constant 0.000000e+00 : f32
    %128 = vector.broadcast %cst_43 : f32 to vector<256x1xf32>
    %129 = vector.extract_strided_slice %127 {offsets = [0, 1], sizes = [256, 127], strides = [1, 1]} : vector<256x128xf32> to vector<256x127xf32>
    %130 = tpu.concatenate %129, %128 in 1 : vector<256x127xf32>, vector<256x1xf32> -> vector<256x128xf32>
    %131 = arith.maximumf %127, %130 : vector<256x128xf32>
    %c0_44 = arith.constant 0 : index
    %c0_45 = arith.constant 0 : index
    %132 = vector.load %arg9[%c0_44, %c0_45] : memref<256x1xf32, #tpu.memory_space<vmem>>, vector<256x1xf32>
    %133 = vector.broadcast %132 : vector<256x1xf32> to vector<256x128xf32>
    %134 = arith.addf %131, %133 : vector<256x128xf32>
    %cst_46 = arith.constant 0.000000e+00 : f32
    %135 = vector.broadcast %cst_46 : f32 to vector<256x128xf32>
    %136 = arith.maximumf %134, %135 : vector<256x128xf32>
    %c0_47 = arith.constant 0 : index
    %c0_48 = arith.constant 0 : index
    %137 = vector.load %arg15[%c0_47, %c0_48] : memref<256x128xf32, #tpu.memory_space<vmem>>, vector<256x128xf32>
    tpu.vector_store %arg15[%c0_47, %c0_48], %136 {strides = array<i32>} : memref<256x128xf32, #tpu.memory_space<vmem>>, vector<256x128xf32>,
    %c0_49 = arith.constant 0 : index
    %c0_50 = arith.constant 0 : index
    %138 = tpu.strided_load %arg15[%c0_49, %c0_50] {strides = array<i32: 32, 1>} : memref<256x128xf32, #tpu.memory_space<vmem>>, vector<8x128xf32>
    %c1 = arith.constant 1 : index
    %c0_51 = arith.constant 0 : index
    %139 = tpu.strided_load %arg15[%c1, %c0_51] {strides = array<i32: 32, 1>} : memref<256x128xf32, #tpu.memory_space<vmem>>, vector<8x128xf32>
    %c2 = arith.constant 2 : index
    %c0_52 = arith.constant 0 : index
    %140 = tpu.strided_load %arg15[%c2, %c0_52] {strides = array<i32: 32, 1>} : memref<256x128xf32, #tpu.memory_space<vmem>>, vector<8x128xf32>
    %c3 = arith.constant 3 : index
    %c0_53 = arith.constant 0 : index
    %141 = tpu.strided_load %arg15[%c3, %c0_53] {strides = array<i32: 32, 1>} : memref<256x128xf32, #tpu.memory_space<vmem>>, vector<8x128xf32>
    %c4 = arith.constant 4 : index
    %c0_54 = arith.constant 0 : index
    %142 = tpu.strided_load %arg15[%c4, %c0_54] {strides = array<i32: 32, 1>} : memref<256x128xf32, #tpu.memory_space<vmem>>, vector<8x128xf32>
    %c5 = arith.constant 5 : index
    %c0_55 = arith.constant 0 : index
    %143 = tpu.strided_load %arg15[%c5, %c0_55] {strides = array<i32: 32, 1>} : memref<256x128xf32, #tpu.memory_space<vmem>>, vector<8x128xf32>
    %c6 = arith.constant 6 : index
    %c0_56 = arith.constant 0 : index
    %144 = tpu.strided_load %arg15[%c6, %c0_56] {strides = array<i32: 32, 1>} : memref<256x128xf32, #tpu.memory_space<vmem>>, vector<8x128xf32>
    %c7 = arith.constant 7 : index
    %c0_57 = arith.constant 0 : index
    %145 = tpu.strided_load %arg15[%c7, %c0_57] {strides = array<i32: 32, 1>} : memref<256x128xf32, #tpu.memory_space<vmem>>, vector<8x128xf32>
    %c8 = arith.constant 8 : index
    %c0_58 = arith.constant 0 : index
    %146 = tpu.strided_load %arg15[%c8, %c0_58] {strides = array<i32: 32, 1>} : memref<256x128xf32, #tpu.memory_space<vmem>>, vector<8x128xf32>
    %c9 = arith.constant 9 : index
    %c0_59 = arith.constant 0 : index
    %147 = tpu.strided_load %arg15[%c9, %c0_59] {strides = array<i32: 32, 1>} : memref<256x128xf32, #tpu.memory_space<vmem>>, vector<8x128xf32>
    %c10 = arith.constant 10 : index
    %c0_60 = arith.constant 0 : index
    %148 = tpu.strided_load %arg15[%c10, %c0_60] {strides = array<i32: 32, 1>} : memref<256x128xf32, #tpu.memory_space<vmem>>, vector<8x128xf32>
    %c11 = arith.constant 11 : index
    %c0_61 = arith.constant 0 : index
    %149 = tpu.strided_load %arg15[%c11, %c0_61] {strides = array<i32: 32, 1>} : memref<256x128xf32, #tpu.memory_space<vmem>>, vector<8x128xf32>
    %c12 = arith.constant 12 : index
    %c0_62 = arith.constant 0 : index
    %150 = tpu.strided_load %arg15[%c12, %c0_62] {strides = array<i32: 32, 1>} : memref<256x128xf32, #tpu.memory_space<vmem>>, vector<8x128xf32>
    %c13 = arith.constant 13 : index
    %c0_63 = arith.constant 0 : index
    %151 = tpu.strided_load %arg15[%c13, %c0_63] {strides = array<i32: 32, 1>} : memref<256x128xf32, #tpu.memory_space<vmem>>, vector<8x128xf32>
    %c14 = arith.constant 14 : index
    %c0_64 = arith.constant 0 : index
    %152 = tpu.strided_load %arg15[%c14, %c0_64] {strides = array<i32: 32, 1>} : memref<256x128xf32, #tpu.memory_space<vmem>>, vector<8x128xf32>
    %c15 = arith.constant 15 : index
    %c0_65 = arith.constant 0 : index
    %153 = tpu.strided_load %arg15[%c15, %c0_65] {strides = array<i32: 32, 1>} : memref<256x128xf32, #tpu.memory_space<vmem>>, vector<8x128xf32>
    %c16 = arith.constant 16 : index
    %c0_66 = arith.constant 0 : index
    %154 = tpu.strided_load %arg15[%c16, %c0_66] {strides = array<i32: 32, 1>} : memref<256x128xf32, #tpu.memory_space<vmem>>, vector<8x128xf32>
    %c17 = arith.constant 17 : index
    %c0_67 = arith.constant 0 : index
    %155 = tpu.strided_load %arg15[%c17, %c0_67] {strides = array<i32: 32, 1>} : memref<256x128xf32, #tpu.memory_space<vmem>>, vector<8x128xf32>
    %c18 = arith.constant 18 : index
    %c0_68 = arith.constant 0 : index
    %156 = tpu.strided_load %arg15[%c18, %c0_68] {strides = array<i32: 32, 1>} : memref<256x128xf32, #tpu.memory_space<vmem>>, vector<8x128xf32>
    %c19 = arith.constant 19 : index
    %c0_69 = arith.constant 0 : index
    %157 = tpu.strided_load %arg15[%c19, %c0_69] {strides = array<i32: 32, 1>} : memref<256x128xf32, #tpu.memory_space<vmem>>, vector<8x128xf32>
    %c20 = arith.constant 20 : index
    %c0_70 = arith.constant 0 : index
    %158 = tpu.strided_load %arg15[%c20, %c0_70] {strides = array<i32: 32, 1>} : memref<256x128xf32, #tpu.memory_space<vmem>>, vector<8x128xf32>
    %c21 = arith.constant 21 : index
    %c0_71 = arith.constant 0 : index
    %159 = tpu.strided_load %arg15[%c21, %c0_71] {strides = array<i32: 32, 1>} : memref<256x128xf32, #tpu.memory_space<vmem>>, vector<8x128xf32>
    %c22 = arith.constant 22 : index
    %c0_72 = arith.constant 0 : index
    %160 = tpu.strided_load %arg15[%c22, %c0_72] {strides = array<i32: 32, 1>} : memref<256x128xf32, #tpu.memory_space<vmem>>, vector<8x128xf32>
    %c23 = arith.constant 23 : index
    %c0_73 = arith.constant 0 : index
    %161 = tpu.strided_load %arg15[%c23, %c0_73] {strides = array<i32: 32, 1>} : memref<256x128xf32, #tpu.memory_space<vmem>>, vector<8x128xf32>
    %c24 = arith.constant 24 : index
    %c0_74 = arith.constant 0 : index
    %162 = tpu.strided_load %arg15[%c24, %c0_74] {strides = array<i32: 32, 1>} : memref<256x128xf32, #tpu.memory_space<vmem>>, vector<8x128xf32>
    %c25 = arith.constant 25 : index
    %c0_75 = arith.constant 0 : index
    %163 = tpu.strided_load %arg15[%c25, %c0_75] {strides = array<i32: 32, 1>} : memref<256x128xf32, #tpu.memory_space<vmem>>, vector<8x128xf32>
    %c26 = arith.constant 26 : index
    %c0_76 = arith.constant 0 : index
    %164 = tpu.strided_load %arg15[%c26, %c0_76] {strides = array<i32: 32, 1>} : memref<256x128xf32, #tpu.memory_space<vmem>>, vector<8x128xf32>
    %c27 = arith.constant 27 : index
    %c0_77 = arith.constant 0 : index
    %165 = tpu.strided_load %arg15[%c27, %c0_77] {strides = array<i32: 32, 1>} : memref<256x128xf32, #tpu.memory_space<vmem>>, vector<8x128xf32>
    %c28 = arith.constant 28 : index
    %c0_78 = arith.constant 0 : index
    %166 = tpu.strided_load %arg15[%c28, %c0_78] {strides = array<i32: 32, 1>} : memref<256x128xf32, #tpu.memory_space<vmem>>, vector<8x128xf32>
    %c29 = arith.constant 29 : index
    %c0_79 = arith.constant 0 : index
    %167 = tpu.strided_load %arg15[%c29, %c0_79] {strides = array<i32: 32, 1>} : memref<256x128xf32, #tpu.memory_space<vmem>>, vector<8x128xf32>
    %c30 = arith.constant 30 : index
    %c0_80 = arith.constant 0 : index
    %168 = tpu.strided_load %arg15[%c30, %c0_80] {strides = array<i32: 32, 1>} : memref<256x128xf32, #tpu.memory_space<vmem>>, vector<8x128xf32>
    %c31 = arith.constant 31 : index
    %c0_81 = arith.constant 0 : index
    %169 = tpu.strided_load %arg15[%c31, %c0_81] {strides = array<i32: 32, 1>} : memref<256x128xf32, #tpu.memory_space<vmem>>, vector<8x128xf32>
    %170 = tpu.concatenate %138, %139, %140, %141, %142, %143, %144, %145, %146, %147, %148, %149, %150, %151, %152, %153 in 1 : vector<8x128xf32>, vector<8x128xf32>, vector<8x128xf32>, vector<8x128xf32>, vector<8x128xf32>, vector<8x128xf32>, vector<8x128xf32>, vector<8x128xf32>, vector<8x128xf32>, vector<8x128xf32>, vector<8x128xf32>, vector<8x128xf32>, vector<8x128xf32>, vector<8x128xf32>, vector<8x128xf32>, vector<8x128xf32> -> vector<8x2048xf32>
    %171 = tpu.concatenate %154, %155, %156, %157, %158, %159, %160, %161, %162, %163, %164, %165, %166, %167, %168, %169 in 1 : vector<8x128xf32>, vector<8x128xf32>, vector<8x128xf32>, vector<8x128xf32>, vector<8x128xf32>, vector<8x128xf32>, vector<8x128xf32>, vector<8x128xf32>, vector<8x128xf32>, vector<8x128xf32>, vector<8x128xf32>, vector<8x128xf32>, vector<8x128xf32>, vector<8x128xf32>, vector<8x128xf32>, vector<8x128xf32> -> vector<8x2048xf32>
    %172 = tpu.concatenate %170, %171 in 1 : vector<8x2048xf32>, vector<8x2048xf32> -> vector<8x4096xf32>
    %c0_82 = arith.constant 0 : index
    %c0_83 = arith.constant 0 : index
    %173 = vector.load %arg10[%c0_82, %c0_83] : memref<4096x16xf32, #tpu.memory_space<vmem>>, vector<4096x16xf32>
    %cst_84 = arith.constant dense<0.000000e+00> : vector<8x16xf32>
    %174 = tpu.matmul %172, %173, %cst_84 {dimension_numbers = #tpu.dot_dimension_numbers<[1], [0], [0], [1], [0, 0, 1, 1], [], []>} : vector<8x4096xf32>, vector<4096x16xf32>, vector<8x16xf32> -> vector<8x16xf32>
    %c0_85 = arith.constant 0 : index
    %c0_86 = arith.constant 0 : index
    %175 = vector.load %arg11[%c0_85, %c0_86] : memref<1x16xf32, #tpu.memory_space<vmem>>, vector<1x16xf32>
    %176 = vector.broadcast %175 : vector<1x16xf32> to vector<8x16xf32>
    %177 = arith.addf %174, %176 : vector<8x16xf32>
    %cst_87 = arith.constant 0.000000e+00 : f32
    %178 = vector.broadcast %cst_87 : f32 to vector<8x16xf32>
    %179 = arith.maximumf %177, %178 : vector<8x16xf32>
    %c0_88 = arith.constant 0 : index
    %c0_89 = arith.constant 0 : index
    %180 = vector.load %arg12[%c0_88, %c0_89] : memref<16x1xf32, #tpu.memory_space<vmem>>, vector<16x1xf32>
    %cst_90 = arith.constant dense<0.000000e+00> : vector<8x1xf32>
    %181 = tpu.matmul %179, %180, %cst_90 {dimension_numbers = #tpu.dot_dimension_numbers<[1], [0], [0], [1], [0, 0, 1, 1], [], []>} : vector<8x16xf32>, vector<16x1xf32>, vector<8x1xf32> -> vector<8x1xf32>
    %c0_91 = arith.constant 0 : index
    %c0_92 = arith.constant 0 : index
    %182 = vector.load %arg13[%c0_91, %c0_92] : memref<1x1xf32, #tpu.memory_space<vmem>>, vector<1x1xf32>
    %183 = vector.broadcast %182 : vector<1x1xf32> to vector<8x1xf32>
    %184 = arith.addf %181, %183 : vector<8x1xf32>
    %185 = math.absf %184 : vector<8x1xf32>
    %cst_93 = arith.constant 0.000000e+00 : f32
    %186 = vector.broadcast %cst_93 : f32 to vector<8x1xf32>
    %187 = arith.subf %186, %185 : vector<8x1xf32>
    %188 = math.exp %187 : vector<8x1xf32>
    %cst_94 = arith.constant 0.000000e+00 : f32
    %189 = vector.broadcast %cst_94 : f32 to vector<8x1xf32>
    %190 = arith.cmpf oge, %184, %189 : vector<8x1xf32>
    %cst_95 = arith.constant 1.000000e+00 : f32
    %191 = vector.broadcast %cst_95 : f32 to vector<8x1xf32>
    %192 = arith.select %190, %191, %188 : vector<8x1xi1>, vector<8x1xf32>
    %cst_96 = arith.constant 1.000000e+00 : f32
    %193 = vector.broadcast %cst_96 : f32 to vector<8x1xf32>
    %194 = arith.addf %193, %188 : vector<8x1xf32>
    %195 = arith.divf %192, %194 : vector<8x1xf32>
    %c0_97 = arith.constant 0 : index
    %c0_98 = arith.constant 0 : index
    %196 = vector.load %arg14[%c0_97, %c0_98] : memref<8x1xf32, #tpu.memory_space<vmem>>, vector<8x1xf32>
    tpu.vector_store %arg14[%c0_97, %c0_98], %195 {strides = array<i32>} : memref<8x1xf32, #tpu.memory_space<vmem>>, vector<8x1xf32>,
    return
  }
  func.func @transform_0(%arg0: i32) -> (i32, i32) {
    %c0_i32 = arith.constant 0 : i32
    %c0_i32_0 = arith.constant 0 : i32
    return %arg0, %c0_i32 : i32, i32
  }
  func.func @transform_1(%arg0: i32) -> (i32, i32) {
    %c0_i32 = arith.constant 0 : i32
    %c0_i32_0 = arith.constant 0 : i32
    %c0_i32_1 = arith.constant 0 : i32
    return %c0_i32, %c0_i32_0 : i32, i32
  }
  func.func @transform_2(%arg0: i32) -> (i32, i32) {
    %c0_i32 = arith.constant 0 : i32
    %c0_i32_0 = arith.constant 0 : i32
    %c0_i32_1 = arith.constant 0 : i32
    return %c0_i32, %c0_i32_0 : i32, i32
  }
  func.func @transform_3(%arg0: i32) -> (i32, i32) {
    %c0_i32 = arith.constant 0 : i32
    %c0_i32_0 = arith.constant 0 : i32
    %c0_i32_1 = arith.constant 0 : i32
    return %c0_i32, %c0_i32_0 : i32, i32
  }
  func.func @transform_4(%arg0: i32) -> (i32, i32) {
    %c0_i32 = arith.constant 0 : i32
    %c0_i32_0 = arith.constant 0 : i32
    %c0_i32_1 = arith.constant 0 : i32
    return %c0_i32, %c0_i32_0 : i32, i32
  }
  func.func @transform_5(%arg0: i32) -> (i32, i32) {
    %c0_i32 = arith.constant 0 : i32
    %c0_i32_0 = arith.constant 0 : i32
    %c0_i32_1 = arith.constant 0 : i32
    return %c0_i32, %c0_i32_0 : i32, i32
  }
  func.func @transform_6(%arg0: i32) -> (i32, i32) {
    %c0_i32 = arith.constant 0 : i32
    %c0_i32_0 = arith.constant 0 : i32
    %c0_i32_1 = arith.constant 0 : i32
    return %c0_i32, %c0_i32_0 : i32, i32
  }
  func.func @transform_7(%arg0: i32) -> (i32, i32) {
    %c0_i32 = arith.constant 0 : i32
    %c0_i32_0 = arith.constant 0 : i32
    %c0_i32_1 = arith.constant 0 : i32
    return %c0_i32, %c0_i32_0 : i32, i32
  }
  func.func @transform_8(%arg0: i32) -> (i32, i32) {
    %c0_i32 = arith.constant 0 : i32
    %c0_i32_0 = arith.constant 0 : i32
    %c0_i32_1 = arith.constant 0 : i32
    return %c0_i32, %c0_i32_0 : i32, i32
  }
  func.func @transform_9(%arg0: i32) -> (i32, i32) {
    %c0_i32 = arith.constant 0 : i32
    %c0_i32_0 = arith.constant 0 : i32
    %c0_i32_1 = arith.constant 0 : i32
    return %c0_i32, %c0_i32_0 : i32, i32
  }
  func.func @transform_10(%arg0: i32) -> (i32, i32) {
    %c0_i32 = arith.constant 0 : i32
    %c0_i32_0 = arith.constant 0 : i32
    %c0_i32_1 = arith.constant 0 : i32
    return %c0_i32, %c0_i32_0 : i32, i32
  }
  func.func @transform_11(%arg0: i32) -> (i32, i32) {
    %c0_i32 = arith.constant 0 : i32
    %c0_i32_0 = arith.constant 0 : i32
    %c0_i32_1 = arith.constant 0 : i32
    return %c0_i32, %c0_i32_0 : i32, i32
  }
  func.func @transform_12(%arg0: i32) -> (i32, i32) {
    %c0_i32 = arith.constant 0 : i32
    %c0_i32_0 = arith.constant 0 : i32
    %c0_i32_1 = arith.constant 0 : i32
    return %c0_i32, %c0_i32_0 : i32, i32
  }
  func.func @transform_13(%arg0: i32) -> (i32, i32) {
    %c0_i32 = arith.constant 0 : i32
    %c0_i32_0 = arith.constant 0 : i32
    return %arg0, %c0_i32 : i32, i32
  }
}

</mosaic_0001>

<bundles_post_ra>
// kernel: complex_cnn_forward.1
= control target key start
LH: loop header
LB: loop body
LE: loop exit
PB: predicated region body
PF: predicated region fallthrough
CT: control target
= control target key end

     0   :  { %v11772_v3 = vmov 0.0   ;;  %s7899_s14 = smov 127   ;;  %s7900_s17 = smov 1   ;;  %v7901_v7 = vmov 0   ;;  %vm62_vm0 = vcmask 7168   ;;  %vm7902_vm2 = vmmov 1   ;;  %s11758_s0 = inlined_call_operand.vmem [shape: f32[8,512], index: 0, kind: input, shape index: {}]   ;;  %s11759_s2 = inlined_call_operand.vmem [shape: f32[64,1], index: 2, kind: input, shape index: {}]   ;;  %s11760_s1 = inlined_call_operand.vmem [shape: f32[64,24], index: 1, kind: input, shape index: {}]   ;;  %s11761_s3 = inlined_call_operand.vmem [shape: f32[512,256], index: 3, kind: input, shape index: {}]   ;;  %s11762_s5 = inlined_call_operand.vmem [shape: f32[128,1], index: 5, kind: input, shape index: {}]   ;;  %s11763_s4 = inlined_call_operand.vmem [shape: f32[16,24], index: 4, kind: input, shape index: {}]   ;;  %s11764_s6 = inlined_call_operand.vmem [shape: f32[256,128], index: 6, kind: input, shape index: {}]   ;;  %s11765_s7 = inlined_call_operand.vmem [shape: f32[32,48], index: 7, kind: input, shape index: {}]   ;;  %s11766_s8 = inlined_call_operand.vmem [shape: f32[256,1], index: 8, kind: input, shape index: {}]   ;;  %s11767_s9 = inlined_call_operand.vmem [shape: f32[4096,16], index: 9, kind: input, shape index: {}]   ;;  %s11768_s10 = inlined_call_operand.vmem [shape: f32[1,16], index: 10, kind: input, shape index: {}]   ;;  %s11769_s11 = inlined_call_operand.vmem [shape: f32[16,1], index: 11, kind: input, shape index: {}]   ;;  %s11770_s12 = inlined_call_operand.<no memory space> [shape: f32[1,1], index: 12, kind: input, shape index: {}]   ;;  %s11771_s13 = inlined_call_operand.vmem [shape: f32[8,1], index: 13, kind: output, shape index: {}]  }
   0x1   :  { %v47_v0 = vld [vmem:[%s11758_s0 + $0x8] sm:$0xff]  ;;  %v46_v1 = vld [vmem:[%s11758_s0] sm:$0xff]  ;;  %v48_v2 = vld [vmem:[%s11758_s0 + $0x10] sm:$0xff]  ;;  %185 = vmatprep.mubr.f32.mxu0 %v11772_v3  ;;  %298 = vmatprep.mubr.f32.mxu1 %v11772_v3  ;;  %vm79_vm4 = vcmask 1039360   ;;  %vm96_vm5 = vcmask 195584   ;;  %vm2450_vm6 = vcmask 392192  }
   0x2   :  { %73 = vrot.lane.b32.xlu1 %v47_v0, %s7899_s14  ;;  %v7762_v4 = vpack.i.bf16 %v47_v0, %v46_v1  ;;  %v49_v5 = vld [vmem:[%s11758_s0 + $0x18] sm:$0xff]  ;;  %7772 = vset.pattern.permute.xlu0 %v7901_v7  ;;  %v539_v8 = vld [vmem:[%s11759_s2] sm:$0xff]  ;;  %vm7999_vm1 = vmneg %vm62_vm0  ;;  %vm7904_vm9 = vmmov 0   ;;  %vm5783_vm10 = vcmask 130048  }
   0x3   :  { %v7767_v6 = vpack.i.bf16 %v49_v5, %v48_v2  ;;  %7773 = vset.pattern.permute.xlu1 %v7901_v7  ;;  %vm8006_vm3 = vmpackc.low %vm7902_vm2, %vm7999_vm1  ;;  %v88_v29 = vld [vmem:[%s11760_s1] sm:$0xff]  ;;  %v89_v32 = vld [vmem:[%s11760_s1 + $0x8] sm:$0xff] }
   0x4   :  { %7763 = vrot.lane.b32.xlu0 %v7762_v4, %s7900_s17  ;;  %v90_v33 = vld [vmem:[%s11760_s1 + $0x10] sm:$0xff]  ;;  %v91_v34 = vld [vmem:[%s11760_s1 + $0x18] sm:$0xff]  ;;  %v92_v35 = vld [vmem:[%s11760_s1 + $0x20] sm:$0xff] }
   0x5   :  { %v93_v36 = vld [vmem:[%s11760_s1 + $0x28] sm:$0xff]  ;;  %v94_v37 = vld [vmem:[%s11760_s1 + $0x30] sm:$0xff]  ;;  %v95_v38 = vld [vmem:[%s11760_s1 + $0x38] sm:$0xff] }
   0x6   :  { %75 = vrot.lane.b32.xlu1 %v48_v2, %s7899_s14  ;;  %v652_v39 = vld [vmem:[%s11761_s3 + $0x8] sm:$0xff]  ;;  %v654_v40 = vld [vmem:[%s11761_s3 + $0x18] sm:$0xff]  ;;  %v651_v42 = vld [vmem:[%s11761_s3] sm:$0xff] }
   0x7   :  { %v6896_v41 = vpack.c.bf16 %v654_v40, %v652_v39  ;;  %v653_v43 = vld [vmem:[%s11761_s3 + $0x10] sm:$0xff]  ;;  %v656_v45 = vld [vmem:[%s11761_s3 + $0x28] sm:$0xff]  ;;  %v658_v46 = vld [vmem:[%s11761_s3 + $0x38] sm:$0xff] }
   0x8   :  { %7768 = vrot.lane.b32.xlu0 %v7767_v6, %s7900_s17  ;;  %v6898_v44 = vpack.c.bf16 %v653_v43, %v651_v42  ;;  %v6900_v47 = vpack.c.bf16 %v658_v46, %v656_v45  ;;  %v655_v48 = vld [vmem:[%s11761_s3 + $0x20] sm:$0xff]  ;;  %v657_v49 = vld [vmem:[%s11761_s3 + $0x30] sm:$0xff]  ;;  %v660_v51 = vld [vmem:[%s11761_s3 + $0x48] sm:$0xff] }
   0x9   :  { %v6902_v50 = vpack.c.bf16 %v657_v49, %v655_v48  ;;  %v662_v52 = vld [vmem:[%s11761_s3 + $0x58] sm:$0xff]  ;;  %v659_v53 = vld [vmem:[%s11761_s3 + $0x40] sm:$0xff]  ;;  %v661_v55 = vld [vmem:[%s11761_s3 + $0x50] sm:$0xff] }
   0xa   :  { %77 = vrot.lane.b32.xlu1 %v49_v5, %s7899_s14  ;;  %v6904_v54 = vpack.c.bf16 %v662_v52, %v660_v51  ;;  %v6906_v56 = vpack.c.bf16 %v661_v55, %v659_v53  ;;  %v664_v57 = vld [vmem:[%s11761_s3 + $0x68] sm:$0xff]  ;;  %v666_v58 = vld [vmem:[%s11761_s3 + $0x78] sm:$0xff]  ;;  %v663_v59 = vld [vmem:[%s11761_s3 + $0x60] sm:$0xff] }
   0xb   :  { %v6908_v60 = vpack.c.bf16 %v666_v58, %v664_v57  ;;  %v665_v61 = vld [vmem:[%s11761_s3 + $0x70] sm:$0xff]  ;;  %v668_v63 = vld [vmem:[%s11761_s3 + $0x88] sm:$0xff]  ;;  %v674_v6 = vld [vmem:[%s11761_s3 + $0xb8] sm:$0xff] }
   0xc   :  { %71 = vrot.lane.b32.xlu0 %v46_v1, %s7899_s14  ;;  %v6910_v62 = vpack.c.bf16 %v665_v61, %v663_v59  ;;  %v669_v4 = vld [vmem:[%s11761_s3 + $0x90] sm:$0xff]  ;;  %v696_v43 = vld [vmem:[%s11761_s3 + $0x168] sm:$0xff]  ;;  %v699_v53 = vld [vmem:[%s11761_s3 + $0x180] sm:$0xff] }
   0xd   :  { %v693_v42 = vld [vmem:[%s11761_s3 + $0x150] sm:$0xff]  ;;  %v700_v49 = vld [vmem:[%s11761_s3 + $0x188] sm:$0xff]  ;;  %v706_v57 = vld [vmem:[%s11761_s3 + $0x1b8] sm:$0xff] }
   0xe   :  { %v697_v48 = vld [vmem:[%s11761_s3 + $0x170] sm:$0xff]  ;;  %v703_v59 = vld [vmem:[%s11761_s3 + $0x1a0] sm:$0xff]  ;;  %vm9389_vm7 = vmpackc.low %vm7999_vm1, %vm7999_vm1 }
   0xf   :  { %v2141_v18 = vld [vmem:[%s11764_s6 + $0x80] sm:$0xff]  ;;  %vm9400_vm8 = vmpackc.low %vm79_vm4, %vm79_vm4 }
  0x10   :  { %549 = vperm.xlu0 %7772, %v539_v8  }
  0x74   :  { %v74_v9 = vpop.permute.xlu1 %73 }
  0x76   :  { %v7764_v10 = vpop.permute.xlu0 %7763 }
  0x77   :  { %v7766_v11 = vunpack.i.h.bf16 %v7764_v10  ;;  %v7765_v12 = vunpack.i.l.bf16 %v7764_v10  ;;  %v673_v10 = vld [vmem:[%s11761_s3 + $0xb0] sm:$0xff] }
  0x78   :  { %v76_v15 = vpop.permute.xlu1 %75 }
  0x79   :  { %v63_v14 = vsel %vm62_vm0, %v7765_v12, %v7766_v11  ;;  %v6889_v21 = vpack.c.bf16 %v46_v1, %v7765_v12  ;;  %v81_v22 = vsel %vm79_vm4, %v74_v9, %v76_v15  ;;  %v667_v1 = vld [vmem:[%s11761_s3 + $0x80] sm:$0xff]  ;;  %v678_v12 = vld [vmem:[%s11761_s3 + $0xd8] sm:$0xff] }
  0x7a   :  { %v7769_v16 = vpop.permute.xlu0 %7768  ;;  %v6887_v17 = vpack.c.bf16 %v47_v0, %v63_v14  ;;  %v670_v0 = vld [vmem:[%s11761_s3 + $0x98] sm:$0xff]  ;;  %v6914_v7 = vpack.c.bf16 %v669_v4, %v667_v1  ;;  %v707_v1 = vld [vmem:[%s11761_s3 + $0x1c0] sm:$0xff] }
  0x7b   :  { %v7771_v19 = vunpack.i.h.bf16 %v7769_v16  ;;  %v7770_v20 = vunpack.i.l.bf16 %v7769_v16  ;;  %v675_v16 = vld [vmem:[%s11761_s3 + $0xc0] sm:$0xff] }
  0x7c   :  { %6888 = vmatprep.subr.bf16.mxu0 %v6887_v17  ;;  %v78_v30 = vpop.permute.xlu1 %77  ;;  %v677_v17 = vld [vmem:[%s11761_s3 + $0xd0] sm:$0xff] }
  0x7d   :  { %6891 = vmatpush1.bf16.msk.msra.mxu0 %vm8006_vm3, %v6889_v21  ;;  %v65_v23 = vsel %vm62_vm0, %v7770_v20, %v7771_v19  ;;  %v64_v24 = vsel %vm62_vm0, %v7766_v11, %v7770_v20  ;;  %v82_v31 = vsel %vm79_vm4, %v76_v15, %v78_v30  ;;  %v676_v11 = vld [vmem:[%s11761_s3 + $0xc8] sm:$0xff]  ;;  %v682_v20 = vld [vmem:[%s11761_s3 + $0xf8] sm:$0xff]  ;;  %v6922_v21 = vpack.c.bf16 %v677_v17, %v675_v16 }
  0x7e   :  { %v72_v25 = vpop.permute.xlu0 %71  ;;  %125 = vmatprep.subr.mxu0 %v81_v22  ;;  %v6892_v26 = vpack.c.bf16 %v49_v5, %v65_v23  ;;  %v6894_v27 = vpack.c.bf16 %v48_v2, %v64_v24  ;;  %v6912_v2 = vpack.c.bf16 %v670_v0, %v668_v63  ;;  %v672_v5 = vld [vmem:[%s11761_s3 + $0xa8] sm:$0xff]  ;;  %v6920_v15 = vpack.c.bf16 %v678_v12, %v676_v11  ;;  %v679_v23 = vld [vmem:[%s11761_s3 + $0xe0] sm:$0xff]  ;;  %v681_v24 = vld [vmem:[%s11761_s3 + $0xf0] sm:$0xff] }
  0x7f   :  { %v80_v28 = vsel %vm79_vm4, %v72_v25, %v74_v9  ;;  %v6916_v8 = vpack.c.bf16 %v674_v6, %v672_v5  ;;  %v671_v9 = vld [vmem:[%s11761_s3 + $0xa0] sm:$0xff]  ;;  %v680_v19 = vld [vmem:[%s11761_s3 + $0xe8] sm:$0xff]  ;;  %v710_v63 = vld [vmem:[%s11761_s3 + $0x1d8] sm:$0xff] }
  0x80   :  { %6893 = vmatprep.subr.bf16.mxu1 %v6892_v26  ;;  %v6918_v14 = vpack.c.bf16 %v673_v10, %v671_v9  ;;  %v6924_v22 = vpack.c.bf16 %v682_v20, %v680_v19  ;;  %v684_v25 = vld [vmem:[%s11761_s3 + $0x108] sm:$0xff]  ;;  %v686_v26 = vld [vmem:[%s11761_s3 + $0x118] sm:$0xff]  ;;  %v713_v9 = vld [vmem:[%s11761_s3 + $0x1f0] sm:$0xff] }
  0x81   :  { %126 = vmatpush1.msra.mxu0 %v80_v28  ;;  %6895 = vmatpush1.bf16.msra.mxu1 %v6894_v27  ;;  %v6926_v27 = vpack.c.bf16 %v681_v24, %v679_v23  ;;  %v6928_v28 = vpack.c.bf16 %v686_v26, %v684_v25  ;;  %v712_v5 = vld [vmem:[%s11761_s3 + $0x1e8] sm:$0xff]  ;;  %v714_v6 = vld [vmem:[%s11761_s3 + $0x1f8] sm:$0xff] }
  0x82   :  { %5873 = vmatmul.mubr.msk.f32.vlgmr.msra.gmra.mrb[0].mxu0 %vm96_vm5, %v88_v29  ;;  %5881 = vmatprep.subr.msk.mxu1 %vm79_vm4, %v78_v30  ;;  %v685_v30 = vld [vmem:[%s11761_s3 + $0x110] sm:$0xff]  ;;  %v542_v20 = vld [vmem:[%s11759_s2 + $0x18] sm:$0xff] }
  0x83   :  { %191 = vmatprep.mubr.f32.mxu0 %v11772_v3  ;;  %6897 = vmatprep.subr.bf16.mxu0 %v6896_v41  ;;  %v691_v41 = vld [vmem:[%s11761_s3 + $0x140] sm:$0xff]  ;;  %v718_v23 = vld [vmem:[%s11761_s3 + $0x218] sm:$0xff] }
  0x84   :  { %6899 = vmatpush1.bf16.msra.mxu0 %v6898_v44  ;;  %v698_v44 = vld [vmem:[%s11761_s3 + $0x178] sm:$0xff]  ;;  %v6938_v45 = vpack.c.bf16 %v693_v42, %v691_v41 }
  0x85   :  { %239 = vmatpush1.msra.mxu1 %v82_v31  ;;  %6901 = vmatprep.subr.bf16.mxu0 %v6900_v47  ;;  %v688_v31 = vld [vmem:[%s11761_s3 + $0x128] sm:$0xff]  ;;  %v6940_v46 = vpack.c.bf16 %v698_v44, %v696_v43  ;;  %v695_v47 = vld [vmem:[%s11761_s3 + $0x160] sm:$0xff]  ;;  %v546_v44 = vld [vmem:[%s11759_s2 + $0x38] sm:$0xff] }
  0x86   :  { %5882 = vmatmul.mubr.msk.f32.vlgmr.msra.gmra.mrb[0].mxu1 %vm96_vm5, %v88_v29  ;;  %5874 = vmatmul.mubr.msk.f32.gmra.mrb[2].mxu0 %vm96_vm5, %v89_v32  ;;  %v683_v29 = vld [vmem:[%s11761_s3 + $0x100] sm:$0xff]  ;;  %v6942_v51 = vpack.c.bf16 %v697_v48, %v695_v47 }
  0x87   :  { %304 = vmatprep.mubr.f32.mxu1 %v11772_v3  ;;  %197 = vmatprep.mubr.f32.mxu0 %v11772_v3 }
  0x88   :  { %6903 = vmatpush1.bf16.msra.mxu0 %v6902_v50  ;;  %v702_v50 = vld [vmem:[%s11761_s3 + $0x198] sm:$0xff] }
  0x89   :  { %6905 = vmatprep.subr.bf16.mxu0 %v6904_v54  ;;  %v6944_v52 = vpack.c.bf16 %v702_v50, %v700_v49  ;;  %v701_v54 = vld [vmem:[%s11761_s3 + $0x190] sm:$0xff] }
  0x8a   :  { %5883 = vmatmul.mubr.msk.f32.gmra.mrb[2].mxu1 %vm96_vm5, %v89_v32  ;;  %5875 = vmatmul.mubr.msk.f32.gmra.mrb[4].mxu0 %vm96_vm5, %v90_v33  ;;  %v690_v32 = vld [vmem:[%s11761_s3 + $0x138] sm:$0xff]  ;;  %v6946_v55 = vpack.c.bf16 %v701_v54, %v699_v53 }
  0x8b   :  { %310 = vmatprep.mubr.f32.mxu1 %v11772_v3  ;;  %203 = vmatprep.mubr.f32.mxu0 %v11772_v3 }
  0x8c   :  { %6907 = vmatpush1.bf16.msra.mxu0 %v6906_v56  ;;  %v704_v56 = vld [vmem:[%s11761_s3 + $0x1a8] sm:$0xff] }
  0x8d   :  { %6909 = vmatprep.subr.bf16.mxu0 %v6908_v60  ;;  %v6948_v58 = vpack.c.bf16 %v706_v57, %v704_v56  ;;  %v705_v60 = vld [vmem:[%s11761_s3 + $0x1b0] sm:$0xff] }
  0x8e   :  { %5884 = vmatmul.mubr.msk.f32.gmra.mrb[4].mxu1 %vm96_vm5, %v90_v33  ;;  %5876 = vmatmul.mubr.msk.f32.gmra.mrb[6].mxu0 %vm96_vm5, %v91_v34  ;;  %v6930_v33 = vpack.c.bf16 %v685_v30, %v683_v29  ;;  %v6950_v61 = vpack.c.bf16 %v705_v60, %v703_v59  ;;  %v543_v29 = vld [vmem:[%s11759_s2 + $0x20] sm:$0xff] }
  0x8f   :  { %316 = vmatprep.mubr.f32.mxu1 %v11772_v3  ;;  %209 = vmatprep.mubr.f32.mxu0 %v11772_v3 }
  0x90   :  { %6911 = vmatpush1.bf16.msra.mxu0 %v6910_v62  ;;  %v708_v62 = vld [vmem:[%s11761_s3 + $0x1c8] sm:$0xff] }
  0x91   :  { %6913 = vmatprep.subr.bf16.mxu0 %v6912_v2  ;;  %v6952_v0 = vpack.c.bf16 %v710_v63, %v708_v62  ;;  %v709_v2 = vld [vmem:[%s11761_s3 + $0x1d0] sm:$0xff] }
  0x92   :  { %5885 = vmatmul.mubr.msk.f32.gmra.mrb[6].mxu1 %vm96_vm5, %v91_v34  ;;  %5877 = vmatmul.mubr.msk.f32.gmra.mrb[8].mxu0 %vm96_vm5, %v92_v35  ;;  %v6932_v34 = vpack.c.bf16 %v690_v32, %v688_v31  ;;  %v6954_v4 = vpack.c.bf16 %v709_v2, %v707_v1  ;;  %v717_v1 = vld [vmem:[%s11761_s3 + $0x210] sm:$0xff] }
  0x93   :  { %322 = vmatprep.mubr.f32.mxu1 %v11772_v3  ;;  %215 = vmatprep.mubr.f32.mxu0 %v11772_v3 }
  0x94   :  { %6915 = vmatpush1.bf16.msra.mxu0 %v6914_v7  ;;  %v711_v7 = vld [vmem:[%s11761_s3 + $0x1e0] sm:$0xff] }
  0x95   :  { %6917 = vmatprep.subr.bf16.mxu0 %v6916_v8  ;;  %v6956_v8 = vpack.c.bf16 %v714_v6, %v712_v5  ;;  %v6958_v10 = vpack.c.bf16 %v713_v9, %v711_v7  ;;  %v722_v5 = vld [vmem:[%s11761_s3 + $0x238] sm:$0xff] }
  0x96   :  { %5886 = vmatmul.mubr.msk.f32.gmra.mrb[8].mxu1 %vm96_vm5, %v92_v35  ;;  %5878 = vmatmul.mubr.msk.f32.gmra.mrb[10].mxu0 %vm96_vm5, %v93_v36  ;;  %v687_v35 = vld [vmem:[%s11761_s3 + $0x120] sm:$0xff] }
  0x97   :  { %328 = vmatprep.mubr.f32.mxu1 %v11772_v3  ;;  %221 = vmatprep.mubr.f32.mxu0 %v11772_v3 }
  0x98   :  { %6919 = vmatpush1.bf16.msra.mxu0 %v6918_v14  ;;  %v541_v14 = vld [vmem:[%s11759_s2 + $0x10] sm:$0xff] }
  0x99   :  { %6921 = vmatprep.subr.bf16.mxu0 %v6920_v15 }
  0x9a   :  { %5887 = vmatmul.mubr.msk.f32.gmra.mrb[10].mxu1 %vm96_vm5, %v93_v36  ;;  %5879 = vmatmul.mubr.msk.f32.gmra.mrb[12].mxu0 %vm96_vm5, %v94_v37  ;;  %v689_v36 = vld [vmem:[%s11761_s3 + $0x130] sm:$0xff] }
  0x9b   :  { %227 = vmatprep.mubr.f32.mxu0 %v11772_v3  ;;  %334 = vmatprep.mubr.f32.mxu1 %v11772_v3  ;;  %v6934_v39 = vpack.c.bf16 %v689_v36, %v687_v35 }
  0x9c   :  { %6923 = vmatpush1.bf16.msra.mxu0 %v6922_v21  ;;  %v540_v21 = vld [vmem:[%s11759_s2 + $0x8] sm:$0xff] }
  0x9d   :  { %6925 = vmatprep.subr.bf16.mxu0 %v6924_v22  ;;  %v716_v22 = vld [vmem:[%s11761_s3 + $0x208] sm:$0xff] }
  0x9e   :  { %5880 = vmatmul.mubr.msk.f32.gmra.mrb[14].mxu0 %vm96_vm5, %v95_v38  ;;  %5888 = vmatmul.mubr.msk.f32.gmra.mrb[12].mxu1 %vm96_vm5, %v94_v37  ;;  %v692_v37 = vld [vmem:[%s11761_s3 + $0x148] sm:$0xff]  ;;  %v6960_v26 = vpack.c.bf16 %v718_v23, %v716_v22  ;;  %v723_v22 = vld [vmem:[%s11761_s3 + $0x240] sm:$0xff]  ;;  %v725_v23 = vld [vmem:[%s11761_s3 + $0x250] sm:$0xff] }
  0x9f   :  { %340 = vmatprep.mubr.f32.mxu1 %v11772_v3 }
  0xa0   :  { %6927 = vmatpush1.bf16.msra.mxu0 %v6926_v27 }
  0xa1   :  { %6929 = vmatprep.subr.bf16.mxu0 %v6928_v28 }
  0xa2   :  { %5889 = vmatmul.mubr.msk.f32.gmra.mrb[14].mxu1 %vm96_vm5, %v95_v38  ;;  %v694_v38 = vld [vmem:[%s11761_s3 + $0x158] sm:$0xff] }
  0xa3   :  { %1221 = vmatprep.mubr.f32.mxu1 %v11772_v3  ;;  %v6936_v40 = vpack.c.bf16 %v694_v38, %v692_v37 }
  0xa4   :  { %6931 = vmatpush1.bf16.msra.mxu0 %v6930_v33 }
  0xa5   :  { %6933 = vmatprep.subr.bf16.mxu0 %v6932_v34  ;;  %v544_v34 = vld [vmem:[%s11759_s2 + $0x28] sm:$0xff] }
  0xa8   :  { %6935 = vmatpush1.bf16.msra.mxu0 %v6934_v39  ;;  %v545_v39 = vld [vmem:[%s11759_s2 + $0x30] sm:$0xff] }
  0xa9   :  { %6937 = vmatprep.subr.bf16.mxu0 %v6936_v40 }
  0xac   :  { %6939 = vmatpush1.bf16.msra.mxu0 %v6938_v45 }
  0xad   :  { %6941 = vmatprep.subr.bf16.mxu0 %v6940_v46 }
  0xb0   :  { %6943 = vmatpush1.bf16.msra.mxu0 %v6942_v51 }
  0xb1   :  { %6945 = vmatprep.subr.bf16.mxu0 %v6944_v52 }
  0xb4   :  { %6947 = vmatpush1.bf16.msra.mxu0 %v6946_v55  ;;  %v8420_v55 = vpop.permute.xlu0 %549 }
  0xb5   :  { %6949 = vmatprep.subr.bf16.mxu0 %v6948_v58 }
  0xb8   :  { %6951 = vmatpush1.bf16.msra.mxu0 %v6950_v61 }
  0xb9   :  { %6953 = vmatprep.subr.bf16.mxu0 %v6952_v0  ;;  %v715_v0 = vld [vmem:[%s11761_s3 + $0x200] sm:$0xff] }
  0xba   :  { %v6962_v7 = vpack.c.bf16 %v717_v1, %v715_v0  ;;  %v731_v1 = vld [vmem:[%s11761_s3 + $0x280] sm:$0xff] }
  0xbc   :  { %6955 = vmatpush1.bf16.msra.mxu0 %v6954_v4  ;;  %v720_v4 = vld [vmem:[%s11761_s3 + $0x228] sm:$0xff] }
  0xbd   :  { %6957 = vmatprep.subr.bf16.mxu0 %v6956_v8  ;;  %v6964_v9 = vpack.c.bf16 %v722_v5, %v720_v4  ;;  %v736_v5 = vld [vmem:[%s11761_s3 + $0x2a8] sm:$0xff] }
  0xc0   :  { %6959 = vmatpush1.bf16.msra.mxu0 %v6958_v10  ;;  %v719_v10 = vld [vmem:[%s11761_s3 + $0x220] sm:$0xff] }
  0xc1   :  { %6961 = vmatprep.subr.bf16.mxu0 %v6960_v26 }
 0x155   :  { %v8265_v11 = vpop.f32.mrb[0].mxu0 }
 0x156   :  { %379 = vrot.lane.b32.xlu0 %v8265_v11, %s7899_s14  ;;  %v8269_v12 = vpop.f32.mrb[1].mxu0 }
 0x157   :  { %381 = vrot.lane.b32.xlu1 %v8269_v12, %s7899_s14 }
 0x159   :  { %v8276_v15 = vpop.f32.mrb[0].mxu1  ;;  %v8278_v16 = vpop.f32.mrb[2].mxu0 }
 0x15a   :  { %v8280_v17 = vpop.f32.mrb[1].mxu1  ;;  %559 = vperm.xlu0 %7772, %v541_v14   ;;  %v8282_v19 = vpop.f32.mrb[3].mxu0  ;;  %v726_v14 = vld [vmem:[%s11761_s3 + $0x258] sm:$0xff] }
 0x15b   :  { %383 = vrot.lane.b32.xlu1 %v8276_v15, %s7899_s14 }
 0x15d   :  { %v8298_v24 = vpop.f32.mrb[2].mxu1  ;;  %v8300_v25 = vpop.f32.mrb[4].mxu0 }
 0x15e   :  { %564 = vperm.xlu0 %7772, %v542_v20   ;;  %v8302_v27 = vpop.f32.mrb[3].mxu1  ;;  %v8304_v28 = vpop.f32.mrb[5].mxu0 }
 0x15f   :  { %554 = vperm.xlu1 %7773, %v540_v21  }
 0x161   :  { %v8309_v30 = vpop.f32.mrb[4].mxu1  ;;  %v8311_v31 = vpop.f32.mrb[6].mxu0 }
 0x162   :  { %569 = vperm.xlu0 %7772, %v543_v29   ;;  %v8313_v32 = vpop.f32.mrb[5].mxu1  ;;  %v8315_v33 = vpop.f32.mrb[7].mxu0  ;;  %v728_v29 = vld [vmem:[%s11761_s3 + $0x268] sm:$0xff] }
 0x163   :  { %391 = vrot.lane.b32.xlu1 %v8298_v24, %s7899_s14 }
 0x165   :  { %v8322_v35 = vpop.f32.mrb[6].mxu1  ;;  %v8324_v36 = vpop.f32.mrb[8].mxu0 }
 0x166   :  { %574 = vperm.xlu0 %7772, %v544_v34   ;;  %v8326_v37 = vpop.f32.mrb[7].mxu1  ;;  %v8328_v38 = vpop.f32.mrb[9].mxu0  ;;  %v730_v34 = vld [vmem:[%s11761_s3 + $0x278] sm:$0xff] }
 0x167   :  { %387 = vrot.lane.b32.xlu1 %v8278_v16, %s7899_s14 }
 0x169   :  { %v8335_v40 = vpop.f32.mrb[8].mxu1  ;;  %v8337_v41 = vpop.f32.mrb[10].mxu0 }
 0x16a   :  { %579 = vperm.xlu0 %7772, %v545_v39   ;;  %v8339_v42 = vpop.f32.mrb[11].mxu0  ;;  %v8341_v43 = vpop.f32.mrb[9].mxu1  ;;  %v6970_v39 = vpack.c.bf16 %v725_v23, %v723_v22 }
 0x16b   :  { %399 = vrot.lane.b32.xlu1 %v8309_v30, %s7899_s14 }
 0x16d   :  { %v8348_v45 = vpop.f32.mrb[10].mxu1  ;;  %v8350_v46 = vpop.f32.mrb[12].mxu0 }
 0x16e   :  { %584 = vperm.xlu0 %7772, %v546_v44   ;;  %v8352_v47 = vpop.f32.mrb[13].mxu0  ;;  %v8354_v48 = vpop.f32.mrb[11].mxu1  ;;  %v6972_v44 = vpack.c.bf16 %v730_v34, %v728_v29  ;;  %v739_v29 = vld [vmem:[%s11761_s3 + $0x2c0] sm:$0xff]  ;;  %v741_v34 = vld [vmem:[%s11761_s3 + $0x2d0] sm:$0xff] }
 0x16f   :  { %395 = vrot.lane.b32.xlu1 %v8300_v25, %s7899_s14 }
 0x171   :  { %v8358_v49 = vpop.f32.mrb[14].mxu0  ;;  %v8360_v50 = vpop.f32.mrb[12].mxu1 }
 0x172   :  { %389 = vrot.lane.b32.xlu0 %v8282_v19, %s7899_s14  ;;  %v8364_v51 = vpop.f32.mrb[15].mxu0  ;;  %v8366_v52 = vpop.f32.mrb[13].mxu1 }
 0x173   :  { %407 = vrot.lane.b32.xlu1 %v8322_v35, %s7899_s14 }
 0x175   :  { %v8370_v53 = vpop.f32.mrb[14].mxu1 }
 0x176   :  { %397 = vrot.lane.b32.xlu0 %v8304_v28, %s7899_s14  ;;  %v8374_v54 = vpop.f32.mrb[15].mxu1 }
 0x177   :  { %403 = vrot.lane.b32.xlu1 %v8311_v31, %s7899_s14 }
 0x17a   :  { %405 = vrot.lane.b32.xlu0 %v8315_v33, %s7899_s14 }
 0x17b   :  { %415 = vrot.lane.b32.xlu1 %v8335_v40, %s7899_s14 }
 0x17e   :  { %413 = vrot.lane.b32.xlu0 %v8328_v38, %s7899_s14 }
 0x17f   :  { %411 = vrot.lane.b32.xlu1 %v8324_v36, %s7899_s14 }
 0x182   :  { %421 = vrot.lane.b32.xlu0 %v8339_v42, %s7899_s14 }
 0x183   :  { %423 = vrot.lane.b32.xlu1 %v8348_v45, %s7899_s14 }
 0x186   :  { %429 = vrot.lane.b32.xlu0 %v8352_v47, %s7899_s14 }
 0x187   :  { %419 = vrot.lane.b32.xlu1 %v8337_v41, %s7899_s14 }
 0x18a   :  { %437 = vrot.lane.b32.xlu0 %v8364_v51, %s7899_s14 }
 0x18b   :  { %431 = vrot.lane.b32.xlu1 %v8360_v50, %s7899_s14 }
 0x18e   :  { %435 = vrot.lane.b32.xlu0 %v8358_v49, %s7899_s14 }
 0x18f   :  { %427 = vrot.lane.b32.xlu1 %v8350_v46, %s7899_s14 }
 0x192   :  { %393 = vrot.lane.b32.xlu0 %v8302_v27, %s7899_s14 }
 0x193   :  { %439 = vrot.lane.b32.xlu1 %v8370_v53, %s7899_s14 }
 0x196   :  { %409 = vrot.lane.b32.xlu0 %v8326_v37, %s7899_s14 }
 0x197   :  { %385 = vrot.lane.b32.xlu1 %v8280_v17, %s7899_s14 }
 0x19a   :  { %425 = vrot.lane.b32.xlu0 %v8354_v48, %s7899_s14 }
 0x19b   :  { %401 = vrot.lane.b32.xlu1 %v8313_v32, %s7899_s14 }
 0x19e   :  { %441 = vrot.lane.b32.xlu0 %v8374_v54, %s7899_s14 }
 0x19f   :  { %417 = vrot.lane.b32.xlu1 %v8341_v43, %s7899_s14 }
 0x1a3   :  { %433 = vrot.lane.b32.xlu1 %v8366_v52, %s7899_s14 }
 0x1c8   :  { %v380_v56 = vpop.permute.xlu0 %379 }
 0x1c9   :  { %v382_v57 = vpop.permute.xlu1 %381 }
 0x1ca   :  { %v443_v58 = vsel %vm79_vm4, %v380_v56, %v382_v57  ;;  %v727_v56 = vld [vmem:[%s11761_s3 + $0x260] sm:$0xff] }
 0x1cb   :  { %v507_v59 = vmax.f32 %v8265_v11, %v443_v58  ;;  %v721_v11 = vld [vmem:[%s11761_s3 + $0x230] sm:$0xff] }
 0x1cc   :  { %v6966_v20 = vpack.c.bf16 %v721_v11, %v719_v10  ;;  %v735_v10 = vld [vmem:[%s11761_s3 + $0x2a0] sm:$0xff]  ;;  %v737_v11 = vld [vmem:[%s11761_s3 + $0x2b0] sm:$0xff] }
 0x1cd   :  { %v8424_v60 = vpop.permute.xlu1 %383  ;;  %v587_v63 = vadd.f32 %v8420_v55, %v507_v59  ;;  %v732_v59 = vld [vmem:[%s11761_s3 + $0x288] sm:$0xff]  ;;  %v6982_v22 = vpack.c.bf16 %v737_v11, %v735_v10  ;;  %v747_v10 = vld [vmem:[%s11761_s3 + $0x300] sm:$0xff]  ;;  %v749_v11 = vld [vmem:[%s11761_s3 + $0x310] sm:$0xff] }
 0x1ce   :  { %v444_v61 = vsel %vm79_vm4, %v382_v57, %v8424_v60  ;;  %v729_v57 = vld [vmem:[%s11761_s3 + $0x270] sm:$0xff] }
 0x1cf   :  { %v508_v62 = vmax.f32 %v8269_v12, %v444_v61  ;;  %v619_v8 = vmax.f32 %v587_v63, 0.0  ;;  %v724_v12 = vld [vmem:[%s11761_s3 + $0x248] sm:$0xff]  ;;  %v734_v61 = vld [vmem:[%s11761_s3 + $0x298] sm:$0xff]  ;;  %v6974_v63 = vpack.c.bf16 %v729_v57, %v727_v56 }
 0x1d0   :  { %v6968_v21 = vpack.c.bf16 %v726_v14, %v724_v12  ;;  %v6976_v0 = vpack.c.bf16 %v734_v61, %v732_v59  ;;  %v740_v14 = vld [vmem:[%s11761_s3 + $0x2c8] sm:$0xff]  ;;  %v746_v56 = vld [vmem:[%s11761_s3 + $0x2f8] sm:$0xff]  ;;  %v6986_v59 = vpack.c.bf16 %v741_v34, %v739_v29 }
 0x1d1   :  { %v588_v2 = vadd.f32 %v8420_v55, %v508_v62 }
 0x1d3   :  { %v620_v6 = vmax.f32 %v588_v2, 0.0  ;;  %v733_v2 = vld [vmem:[%s11761_s3 + $0x290] sm:$0xff] }
 0x1d5   :  { %843 = vmatprep.mubr.f32.mxu0 %v620_v6  ;;  %v738_v6 = vld [vmem:[%s11761_s3 + $0x2b8] sm:$0xff] }
 0x1d6   :  { %844 = vmatmul.mubr.f32.vlgmr.msra.gmra.mrb[16].mxu0 %v619_v8  ;;  %v6978_v8 = vpack.c.bf16 %v733_v2, %v731_v1  ;;  %v748_v2 = vld [vmem:[%s11761_s3 + $0x308] sm:$0xff] }
 0x1d7   :  { %6963 = vmatpush1.bf16.msra.mxu0 %v6962_v7 }
 0x1d8   :  { %6965 = vmatprep.subr.bf16.mxu0 %v6964_v9  ;;  %v6980_v9 = vpack.c.bf16 %v738_v6, %v736_v5  ;;  %v750_v5 = vld [vmem:[%s11761_s3 + $0x318] sm:$0xff] }
 0x1d9   :  { %v8461_v26 = vpop.permute.xlu0 %559 }
 0x1db   :  { %6967 = vmatpush1.bf16.msra.mxu0 %v6966_v20  ;;  %v742_v20 = vld [vmem:[%s11761_s3 + $0x2d8] sm:$0xff] }
 0x1dc   :  { %6969 = vmatprep.subr.bf16.mxu0 %v6968_v21  ;;  %v6984_v23 = vpack.c.bf16 %v742_v20, %v740_v14  ;;  %v752_v20 = vld [vmem:[%s11761_s3 + $0x328] sm:$0xff] }
 0x1dd   :  { %v8475_v58 = vpop.permute.xlu0 %564 }
 0x1de   :  { %v8483_v62 = vpop.permute.xlu1 %554 }
 0x1df   :  { %6971 = vmatpush1.bf16.msra.mxu0 %v6970_v39 }
 0x1e0   :  { %6973 = vmatprep.subr.bf16.mxu0 %v6972_v44  ;;  %v744_v44 = vld [vmem:[%s11761_s3 + $0x2e8] sm:$0xff] }
 0x1e1   :  { %v8491_v4 = vpop.permute.xlu0 %569  ;;  %v6988_v61 = vpack.c.bf16 %v746_v56, %v744_v44 }
 0x1e2   :  { %v8499_v7 = vpop.permute.xlu1 %391 }
 0x1e3   :  { %6975 = vmatpush1.bf16.msra.mxu0 %v6974_v63  ;;  %v743_v63 = vld [vmem:[%s11761_s3 + $0x2e0] sm:$0xff] }
 0x1e4   :  { %6977 = vmatprep.subr.bf16.mxu0 %v6976_v0  ;;  %v745_v0 = vld [vmem:[%s11761_s3 + $0x2f0] sm:$0xff] }
 0x1e5   :  { %v8507_v12 = vpop.permute.xlu0 %574 }
 0x1e6   :  { %v388_v21 = vpop.permute.xlu1 %387 }
 0x1e7   :  { %6979 = vmatpush1.bf16.msra.mxu0 %v6978_v8  ;;  %v6990_v8 = vpack.c.bf16 %v745_v0, %v743_v63  ;;  %v753_v63 = vld [vmem:[%s11761_s3 + $0x330] sm:$0xff] }
 0x1e8   :  { %6981 = vmatprep.subr.bf16.mxu0 %v6980_v9  ;;  %v6992_v9 = vpack.c.bf16 %v750_v5, %v748_v2 }
 0x1e9   :  { %v8521_v39 = vpop.permute.xlu0 %579 }
 0x1ea   :  { %v8529_v57 = vpop.permute.xlu1 %399 }
 0x1eb   :  { %6983 = vmatpush1.bf16.msra.mxu0 %v6982_v22  ;;  %v754_v22 = vld [vmem:[%s11761_s3 + $0x338] sm:$0xff] }
 0x1ec   :  { %6985 = vmatprep.subr.bf16.mxu0 %v6984_v23 }
 0x1ed   :  { %v8537_v1 = vpop.permute.xlu0 %584 }
 0x1ee   :  { %v396_v6 = vpop.permute.xlu1 %395 }
 0x1ef   :  { %6987 = vmatpush1.bf16.msra.mxu0 %v6986_v59  ;;  %v6994_v59 = vpack.c.bf16 %v749_v11, %v747_v10 }
 0x1f0   :  { %6989 = vmatprep.subr.bf16.mxu0 %v6988_v61  ;;  %v751_v61 = vld [vmem:[%s11761_s3 + $0x320] sm:$0xff] }
 0x1f1   :  { %v390_v14 = vpop.permute.xlu0 %389  ;;  %v6998_v11 = vpack.c.bf16 %v753_v63, %v751_v61 }
 0x1f2   :  { %v446_v23 = vsel %vm79_vm4, %v388_v21, %v390_v14  ;;  %v447_v29 = vsel %vm79_vm4, %v390_v14, %v8499_v7  ;;  %v8560_v34 = vpop.permute.xlu1 %407  ;;  %v6996_v21 = vpack.c.bf16 %v754_v22, %v752_v20 }
 0x1f3   :  { %v511_v44 = vmax.f32 %v8278_v16, %v446_v23  ;;  %v512_v56 = vmax.f32 %v8282_v19, %v447_v29  ;;  %6991 = vmatpush1.bf16.msra.mxu0 %v6990_v8  ;;  %v756_v16 = vld [vmem:[%s11761_s3 + $0x348] sm:$0xff]  ;;  %v758_v19 = vld [vmem:[%s11761_s3 + $0x358] sm:$0xff]  ;;  %v755_v29 = vld [vmem:[%s11761_s3 + $0x340] sm:$0xff] }
 0x1f4   :  { %6993 = vmatprep.subr.bf16.mxu0 %v6992_v9 }
 0x1f5   :  { %v398_v0 = vpop.permute.xlu0 %397  ;;  %v592_v2 = vadd.f32 %v8483_v62, %v512_v56  ;;  %v591_v5 = vadd.f32 %v8483_v62, %v511_v44  ;;  %v7000_v44 = vpack.c.bf16 %v758_v19, %v756_v16 }
 0x1f6   :  { %v449_v8 = vsel %vm79_vm4, %v396_v6, %v398_v0  ;;  %v450_v10 = vsel %vm79_vm4, %v398_v0, %v8529_v57  ;;  %v404_v9 = vpop.permute.xlu1 %403  ;;  %v757_v6 = vld [vmem:[%s11761_s3 + $0x350] sm:$0xff] }
 0x1f7   :  { %v515_v14 = vmax.f32 %v8300_v25, %v449_v8  ;;  %v516_v20 = vmax.f32 %v8304_v28, %v450_v10  ;;  %v624_v22 = vmax.f32 %v592_v2, 0.0  ;;  %v623_v23 = vmax.f32 %v591_v5, 0.0  ;;  %6995 = vmatpush1.bf16.msra.mxu0 %v6994_v59  ;;  %v760_v28 = vld [vmem:[%s11761_s3 + $0x368] sm:$0xff]  ;;  %v762_v59 = vld [vmem:[%s11761_s3 + $0x378] sm:$0xff]  ;;  %v759_v10 = vld [vmem:[%s11761_s3 + $0x360] sm:$0xff] }
 0x1f8   :  { %6997 = vmatprep.subr.bf16.mxu0 %v6996_v21  ;;  %v7002_v2 = vpack.c.bf16 %v757_v6, %v755_v29 }
 0x1f9   :  { %849 = vmatprep.mubr.f32.mxu0 %v624_v22  ;;  %v406_v56 = vpop.permute.xlu0 %405  ;;  %v596_v61 = vadd.f32 %v8461_v26, %v516_v20  ;;  %v595_v25 = vadd.f32 %v8461_v26, %v515_v14  ;;  %v7004_v14 = vpack.c.bf16 %v762_v59, %v760_v28 }
 0x1fa   :  { %v452_v63 = vsel %vm79_vm4, %v404_v9, %v406_v56  ;;  %v453_v21 = vsel %vm79_vm4, %v406_v56, %v8560_v34  ;;  %850 = vmatmul.mubr.f32.gmra.mrb[18].mxu0 %v623_v23  ;;  %v8600_v0 = vpop.permute.xlu1 %415  ;;  %v761_v9 = vld [vmem:[%s11761_s3 + $0x370] sm:$0xff] }
 0x1fb   :  { %v519_v5 = vmax.f32 %v8311_v31, %v452_v63  ;;  %v520_v16 = vmax.f32 %v8315_v33, %v453_v21  ;;  %v628_v19 = vmax.f32 %v596_v61, 0.0  ;;  %v627_v8 = vmax.f32 %v595_v25, 0.0  ;;  %6999 = vmatpush1.bf16.msra.mxu0 %v6998_v11  ;;  %v764_v33 = vld [vmem:[%s11761_s3 + $0x388] sm:$0xff]  ;;  %v766_v11 = vld [vmem:[%s11761_s3 + $0x398] sm:$0xff]  ;;  %v763_v63 = vld [vmem:[%s11761_s3 + $0x380] sm:$0xff] }
 0x1fc   :  { %7001 = vmatprep.subr.bf16.mxu0 %v7000_v44  ;;  %v7006_v6 = vpack.c.bf16 %v761_v9, %v759_v10  ;;  %v7008_v59 = vpack.c.bf16 %v766_v11, %v764_v33  ;;  %v765_v21 = vld [vmem:[%s11761_s3 + $0x390] sm:$0xff] }
 0x1fd   :  { %855 = vmatprep.mubr.f32.mxu0 %v628_v19  ;;  %v414_v20 = vpop.permute.xlu0 %413  ;;  %v600_v22 = vadd.f32 %v8475_v58, %v520_v16  ;;  %v599_v31 = vadd.f32 %v8475_v58, %v519_v5  ;;  %v7010_v9 = vpack.c.bf16 %v765_v21, %v763_v63  ;;  %v769_v33 = vld [vmem:[%s11761_s3 + $0x3b0] sm:$0xff] }
 0x1fe   :  { %v456_v23 = vsel %vm79_vm4, %v414_v20, %v8600_v0  ;;  %856 = vmatmul.mubr.f32.gmra.mrb[20].mxu0 %v627_v8  ;;  %v412_v29 = vpop.permute.xlu1 %411  ;;  %v773_v63 = vld [vmem:[%s11761_s3 + $0x3d0] sm:$0xff] }
 0x1ff   :  { %v524_v44 = vmax.f32 %v8328_v38, %v456_v23  ;;  %v455_v56 = vsel %vm79_vm4, %v412_v29, %v414_v20  ;;  %v632_v61 = vmax.f32 %v600_v22, 0.0  ;;  %v631_v25 = vmax.f32 %v599_v31, 0.0  ;;  %7003 = vmatpush1.bf16.msra.mxu0 %v7002_v2  ;;  %v768_v2 = vld [vmem:[%s11761_s3 + $0x3a8] sm:$0xff]  ;;  %v767_v31 = vld [vmem:[%s11761_s3 + $0x3a0] sm:$0xff] }
 0x200   :  { %v523_v28 = vmax.f32 %v8324_v36, %v455_v56  ;;  %7005 = vmatprep.subr.bf16.mxu0 %v7004_v14  ;;  %v770_v36 = vld [vmem:[%s11761_s3 + $0x3b8] sm:$0xff]  ;;  %v772_v23 = vld [vmem:[%s11761_s3 + $0x3c8] sm:$0xff]  ;;  %v7014_v56 = vpack.c.bf16 %v769_v33, %v767_v31 }
 0x201   :  { %861 = vmatprep.mubr.f32.mxu0 %v632_v61  ;;  %v422_v5 = vpop.permute.xlu0 %421  ;;  %v604_v38 = vadd.f32 %v8491_v4, %v524_v44  ;;  %v7012_v22 = vpack.c.bf16 %v770_v36, %v768_v2 }
 0x202   :  { %862 = vmatmul.mubr.f32.gmra.mrb[22].mxu0 %v631_v25  ;;  %v8636_v16 = vpop.permute.xlu1 %423  ;;  %v603_v19 = vadd.f32 %v8491_v4, %v523_v28 }
 0x203   :  { %v459_v8 = vsel %vm79_vm4, %v422_v5, %v8636_v16  ;;  %v636_v10 = vmax.f32 %v604_v38, 0.0  ;;  %7007 = vmatpush1.bf16.msra.mxu0 %v7006_v6 }
 0x204   :  { %v528_v14 = vmax.f32 %v8339_v42, %v459_v8  ;;  %v635_v20 = vmax.f32 %v603_v19, 0.0  ;;  %7009 = vmatprep.subr.bf16.mxu0 %v7008_v59  ;;  %v774_v42 = vld [vmem:[%s11761_s3 + $0x3d8] sm:$0xff]  ;;  %v771_v59 = vld [vmem:[%s11761_s3 + $0x3c0] sm:$0xff] }
 0x205   :  { %867 = vmatprep.mubr.f32.mxu0 %v636_v10  ;;  %v430_v11 = vpop.permute.xlu0 %429  ;;  %v7016_v28 = vpack.c.bf16 %v774_v42, %v772_v23  ;;  %v7018_v19 = vpack.c.bf16 %v773_v63, %v771_v59 }
 0x206   :  { %868 = vmatmul.mubr.f32.gmra.mrb[24].mxu0 %v635_v20  ;;  %v420_v29 = vpop.permute.xlu1 %419  ;;  %v608_v6 = vadd.f32 %v8507_v12, %v528_v14  ;;  %v775_v14 = vld [vmem:[%s11761_s3 + $0x3e0] sm:$0xff]  ;;  %v777_v20 = vld [vmem:[%s11761_s3 + $0x3f0] sm:$0xff] }
 0x207   :  { %v458_v44 = vsel %vm79_vm4, %v420_v29, %v422_v5  ;;  %7011 = vmatpush1.bf16.msra.mxu0 %v7010_v9  ;;  %v776_v5 = vld [vmem:[%s11761_s3 + $0x3e8] sm:$0xff]  ;;  %v7022_v42 = vpack.c.bf16 %v777_v20, %v775_v14 }
 0x208   :  { %v527_v61 = vmax.f32 %v8337_v41, %v458_v44  ;;  %v640_v25 = vmax.f32 %v608_v6, 0.0  ;;  %7013 = vmatprep.subr.bf16.mxu0 %v7012_v22  ;;  %v778_v41 = vld [vmem:[%s11761_s3 + $0x3f8] sm:$0xff] }
 0x209   :  { %v438_v21 = vpop.permute.xlu0 %437  ;;  %v7020_v9 = vpack.c.bf16 %v778_v41, %v776_v5 }
 0x20a   :  { %v8669_v38 = vpop.permute.xlu1 %431  ;;  %873 = vmatprep.mubr.f32.mxu0 %v640_v25  ;;  %v607_v2 = vadd.f32 %v8507_v12, %v527_v61 }
 0x20b   :  { %v462_v36 = vsel %vm79_vm4, %v430_v11, %v8669_v38  ;;  %7015 = vmatpush1.bf16.msra.mxu0 %v7014_v56 }
 0x20c   :  { %v532_v8 = vmax.f32 %v8352_v47, %v462_v36  ;;  %v639_v10 = vmax.f32 %v607_v2, 0.0  ;;  %7017 = vmatprep.subr.bf16.mxu0 %v7016_v28 }
 0x20d   :  { %v436_v22 = vpop.permute.xlu0 %435 }
 0x20e   :  { %v464_v31 = vsel %vm79_vm4, %v436_v22, %v438_v21  ;;  %874 = vmatmul.mubr.f32.gmra.mrb[26].mxu0 %v639_v10  ;;  %v428_v33 = vpop.permute.xlu1 %427  ;;  %v612_v23 = vadd.f32 %v8521_v39, %v532_v8 }
 0x20f   :  { %v461_v47 = vsel %vm79_vm4, %v428_v33, %v430_v11  ;;  %7019 = vmatpush1.bf16.msra.mxu0 %v7018_v19  ;;  %v535_v44 = vmax.f32 %v8358_v49, %v464_v31 }
 0x210   :  { %v531_v29 = vmax.f32 %v8350_v46, %v461_v47  ;;  %v644_v6 = vmax.f32 %v612_v23, 0.0  ;;  %7021 = vmatprep.subr.bf16.mxu0 %v7020_v9 }
 0x211   :  { %v394_v56 = vpop.permute.xlu0 %393  ;;  %v615_v46 = vadd.f32 %v8537_v1, %v535_v44 }
 0x212   :  { %v8686_v61 = vpop.permute.xlu1 %439  ;;  %879 = vmatprep.mubr.f32.mxu0 %v644_v6  ;;  %v611_v25 = vadd.f32 %v8521_v39, %v531_v29  ;;  %v500_v28 = vsel %vm79_vm4, %v394_v56, 0.0  ;;  %v448_v49 = vsel %vm79_vm4, %v8499_v7, %v394_v56 }
 0x213   :  { %v465_v59 = vsel %vm79_vm4, %v438_v21, %v8686_v61  ;;  %7023 = vmatpush1.bf16.msra.mxu0 %v7022_v42  ;;  %v514_v5 = vmax.f32 %v8302_v27, %v500_v28  ;;  %v513_v9 = vmax.f32 %v8298_v24, %v448_v49  ;;  %v647_v7 = vmax.f32 %v615_v46, 0.0 }
 0x214   :  { %v536_v11 = vmax.f32 %v8364_v51, %v465_v59  ;;  %v643_v63 = vmax.f32 %v611_v25, 0.0 }
 0x215   :  { %v410_v19 = vpop.permute.xlu0 %409  ;;  %v594_v22 = vadd.f32 %v8483_v62, %v514_v5  ;;  %v593_v47 = vadd.f32 %v8483_v62, %v513_v9 }
 0x216   :  { %v386_v41 = vpop.permute.xlu1 %385  ;;  %880 = vmatmul.mubr.f32.gmra.mrb[28].mxu0 %v643_v63  ;;  %v616_v2 = vadd.f32 %v8537_v1, %v536_v11 }
 0x217   :  { %v445_v36 = vsel %vm79_vm4, %v8424_v60, %v386_v41  ;;  %v499_v21 = vsel %vm79_vm4, %v386_v41, 0.0  ;;  %v502_v60 = vsel %vm79_vm4, %v410_v19, 0.0  ;;  %v626_v6 = vmax.f32 %v594_v22, 0.0 }
 0x218   :  { %v509_v51 = vmax.f32 %v8276_v15, %v445_v36  ;;  %v510_v8 = vmax.f32 %v8280_v17, %v499_v21  ;;  %v648_v10 = vmax.f32 %v616_v2, 0.0  ;;  %v522_v42 = vmax.f32 %v8326_v37, %v502_v60 }
 0x219   :  { %v426_v56 = vpop.permute.xlu0 %425 }
 0x21a   :  { %v589_v27 = vadd.f32 %v8420_v55, %v509_v51  ;;  %v402_v14 = vpop.permute.xlu1 %401  ;;  %885 = vmatprep.mubr.f32.mxu0 %v648_v10  ;;  %v590_v20 = vadd.f32 %v8420_v55, %v510_v8  ;;  %v454_v55 = vsel %vm79_vm4, %v8560_v34, %v410_v19  ;;  %v602_v28 = vadd.f32 %v8475_v58, %v522_v42 }
 0x21b   :  { %v451_v31 = vsel %vm79_vm4, %v8529_v57, %v402_v14  ;;  %v501_v15 = vsel %vm79_vm4, %v402_v14, 0.0  ;;  %886 = vmatmul.mubr.f32.gmra.mrb[30].mxu0 %v647_v7  ;;  %v504_v59 = vsel %vm79_vm4, %v426_v56, 0.0 }
 0x21c   :  { %v621_v17 = vmax.f32 %v589_v27, 0.0  ;;  %v518_v24 = vmax.f32 %v8313_v32, %v501_v15  ;;  %v622_v33 = vmax.f32 %v590_v20, 0.0  ;;  %v517_v23 = vmax.f32 %v8309_v30, %v451_v31 }
 0x21d   :  { %v521_v32 = vmax.f32 %v8322_v35, %v454_v55  ;;  %v625_v30 = vmax.f32 %v593_v47, 0.0  ;;  %v634_v49 = vmax.f32 %v602_v28, 0.0  ;;  %v442_v41 = vpop.permute.xlu0 %441  ;;  %v1967_v28 = vld [vmem:[%s11762_s5 + $0x10] sm:$0xff] }
 0x21e   :  { %v418_v29 = vpop.permute.xlu1 %417  ;;  %956 = vmatprep.mubr.f32.mxu0 %v622_v33  ;;  %v598_v57 = vadd.f32 %v8461_v26, %v518_v24  ;;  %v597_v62 = vadd.f32 %v8461_v26, %v517_v23  ;;  %v460_v26 = vsel %vm79_vm4, %v8636_v16, %v426_v56  ;;  %v506_v19 = vsel %vm79_vm4, %v442_v41, 0.0 }
 0x21f   :  { %v503_v44 = vsel %vm79_vm4, %v418_v29, 0.0  ;;  %957 = vmatmul.mubr.f32.vlgmr.msra.gmra.mrb[16].mxu0 %v621_v17  ;;  %v457_v34 = vsel %vm79_vm4, %v8600_v0, %v418_v29  ;;  %v601_v35 = vadd.f32 %v8475_v58, %v521_v32  ;;  %v530_v0 = vmax.f32 %v8354_v48, %v504_v59  ;;  %v1966_v59 = vld [vmem:[%s11762_s5 + $0x8] sm:$0xff] }
 0x220   :  { %962 = vmatprep.mubr.f32.mxu0 %v626_v6  ;;  %v526_v37 = vmax.f32 %v8341_v43, %v503_v44  ;;  %v630_v25 = vmax.f32 %v598_v57, 0.0  ;;  %v525_v63 = vmax.f32 %v8335_v40, %v457_v34  ;;  %v629_v46 = vmax.f32 %v597_v62, 0.0 }
 0x221   :  { %v529_v2 = vmax.f32 %v8348_v45, %v460_v26  ;;  %v633_v36 = vmax.f32 %v601_v35, 0.0  ;;  %v610_v48 = vadd.f32 %v8507_v12, %v530_v0  ;;  %v538_v10 = vmax.f32 %v8374_v54, %v506_v19  ;;  %v1970_v35 = vld [vmem:[%s11762_s5 + $0x28] sm:$0xff]  ;;  %v1973_v26 = vld [vmem:[%s11762_s5 + $0x40] sm:$0xff]  ;;  %v1972_v0 = vld [vmem:[%s11762_s5 + $0x38] sm:$0xff] }
 0x222   :  { %v434_v11 = vpop.permute.xlu1 %433  ;;  %v606_v43 = vadd.f32 %v8491_v4, %v526_v37  ;;  %v605_v40 = vadd.f32 %v8491_v4, %v525_v63  ;;  %v466_v4 = vsel %vm79_vm4, %v8686_v61, %v442_v41  ;;  %v1968_v63 = vld [vmem:[%s11762_s5 + $0x18] sm:$0xff] }
 0x223   :  { %963 = vmatmul.mubr.f32.gmra.mrb[18].mxu0 %v625_v30  ;;  %v505_v5 = vsel %vm79_vm4, %v434_v11, 0.0  ;;  %v463_v58 = vsel %vm79_vm4, %v8669_v38, %v434_v11  ;;  %v609_v45 = vadd.f32 %v8507_v12, %v529_v2  ;;  %v642_v38 = vmax.f32 %v610_v48, 0.0  ;;  %v1969_v11 = vld [vmem:[%s11762_s5 + $0x20] sm:$0xff]  ;;  %v1976_v41 = vld [vmem:[%s11762_s5 + $0x58] sm:$0xff]  ;;  %v1978_v2 = vld [vmem:[%s11762_s5 + $0x68] sm:$0xff] }
 0x224   :  { %968 = vmatprep.mubr.f32.mxu0 %v630_v25  ;;  %v534_v16 = vmax.f32 %v8366_v52, %v505_v5  ;;  %v638_v21 = vmax.f32 %v606_v43, 0.0  ;;  %v533_v51 = vmax.f32 %v8360_v50, %v463_v58  ;;  %v637_v8 = vmax.f32 %v605_v40, 0.0  ;;  %v1965_v25 = vld [vmem:[%s11762_s5] sm:$0xff]  ;;  %v1974_v43 = vld [vmem:[%s11762_s5 + $0x48] sm:$0xff] }
 0x225   :  { %v537_v9 = vmax.f32 %v8370_v53, %v466_v4  ;;  %v641_v7 = vmax.f32 %v609_v45, 0.0  ;;  %v618_v50 = vadd.f32 %v8537_v1, %v538_v10  ;;  %v1977_v5 = vld [vmem:[%s11762_s5 + $0x60] sm:$0xff] }
 0x226   :  { %v614_v52 = vadd.f32 %v8521_v39, %v534_v16  ;;  %v613_v27 = vadd.f32 %v8521_v39, %v533_v51 }
 0x227   :  { %969 = vmatmul.mubr.f32.gmra.mrb[20].mxu0 %v629_v46  ;;  %v617_v61 = vadd.f32 %v8537_v1, %v537_v9  ;;  %v650_v20 = vmax.f32 %v618_v50, 0.0  ;;  %v1971_v46 = vld [vmem:[%s11762_s5 + $0x30] sm:$0xff]  ;;  %v8890_v9 = vld [vmem:[%s11763_s4] sm:$0xff] }
 0x228   :  { %974 = vmatprep.mubr.f32.mxu0 %v634_v49  ;;  %v646_v14 = vmax.f32 %v614_v52, 0.0  ;;  %v645_v12 = vmax.f32 %v613_v27, 0.0  ;;  %v1975_v49 = vld [vmem:[%s11762_s5 + $0x50] sm:$0xff] }
 0x229   :  { %v649_v54 = vmax.f32 %v617_v61, 0.0 }
 0x22b   :  { %975 = vmatmul.mubr.f32.gmra.mrb[22].mxu0 %v633_v36 }
 0x22c   :  { %980 = vmatprep.mubr.f32.mxu0 %v638_v21 }
 0x22f   :  { %981 = vmatmul.mubr.f32.gmra.mrb[24].mxu0 %v637_v8 }
 0x230   :  { %986 = vmatprep.mubr.f32.mxu0 %v642_v38 }
 0x233   :  { %987 = vmatmul.mubr.f32.gmra.mrb[26].mxu0 %v641_v7 }
 0x234   :  { %992 = vmatprep.mubr.f32.mxu0 %v646_v14 }
 0x237   :  { %993 = vmatmul.mubr.f32.gmra.mrb[28].mxu0 %v645_v12 }
 0x238   :  { %998 = vmatprep.mubr.f32.mxu0 %v650_v20 }
 0x23b   :  { %999 = vmatmul.mubr.f32.gmra.mrb[30].mxu0 %v649_v54  ;;  %v8903_v54 = vld [vmem:[%s11763_s4 + $0x8] sm:$0xff] }
 0x2f2   :  { %v8750_v22 = vpop.f32.mrb[16].mxu0 }
 0x2f3   :  { %1087 = vrot.lane.b32.xlu0 %v8750_v22, %s7899_s14  ;;  %v8754_v53 = vpop.f32.mrb[17].mxu0 }
 0x2f4   :  { %v7774_v39 = vpack.i.bf16 %v8754_v53, %v8750_v22 }
 0x2f6   :  { %7775 = vrot.lane.b32.xlu1 %v7774_v39, %s7900_s17  ;;  %v8759_v60 = vpop.f32.mrb[18].mxu0 }
 0x2f7   :  { %v8761_v1 = vpop.f32.mrb[19].mxu0 }
 0x2f8   :  { %v7779_v31 = vpack.i.bf16 %v8761_v1, %v8759_v60 }
 0x2fa   :  { %1089 = vrot.lane.b32.xlu1 %v8754_v53, %s7899_s14  ;;  %7780 = vrot.lane.b32.xlu0 %v7779_v31, %s7900_s17  ;;  %v8768_v15 = vpop.f32.mrb[20].mxu0 }
 0x2fb   :  { %v8770_v17 = vpop.f32.mrb[21].mxu0 }
 0x2fc   :  { %v7784_v24 = vpack.i.bf16 %v8770_v17, %v8768_v15 }
 0x2fe   :  { %1091 = vrot.lane.b32.xlu1 %v8759_v60, %s7899_s14  ;;  %1093 = vrot.lane.b32.xlu0 %v8761_v1, %s7899_s14  ;;  %v8778_v33 = vpop.f32.mrb[22].mxu0 }
 0x2ff   :  { %v8780_v23 = vpop.f32.mrb[23].mxu0 }
 0x300   :  { %v7789_v47 = vpack.i.bf16 %v8780_v23, %v8778_v33 }
 0x302   :  { %1095 = vrot.lane.b32.xlu0 %v8768_v15, %s7899_s14  ;;  %7785 = vrot.lane.b32.xlu1 %v7784_v24, %s7900_s17  ;;  %v8787_v55 = vpop.f32.mrb[24].mxu0 }
 0x303   :  { %v8789_v42 = vpop.f32.mrb[25].mxu0 }
 0x304   :  { %v7794_v29 = vpack.i.bf16 %v8789_v42, %v8787_v55 }
 0x306   :  { %1097 = vrot.lane.b32.xlu1 %v8770_v17, %s7899_s14  ;;  %7790 = vrot.lane.b32.xlu0 %v7789_v47, %s7900_s17  ;;  %v8796_v6 = vpop.f32.mrb[26].mxu0 }
 0x307   :  { %v8798_v57 = vpop.f32.mrb[27].mxu0 }
 0x308   :  { %v7799_v44 = vpack.i.bf16 %v8798_v57, %v8796_v6 }
 0x30a   :  { %1099 = vrot.lane.b32.xlu1 %v8778_v33, %s7899_s14  ;;  %1101 = vrot.lane.b32.xlu0 %v8780_v23, %s7899_s14  ;;  %v8806_v56 = vpop.f32.mrb[28].mxu0 }
 0x30b   :  { %v8808_v32 = vpop.f32.mrb[29].mxu0 }
 0x30c   :  { %v7804_v30 = vpack.i.bf16 %v8808_v32, %v8806_v56 }
 0x30e   :  { %1103 = vrot.lane.b32.xlu0 %v8787_v55, %s7899_s14  ;;  %7795 = vrot.lane.b32.xlu1 %v7794_v29, %s7900_s17  ;;  %v8815_v62 = vpop.f32.mrb[30].mxu0 }
 0x30f   :  { %v8817_v34 = vpop.f32.mrb[31].mxu0 }
 0x310   :  { %v7809_v37 = vpack.i.bf16 %v8817_v34, %v8815_v62 }
 0x312   :  { %1105 = vrot.lane.b32.xlu1 %v8789_v42, %s7899_s14  ;;  %7800 = vrot.lane.b32.xlu0 %v7799_v44, %s7900_s17 }
 0x316   :  { %1107 = vrot.lane.b32.xlu1 %v8796_v6, %s7899_s14  ;;  %1109 = vrot.lane.b32.xlu0 %v8798_v57, %s7899_s14 }
 0x31a   :  { %1111 = vrot.lane.b32.xlu0 %v8806_v56, %s7899_s14  ;;  %7805 = vrot.lane.b32.xlu1 %v7804_v30, %s7900_s17 }
 0x31e   :  { %1113 = vrot.lane.b32.xlu1 %v8808_v32, %s7899_s14  ;;  %7810 = vrot.lane.b32.xlu0 %v7809_v37, %s7900_s17 }
 0x322   :  { %1115 = vrot.lane.b32.xlu1 %v8815_v62, %s7899_s14  ;;  %1117 = vrot.lane.b32.xlu0 %v8817_v34, %s7899_s14 }
 0x326   :  { %1983 = vperm.xlu1 %7773, %v1965_v25   ;;  %1993 = vperm.xlu0 %7772, %v1967_v28  }
 0x32a   :  { %1988 = vperm.xlu1 %7773, %v1966_v59   ;;  %2003 = vperm.xlu0 %7772, %v1969_v11  }
 0x32e   :  { %1998 = vperm.xlu1 %7773, %v1968_v63   ;;  %2013 = vperm.xlu0 %7772, %v1971_v46  }
 0x332   :  { %2008 = vperm.xlu1 %7773, %v1970_v35   ;;  %2023 = vperm.xlu0 %7772, %v1973_v26  }
 0x336   :  { %2018 = vperm.xlu1 %7773, %v1972_v0   ;;  %2033 = vperm.xlu0 %7772, %v1975_v49  }
 0x33a   :  { %2028 = vperm.xlu1 %7773, %v1974_v43   ;;  %2043 = vperm.xlu0 %7772, %v1977_v5  }
 0x33e   :  { %2038 = vperm.xlu1 %7773, %v1976_v41  }
 0x342   :  { %2048 = vperm.xlu1 %7773, %v1978_v2  }
 0x365   :  { %v1088_v36 = vpop.permute.xlu0 %1087 }
 0x368   :  { %v7776_v40 = vpop.permute.xlu1 %7775 }
 0x369   :  { %v7778_v58 = vunpack.i.h.bf16 %v7776_v40  ;;  %v7777_v16 = vunpack.i.l.bf16 %v7776_v40 }
 0x36b   :  { %v1055_v21 = vsel %vm62_vm0, %v7777_v16, %v7778_v58  ;;  %v7026_v8 = vpack.c.bf16 %v8750_v22, %v7777_v16 }
 0x36c   :  { %v1090_v48 = vpop.permute.xlu1 %1089  ;;  %v7781_v19 = vpop.permute.xlu0 %7780  ;;  %v7024_v51 = vpack.c.bf16 %v8754_v53, %v1055_v21 }
 0x36d   :  { %v7783_v45 = vunpack.i.h.bf16 %v7781_v19  ;;  %v7782_v4 = vunpack.i.l.bf16 %v7781_v19  ;;  %v1119_v7 = vsel %vm79_vm4, %v1088_v36, %v1090_v48 }
 0x36e   :  { %7025 = vmatprep.subr.bf16.mxu1 %v7024_v51 }
 0x36f   :  { %7028 = vmatpush1.bf16.msk.msra.mxu1 %vm8006_vm3, %v7026_v8  ;;  %v1056_v10 = vsel %vm62_vm0, %v7782_v4, %v7783_v45  ;;  %v7031_v14 = vpack.c.bf16 %v8759_v60, %v7782_v4 }
 0x370   :  { %5892 = vmatprep.subr.msk.mxu1 %vm79_vm4, %v1090_v48  ;;  %v1092_v38 = vpop.permute.xlu1 %1091  ;;  %v1094_v52 = vpop.permute.xlu0 %1093  ;;  %v7029_v27 = vpack.c.bf16 %v8761_v1, %v1056_v10 }
 0x371   :  { %v1120_v60 = vsel %vm79_vm4, %v1092_v38, %v1094_v52 }
 0x373   :  { %1162 = vmatpush1.msra.mxu1 %v1119_v7  ;;  %v2125_v7 = vld [vmem:[%s11764_s6] sm:$0xff] }
 0x374   :  { %v7786_v50 = vpop.permute.xlu1 %7785  ;;  %5893 = vmatmul.mubr.msk.f32.vlgmr.msra.gmra.mrb[16].mxu1 %vm96_vm5, %v8890_v9  ;;  %v1096_v12 = vpop.permute.xlu0 %1095  ;;  %7030 = vmatprep.subr.bf16.mxu1 %v7029_v27 }
 0x375   :  { %v7788_v61 = vunpack.i.h.bf16 %v7786_v50  ;;  %v7787_v20 = vunpack.i.l.bf16 %v7786_v50  ;;  %7033 = vmatpush1.bf16.msk.msra.mxu1 %vm8006_vm3, %v7031_v14  ;;  %1227 = vmatprep.mubr.f32.mxu1 %v11772_v3  ;;  %v2143_v14 = vld [vmem:[%s11764_s6 + $0x90] sm:$0xff]  ;;  %v2144_v50 = vld [vmem:[%s11764_s6 + $0x98] sm:$0xff] }
 0x376   :  { %5897 = vmatprep.subr.msk.mxu1 %vm79_vm4, %v1094_v52 }
 0x377   :  { %v1057_v22 = vsel %vm62_vm0, %v7787_v20, %v7788_v61  ;;  %v7036_v47 = vpack.c.bf16 %v8768_v15, %v7787_v20  ;;  %v7068_v61 = vpack.c.bf16 %v2144_v50, %v2143_v14  ;;  %v2127_v20 = vld [vmem:[%s11764_s6 + $0x10] sm:$0xff] }
 0x378   :  { %v1098_v53 = vpop.permute.xlu1 %1097  ;;  %5894 = vmatmul.mubr.msk.f32.gmra.mrb[18].mxu1 %vm96_vm5, %v8903_v54  ;;  %v7791_v39 = vpop.permute.xlu0 %7790  ;;  %v7034_v1 = vpack.c.bf16 %v8770_v17, %v1057_v22  ;;  %v2145_v22 = vld [vmem:[%s11764_s6 + $0xa0] sm:$0xff] }
 0x379   :  { %v7793_v31 = vunpack.i.h.bf16 %v7791_v39  ;;  %v7792_v24 = vunpack.i.l.bf16 %v7791_v39  ;;  %1239 = vmatpush1.msra.mxu1 %v1120_v60  ;;  %1298 = vmatprep.mubr.f32.mxu1 %v11772_v3  ;;  %v1121_v15 = vsel %vm79_vm4, %v1096_v12, %v1098_v53 }
 0x37a   :  { %7035 = vmatprep.subr.bf16.mxu1 %v7034_v1  ;;  %v2129_v1 = vld [vmem:[%s11764_s6 + $0x20] sm:$0xff] }
 0x37b   :  { %v1058_v17 = vsel %vm62_vm0, %v7792_v24, %v7793_v31  ;;  %v7041_v11 = vpack.c.bf16 %v8778_v33, %v7792_v24  ;;  %v2130_v31 = vld [vmem:[%s11764_s6 + $0x28] sm:$0xff]  ;;  %v2147_v24 = vld [vmem:[%s11764_s6 + $0xb0] sm:$0xff] }
 0x37c   :  { %v1100_v29 = vpop.permute.xlu1 %1099  ;;  %v1102_v44 = vpop.permute.xlu0 %1101  ;;  %5898 = vmatmul.mubr.msk.f32.vlgmr.msra.gmra.mrb[20].mxu1 %vm96_vm5, %v8890_v9  ;;  %v7039_v25 = vpack.c.bf16 %v8780_v23, %v1058_v17  ;;  %v2131_v17 = vld [vmem:[%s11764_s6 + $0x30] sm:$0xff] }
 0x37d   :  { %7038 = vmatpush1.bf16.msk.msra.mxu1 %vm8006_vm3, %v7036_v47  ;;  %1304 = vmatprep.mubr.f32.mxu1 %v11772_v3  ;;  %v1122_v33 = vsel %vm79_vm4, %v1100_v29, %v1102_v44  ;;  %v2148_v47 = vld [vmem:[%s11764_s6 + $0xb8] sm:$0xff]  ;;  %v7074_v29 = vpack.c.bf16 %v2130_v31, %v2129_v1 }
 0x37e   :  { %5902 = vmatprep.subr.msk.mxu1 %vm79_vm4, %v1098_v53  ;;  %v2146_v53 = vld [vmem:[%s11764_s6 + $0xa8] sm:$0xff] }
 0x37f   :  { %v7072_v60 = vpack.c.bf16 %v2146_v53, %v2145_v22 }
 0x380   :  { %v7796_v30 = vpop.permute.xlu1 %7795  ;;  %v1104_v37 = vpop.permute.xlu0 %1103  ;;  %5899 = vmatmul.mubr.msk.f32.gmra.mrb[22].mxu1 %vm96_vm5, %v8903_v54 }
 0x381   :  { %v7798_v28 = vunpack.i.h.bf16 %v7796_v30  ;;  %v7797_v59 = vunpack.i.l.bf16 %v7796_v30  ;;  %1316 = vmatpush1.msra.mxu1 %v1121_v15  ;;  %1375 = vmatprep.mubr.f32.mxu1 %v11772_v3  ;;  %v2132_v30 = vld [vmem:[%s11764_s6 + $0x38] sm:$0xff]  ;;  %v2150_v15 = vld [vmem:[%s11764_s6 + $0xc8] sm:$0xff] }
 0x382   :  { %7040 = vmatprep.subr.bf16.mxu1 %v7039_v25  ;;  %v7078_v25 = vpack.c.bf16 %v2132_v30, %v2131_v17 }
 0x383   :  { %v1059_v23 = vsel %vm62_vm0, %v7797_v59, %v7798_v28  ;;  %v7046_v5 = vpack.c.bf16 %v8787_v55, %v7797_v59  ;;  %v2133_v59 = vld [vmem:[%s11764_s6 + $0x40] sm:$0xff] }
 0x384   :  { %v1106_v63 = vpop.permute.xlu1 %1105  ;;  %v7801_v46 = vpop.permute.xlu0 %7800  ;;  %5903 = vmatmul.mubr.msk.f32.vlgmr.msra.gmra.mrb[24].mxu1 %vm96_vm5, %v8890_v9  ;;  %v7044_v26 = vpack.c.bf16 %v8789_v42, %v1059_v23  ;;  %v2152_v23 = vld [vmem:[%s11764_s6 + $0xd8] sm:$0xff] }
 0x385   :  { %7043 = vmatpush1.bf16.msk.msra.mxu1 %vm8006_vm3, %v7041_v11  ;;  %1381 = vmatprep.mubr.f32.mxu1 %v11772_v3  ;;  %v7803_v0 = vunpack.i.h.bf16 %v7801_v46  ;;  %v7802_v49 = vunpack.i.l.bf16 %v7801_v46  ;;  %v1123_v36 = vsel %vm79_vm4, %v1104_v37, %v1106_v63  ;;  %v2149_v37 = vld [vmem:[%s11764_s6 + $0xc0] sm:$0xff]  ;;  %v2134_v11 = vld [vmem:[%s11764_s6 + $0x48] sm:$0xff]  ;;  %v2151_v46 = vld [vmem:[%s11764_s6 + $0xd0] sm:$0xff] }
 0x386   :  { %5907 = vmatprep.subr.msk.mxu1 %vm79_vm4, %v1102_v44  ;;  %v7076_v44 = vpack.c.bf16 %v2148_v47, %v2147_v24  ;;  %v7080_v28 = vpack.c.bf16 %v2150_v15, %v2149_v37  ;;  %v1980_v24 = vld [vmem:[%s11762_s5 + $0x78] sm:$0xff] }
 0x387   :  { %v1060_v41 = vsel %vm62_vm0, %v7802_v49, %v7803_v0  ;;  %v7051_v16 = vpack.c.bf16 %v8796_v6, %v7802_v49  ;;  %v2153_v49 = vld [vmem:[%s11764_s6 + $0xe0] sm:$0xff] }
 0x388   :  { %v1108_v35 = vpop.permute.xlu1 %1107  ;;  %5904 = vmatmul.mubr.msk.f32.gmra.mrb[26].mxu1 %vm96_vm5, %v8903_v54  ;;  %v1110_v43 = vpop.permute.xlu0 %1109  ;;  %v7049_v55 = vpack.c.bf16 %v8798_v57, %v1060_v41  ;;  %v2137_v41 = vld [vmem:[%s11764_s6 + $0x60] sm:$0xff] }
 0x389   :  { %1393 = vmatpush1.msra.mxu1 %v1122_v33  ;;  %1452 = vmatprep.mubr.f32.mxu1 %v11772_v3  ;;  %v1124_v57 = vsel %vm79_vm4, %v1108_v35, %v1110_v43  ;;  %v2135_v35 = vld [vmem:[%s11764_s6 + $0x50] sm:$0xff]  ;;  %v7084_v33 = vpack.c.bf16 %v2152_v23, %v2151_v46 }
 0x38a   :  { %7045 = vmatprep.subr.bf16.mxu1 %v7044_v26  ;;  %v2136_v26 = vld [vmem:[%s11764_s6 + $0x58] sm:$0xff] }
 0x38b   :  { %v7086_v0 = vpack.c.bf16 %v2136_v26, %v2135_v35 }
 0x38c   :  { %5908 = vmatmul.mubr.msk.f32.vlgmr.msra.gmra.mrb[28].mxu1 %vm96_vm5, %v8890_v9  ;;  %v7806_v42 = vpop.permute.xlu1 %7805  ;;  %v1112_v2 = vpop.permute.xlu0 %1111 }
 0x38d   :  { %7048 = vmatpush1.bf16.msk.msra.mxu1 %vm8006_vm3, %v7046_v5  ;;  %1458 = vmatprep.mubr.f32.mxu1 %v11772_v3  ;;  %v7808_v40 = vunpack.i.h.bf16 %v7806_v42  ;;  %v7807_v58 = vunpack.i.l.bf16 %v7806_v42  ;;  %v2138_v42 = vld [vmem:[%s11764_s6 + $0x68] sm:$0xff] }
 0x38e   :  { %5912 = vmatprep.subr.msk.mxu1 %vm79_vm4, %v1106_v63  ;;  %v7082_v63 = vpack.c.bf16 %v2134_v11, %v2133_v59 }
 0x38f   :  { %v1061_v21 = vsel %vm62_vm0, %v7807_v58, %v7808_v40  ;;  %v7056_v8 = vpack.c.bf16 %v8806_v56, %v7807_v58  ;;  %v2139_v58 = vld [vmem:[%s11764_s6 + $0x70] sm:$0xff] }
 0x390   :  { %5909 = vmatmul.mubr.msk.f32.gmra.mrb[30].mxu1 %vm96_vm5, %v8903_v54  ;;  %v7811_v48 = vpop.permute.xlu0 %7810  ;;  %v7054_v6 = vpack.c.bf16 %v8808_v32, %v1061_v21  ;;  %v1114_v45 = vpop.permute.xlu1 %1113 }
 0x391   :  { %1470 = vmatpush1.msra.mxu1 %v1123_v36  ;;  %1529 = vmatprep.mubr.f32.mxu1 %v11772_v3  ;;  %v7813_v19 = vunpack.i.h.bf16 %v7811_v48  ;;  %v7812_v51 = vunpack.i.l.bf16 %v7811_v48  ;;  %v1125_v32 = vsel %vm79_vm4, %v1112_v2, %v1114_v45  ;;  %v7090_v2 = vpack.c.bf16 %v2138_v42, %v2137_v41  ;;  %v2155_v36 = vld [vmem:[%s11764_s6 + $0xf0] sm:$0xff] }
 0x392   :  { %7050 = vmatprep.subr.bf16.mxu1 %v7049_v55  ;;  %v2156_v55 = vld [vmem:[%s11764_s6 + $0xf8] sm:$0xff] }
 0x393   :  { %v1062_v4 = vsel %vm62_vm0, %v7812_v51, %v7813_v19  ;;  %v7061_v10 = vpack.c.bf16 %v8815_v62, %v7812_v51  ;;  %v2142_v62 = vld [vmem:[%s11764_s6 + $0x88] sm:$0xff]  ;;  %v7092_v40 = vpack.c.bf16 %v2156_v55, %v2155_v36 }
 0x394   :  { %5913 = vmatmul.mubr.msk.f32.vlgmr.msra.gmra.mrb[32].mxu1 %vm96_vm5, %v8890_v9  ;;  %v7059_v56 = vpack.c.bf16 %v8817_v34, %v1062_v4  ;;  %v1116_v38 = vpop.permute.xlu1 %1115  ;;  %v1118_v52 = vpop.permute.xlu0 %1117  ;;  %v7064_v27 = vpack.c.bf16 %v2142_v62, %v2141_v18 }
 0x395   :  { %7053 = vmatpush1.bf16.msk.msra.mxu1 %vm8006_vm3, %v7051_v16  ;;  %1535 = vmatprep.mubr.f32.mxu1 %v11772_v3  ;;  %v1126_v34 = vsel %vm79_vm4, %v1116_v38, %v1118_v52  ;;  %v2140_v16 = vld [vmem:[%s11764_s6 + $0x78] sm:$0xff] }
 0x396   :  { %5917 = vmatprep.subr.msk.mxu1 %vm79_vm4, %v1110_v43  ;;  %v2154_v43 = vld [vmem:[%s11764_s6 + $0xe8] sm:$0xff]  ;;  %v7094_v21 = vpack.c.bf16 %v2140_v16, %v2139_v58 }
 0x397   :  { %v7088_v5 = vpack.c.bf16 %v2154_v43, %v2153_v49 }
 0x398   :  { %5914 = vmatmul.mubr.msk.f32.gmra.mrb[34].mxu1 %vm96_vm5, %v8903_v54 }
 0x399   :  { %1547 = vmatpush1.msra.mxu1 %v1124_v57  ;;  %1606 = vmatprep.mubr.f32.mxu1 %v11772_v3 }
 0x39a   :  { %7055 = vmatprep.subr.bf16.mxu1 %v7054_v6 }
 0x39c   :  { %5918 = vmatmul.mubr.msk.f32.vlgmr.msra.gmra.mrb[36].mxu1 %vm96_vm5, %v8890_v9 }
 0x39d   :  { %7058 = vmatpush1.bf16.msk.msra.mxu1 %vm8006_vm3, %v7056_v8  ;;  %1612 = vmatprep.mubr.f32.mxu1 %v11772_v3 }
 0x39e   :  { %5922 = vmatprep.subr.msk.mxu1 %vm79_vm4, %v1114_v45 }
 0x3a0   :  { %5919 = vmatmul.mubr.msk.f32.gmra.mrb[38].mxu1 %vm96_vm5, %v8903_v54 }
 0x3a1   :  { %1624 = vmatpush1.msra.mxu1 %v1125_v32  ;;  %1683 = vmatprep.mubr.f32.mxu1 %v11772_v3 }
 0x3a2   :  { %7060 = vmatprep.subr.bf16.mxu1 %v7059_v56 }
 0x3a4   :  { %5923 = vmatmul.mubr.msk.f32.vlgmr.msra.gmra.mrb[40].mxu1 %vm96_vm5, %v8890_v9 }
 0x3a5   :  { %7063 = vmatpush1.bf16.msk.msra.mxu1 %vm8006_vm3, %v7061_v10  ;;  %1689 = vmatprep.mubr.f32.mxu1 %v11772_v3  ;;  %v1994_v30 = vpop.permute.xlu0 %1993 }
 0x3a6   :  { %5927 = vmatprep.subr.msk.mxu1 %vm79_vm4, %v1118_v52 }
 0x3a8   :  { %5924 = vmatmul.mubr.msk.f32.gmra.mrb[42].mxu1 %vm96_vm5, %v8903_v54 }
 0x3a9   :  { %1701 = vmatpush1.msra.mxu1 %v1126_v34  ;;  %1760 = vmatprep.mubr.f32.mxu1 %v11772_v3  ;;  %v9223_v15 = vpop.permute.xlu0 %2003 }
 0x3aa   :  { %7065 = vmatprep.subr.bf16.mxu1 %v7064_v27 }
 0x3ac   :  { %5928 = vmatmul.mubr.msk.f32.vlgmr.msra.gmra.mrb[44].mxu1 %vm96_vm5, %v8890_v9  ;;  %v2126_v9 = vld [vmem:[%s11764_s6 + $0x8] sm:$0xff] }
 0x3ad   :  { %1766 = vmatprep.mubr.f32.mxu1 %v11772_v3  ;;  %v7066_v12 = vpack.c.bf16 %v2126_v9, %v2125_v7 }
 0x3af   :  { %7067 = vmatpush3.bf16.msra.mxu1 %v7066_v12 }
 0x3b0   :  { %5929 = vmatmul.mubr.msk.f32.gmra.mrb[46].mxu1 %vm96_vm5, %v8903_v54  ;;  %v2128_v54 = vld [vmem:[%s11764_s6 + $0x18] sm:$0xff]  ;;  %7069 = vmatprep.subr.bf16.mxu1 %v7068_v61 }
 0x3b1   :  { %v7070_v39 = vpack.c.bf16 %v2128_v54, %v2127_v20 }
 0x3b3   :  { %7071 = vmatpush3.bf16.msra.mxu1 %v7070_v39 }
 0x3b4   :  { %7073 = vmatprep.subr.bf16.mxu1 %v7072_v60  ;;  %v1979_v60 = vld [vmem:[%s11762_s5 + $0x70] sm:$0xff] }
 0x3b7   :  { %7075 = vmatpush3.bf16.msra.mxu1 %v7074_v29 }
 0x3b8   :  { %7077 = vmatprep.subr.bf16.mxu1 %v7076_v44  ;;  %v1984_v44 = vpop.permute.xlu1 %1983 }
 0x3bb   :  { %7079 = vmatpush3.bf16.msra.mxu1 %v7078_v25 }
 0x3bc   :  { %7081 = vmatprep.subr.bf16.mxu1 %v7080_v28  ;;  %v1989_v17 = vpop.permute.xlu1 %1988  ;;  %v9227_v28 = vpop.permute.xlu0 %2013 }
 0x3bf   :  { %7083 = vmatpush3.bf16.msra.mxu1 %v7082_v63 }
 0x3c0   :  { %7085 = vmatprep.subr.bf16.mxu1 %v7084_v33  ;;  %v1999_v37 = vpop.permute.xlu1 %1998  ;;  %v9231_v11 = vpop.permute.xlu0 %2023 }
 0x3c3   :  { %7087 = vmatpush3.bf16.msra.mxu1 %v7086_v0 }
 0x3c4   :  { %7089 = vmatprep.subr.bf16.mxu1 %v7088_v5  ;;  %v9225_v25 = vpop.permute.xlu1 %2008  ;;  %v9235_v46 = vpop.permute.xlu0 %2033 }
 0x3c7   :  { %7091 = vmatpush3.bf16.msra.mxu1 %v7090_v2 }
 0x3c8   :  { %7093 = vmatprep.subr.bf16.mxu1 %v7092_v40  ;;  %v9229_v59 = vpop.permute.xlu1 %2018  ;;  %v9239_v35 = vpop.permute.xlu0 %2043 }
 0x3cb   :  { %7095 = vmatpush3.bf16.msra.mxu1 %v7094_v21 }
 0x3cc   :  { %v9233_v63 = vpop.permute.xlu1 %2028 }
 0x3d0   :  { %v9237_v23 = vpop.permute.xlu1 %2038 }
 0x3d4   :  { %v9241_v33 = vpop.permute.xlu1 %2048 }
 0x447   :  { %v9089_v48 = vpop.f32.mrb[16].mxu1 }
 0x448   :  { %1805 = vrot.lane.b32.xlu0 %v9089_v48, %s7899_s14  ;;  %v9093_v57 = vpop.f32.mrb[17].mxu1 }
 0x44b   :  { %v9095_v6 = vpop.f32.mrb[18].mxu1 }
 0x44c   :  { %1807 = vrot.lane.b32.xlu0 %v9093_v57, %s7899_s14  ;;  %1809 = vrot.lane.b32.xlu1 %v9095_v6, %s7899_s14  ;;  %v9101_v19 = vpop.f32.mrb[19].mxu1 }
 0x44f   :  { %v9103_v51 = vpop.f32.mrb[20].mxu1 }
 0x450   :  { %1811 = vrot.lane.b32.xlu1 %v9101_v19, %s7899_s14  ;;  %1813 = vrot.lane.b32.xlu0 %v9103_v51, %s7899_s14  ;;  %v9109_v8 = vpop.f32.mrb[21].mxu1 }
 0x453   :  { %v9111_v45 = vpop.f32.mrb[22].mxu1 }
 0x454   :  { %1815 = vrot.lane.b32.xlu0 %v9109_v8, %s7899_s14  ;;  %1817 = vrot.lane.b32.xlu1 %v9111_v45, %s7899_s14  ;;  %v9117_v4 = vpop.f32.mrb[23].mxu1 }
 0x457   :  { %v9119_v32 = vpop.f32.mrb[24].mxu1 }
 0x458   :  { %1819 = vrot.lane.b32.xlu1 %v9117_v4, %s7899_s14  ;;  %1821 = vrot.lane.b32.xlu0 %v9119_v32, %s7899_s14  ;;  %v9125_v56 = vpop.f32.mrb[25].mxu1 }
 0x45b   :  { %v9127_v10 = vpop.f32.mrb[26].mxu1 }
 0x45c   :  { %1823 = vrot.lane.b32.xlu0 %v9125_v56, %s7899_s14  ;;  %1825 = vrot.lane.b32.xlu1 %v9127_v10, %s7899_s14  ;;  %v9133_v38 = vpop.f32.mrb[27].mxu1 }
 0x45f   :  { %v9135_v52 = vpop.f32.mrb[28].mxu1 }
 0x460   :  { %1827 = vrot.lane.b32.xlu1 %v9133_v38, %s7899_s14  ;;  %1829 = vrot.lane.b32.xlu0 %v9135_v52, %s7899_s14  ;;  %v9141_v34 = vpop.f32.mrb[29].mxu1 }
 0x463   :  { %v9143_v18 = vpop.f32.mrb[30].mxu1 }
 0x464   :  { %1831 = vrot.lane.b32.xlu0 %v9141_v34, %s7899_s14  ;;  %1833 = vrot.lane.b32.xlu1 %v9143_v18, %s7899_s14  ;;  %v9149_v62 = vpop.f32.mrb[31].mxu1 }
 0x467   :  { %v9151_v7 = vpop.f32.mrb[32].mxu1 }
 0x468   :  { %1835 = vrot.lane.b32.xlu1 %v9149_v62, %s7899_s14  ;;  %1837 = vrot.lane.b32.xlu0 %v9151_v7, %s7899_s14  ;;  %v9157_v27 = vpop.f32.mrb[33].mxu1 }
 0x46b   :  { %v9159_v9 = vpop.f32.mrb[34].mxu1 }
 0x46c   :  { %1839 = vrot.lane.b32.xlu0 %v9157_v27, %s7899_s14  ;;  %1841 = vrot.lane.b32.xlu1 %v9159_v9, %s7899_s14  ;;  %v9165_v14 = vpop.f32.mrb[35].mxu1 }
 0x46f   :  { %v9167_v50 = vpop.f32.mrb[36].mxu1 }
 0x470   :  { %1843 = vrot.lane.b32.xlu1 %v9165_v14, %s7899_s14  ;;  %1845 = vrot.lane.b32.xlu0 %v9167_v50, %s7899_s14  ;;  %v9173_v12 = vpop.f32.mrb[37].mxu1 }
 0x473   :  { %v9175_v61 = vpop.f32.mrb[38].mxu1 }
 0x474   :  { %1847 = vrot.lane.b32.xlu0 %v9173_v12, %s7899_s14  ;;  %1849 = vrot.lane.b32.xlu1 %v9175_v61, %s7899_s14  ;;  %v9181_v20 = vpop.f32.mrb[39].mxu1 }
 0x477   :  { %v9183_v54 = vpop.f32.mrb[40].mxu1 }
 0x478   :  { %1851 = vrot.lane.b32.xlu1 %v9181_v20, %s7899_s14  ;;  %1853 = vrot.lane.b32.xlu0 %v9183_v54, %s7899_s14  ;;  %v9189_v22 = vpop.f32.mrb[41].mxu1 }
 0x47b   :  { %v9191_v53 = vpop.f32.mrb[42].mxu1 }
 0x47c   :  { %1855 = vrot.lane.b32.xlu0 %v9189_v22, %s7899_s14  ;;  %1857 = vrot.lane.b32.xlu1 %v9191_v53, %s7899_s14  ;;  %v9197_v39 = vpop.f32.mrb[43].mxu1 }
 0x47f   :  { %v9202_v1 = vpop.f32.mrb[44].mxu1 }
 0x480   :  { %2053 = vperm.xlu0 %7772, %v1979_v60   ;;  %1859 = vrot.lane.b32.xlu1 %v9197_v39, %s7899_s14  ;;  %v9206_v31 = vpop.f32.mrb[45].mxu1 }
 0x483   :  { %v9211_v47 = vpop.f32.mrb[46].mxu1 }
 0x484   :  { %2058 = vperm.xlu1 %7773, %v1980_v24   ;;  %1863 = vrot.lane.b32.xlu0 %v9206_v31, %s7899_s14  ;;  %v9215_v29 = vpop.f32.mrb[47].mxu1 }
 0x488   :  { %1861 = vrot.lane.b32.xlu0 %v9202_v1, %s7899_s14  ;;  %1867 = vrot.lane.b32.xlu1 %v9215_v29, %s7899_s14 }
 0x48c   :  { %1865 = vrot.lane.b32.xlu0 %v9211_v47, %s7899_s14 }
 0x4ba   :  { %v1806_v26 = vpop.permute.xlu0 %1805 }
 0x4be   :  { %v1810_v0 = vpop.permute.xlu1 %1809  ;;  %v1808_v49 = vpop.permute.xlu0 %1807 }
 0x4bf   :  { %v1869_v43 = vsel %vm79_vm4, %v1806_v26, %v1808_v49  ;;  %v1917_v5 = vsel %vm79_vm4, %v1808_v49, 0.0 }
 0x4c0   :  { %v1933_v41 = vmax.f32 %v9089_v48, %v1869_v43  ;;  %v1934_v42 = vmax.f32 %v9093_v57, %v1917_v5 }
 0x4c2   :  { %v2061_v2 = vadd.f32 %v1984_v44, %v1933_v41  ;;  %v1812_v36 = vpop.permute.xlu1 %1811  ;;  %v1814_v55 = vpop.permute.xlu0 %1813  ;;  %v2062_v40 = vadd.f32 %v1984_v44, %v1934_v42 }
 0x4c3   :  { %v1870_v58 = vsel %vm79_vm4, %v1810_v0, %v1812_v36  ;;  %v1918_v16 = vsel %vm79_vm4, %v1812_v36, 0.0 }
 0x4c4   :  { %v2093_v21 = vmax.f32 %v2061_v2, 0.0  ;;  %v1935_v60 = vmax.f32 %v9095_v6, %v1870_v58  ;;  %v1936_v24 = vmax.f32 %v9101_v19, %v1918_v16  ;;  %v2094_v26 = vmax.f32 %v2062_v40, 0.0 }
 0x4c6   :  { %2221 = vmatprep.mubr.f32.mxu1 %v2094_v26  ;;  %v1816_v49 = vpop.permute.xlu0 %1815  ;;  %v1818_v3 = vpop.permute.xlu1 %1817  ;;  %v2064_v48 = vadd.f32 %v1989_v17, %v1936_v24  ;;  %v2063_v43 = vadd.f32 %v1989_v17, %v1935_v60 }
 0x4c7   :  { %v1871_v57 = vsel %vm79_vm4, %v1814_v55, %v1816_v49  ;;  %v1919_v5 = vsel %vm79_vm4, %v1816_v49, 0.0  ;;  %2222 = vmatmul.mubr.f32.vlgmr.msra.gmra.mrb[48].mxu1 %v2093_v21 }
 0x4c8   :  { %v1937_v44 = vmax.f32 %v9103_v51, %v1871_v57  ;;  %v1938_v0 = vmax.f32 %v9109_v8, %v1919_v5  ;;  %v2096_v41 = vmax.f32 %v2064_v48, 0.0  ;;  %v2095_v42 = vmax.f32 %v2063_v43, 0.0 }
 0x4ca   :  { %2226 = vmatprep.mubr.f32.mxu1 %v2096_v41  ;;  %v1820_v6 = vpop.permute.xlu1 %1819  ;;  %v1822_v19 = vpop.permute.xlu0 %1821  ;;  %v2066_v2 = vadd.f32 %v1994_v30, %v1938_v0  ;;  %v2065_v36 = vadd.f32 %v1994_v30, %v1937_v44 }
 0x4cb   :  { %v1872_v40 = vsel %vm79_vm4, %v1818_v3, %v1820_v6  ;;  %v1920_v17 = vsel %vm79_vm4, %v1820_v6, 0.0  ;;  %2227 = vmatmul.mubr.f32.gmra.mrb[50].mxu1 %v2095_v42 }
 0x4cc   :  { %v1939_v55 = vmax.f32 %v9111_v45, %v1872_v40  ;;  %v1940_v58 = vmax.f32 %v9117_v4, %v1920_v17  ;;  %v2098_v16 = vmax.f32 %v2066_v2, 0.0  ;;  %v2097_v51 = vmax.f32 %v2065_v36, 0.0 }
 0x4ce   :  { %2231 = vmatprep.mubr.f32.mxu1 %v2098_v16  ;;  %v1824_v8 = vpop.permute.xlu0 %1823  ;;  %v1826_v21 = vpop.permute.xlu1 %1825  ;;  %v2068_v60 = vadd.f32 %v1999_v37, %v1940_v58  ;;  %v2067_v24 = vadd.f32 %v1999_v37, %v1939_v55 }
 0x4cf   :  { %v1873_v26 = vsel %vm79_vm4, %v1822_v19, %v1824_v8  ;;  %v1921_v30 = vsel %vm79_vm4, %v1824_v8, 0.0  ;;  %2232 = vmatmul.mubr.f32.gmra.mrb[52].mxu1 %v2097_v51 }
 0x4d0   :  { %v1941_v3 = vmax.f32 %v9119_v32, %v1873_v26  ;;  %v1942_v49 = vmax.f32 %v9125_v56, %v1921_v30  ;;  %v2100_v48 = vmax.f32 %v2068_v60, 0.0  ;;  %v2099_v45 = vmax.f32 %v2067_v24, 0.0 }
 0x4d2   :  { %2236 = vmatprep.mubr.f32.mxu1 %v2100_v48  ;;  %v1828_v4 = vpop.permute.xlu1 %1827  ;;  %v1830_v43 = vpop.permute.xlu0 %1829  ;;  %v2070_v57 = vadd.f32 %v9223_v15, %v1942_v49  ;;  %v2069_v5 = vadd.f32 %v9223_v15, %v1941_v3 }
 0x4d3   :  { %v1874_v37 = vsel %vm79_vm4, %v1826_v21, %v1828_v4  ;;  %v1922_v44 = vsel %vm79_vm4, %v1828_v4, 0.0  ;;  %2237 = vmatmul.mubr.f32.gmra.mrb[54].mxu1 %v2099_v45 }
 0x4d4   :  { %v1943_v0 = vmax.f32 %v9127_v10, %v1874_v37  ;;  %v1944_v32 = vmax.f32 %v9133_v38, %v1922_v44  ;;  %v2102_v41 = vmax.f32 %v2070_v57, 0.0  ;;  %v2101_v56 = vmax.f32 %v2069_v5, 0.0 }
 0x4d6   :  { %2241 = vmatprep.mubr.f32.mxu1 %v2102_v41  ;;  %v1832_v42 = vpop.permute.xlu0 %1831  ;;  %v1834_v6 = vpop.permute.xlu1 %1833  ;;  %v2072_v19 = vadd.f32 %v9225_v25, %v1944_v32  ;;  %v2071_v2 = vadd.f32 %v9225_v25, %v1943_v0 }
 0x4d7   :  { %v1875_v15 = vsel %vm79_vm4, %v1830_v43, %v1832_v42  ;;  %v1923_v36 = vsel %vm79_vm4, %v1832_v42, 0.0  ;;  %2242 = vmatmul.mubr.f32.gmra.mrb[56].mxu1 %v2101_v56 }
 0x4d8   :  { %v1945_v40 = vmax.f32 %v9135_v52, %v1875_v15  ;;  %v1946_v10 = vmax.f32 %v9141_v34, %v1923_v36  ;;  %v2104_v17 = vmax.f32 %v2072_v19, 0.0  ;;  %v2103_v38 = vmax.f32 %v2071_v2, 0.0 }
 0x4da   :  { %2246 = vmatprep.mubr.f32.mxu1 %v2104_v17  ;;  %v1836_v55 = vpop.permute.xlu1 %1835  ;;  %v1838_v58 = vpop.permute.xlu0 %1837  ;;  %v2074_v16 = vadd.f32 %v9227_v28, %v1946_v10  ;;  %v2073_v51 = vadd.f32 %v9227_v28, %v1945_v40 }
 0x4db   :  { %v1876_v25 = vsel %vm79_vm4, %v1834_v6, %v1836_v55  ;;  %v1924_v8 = vsel %vm79_vm4, %v1836_v55, 0.0  ;;  %2247 = vmatmul.mubr.f32.gmra.mrb[58].mxu1 %v2103_v38 }
 0x4dc   :  { %v1947_v21 = vmax.f32 %v9143_v18, %v1876_v25  ;;  %v1948_v52 = vmax.f32 %v9149_v62, %v1924_v8  ;;  %v2106_v60 = vmax.f32 %v2074_v16, 0.0  ;;  %v2105_v34 = vmax.f32 %v2073_v51, 0.0 }
 0x4de   :  { %2251 = vmatprep.mubr.f32.mxu1 %v2106_v60  ;;  %v1840_v24 = vpop.permute.xlu0 %1839  ;;  %v1842_v26 = vpop.permute.xlu1 %1841  ;;  %v2076_v30 = vadd.f32 %v9229_v59, %v1948_v52  ;;  %v2075_v3 = vadd.f32 %v9229_v59, %v1947_v21 }
 0x4df   :  { %v1877_v28 = vsel %vm79_vm4, %v1838_v58, %v1840_v24  ;;  %v1925_v49 = vsel %vm79_vm4, %v1840_v24, 0.0  ;;  %2252 = vmatmul.mubr.f32.gmra.mrb[60].mxu1 %v2105_v34 }
 0x4e0   :  { %v1949_v48 = vmax.f32 %v9151_v7, %v1877_v28  ;;  %v1950_v18 = vmax.f32 %v9157_v27, %v1925_v49  ;;  %v2108_v45 = vmax.f32 %v2076_v30, 0.0  ;;  %v2107_v62 = vmax.f32 %v2075_v3, 0.0 }
 0x4e2   :  { %2256 = vmatprep.mubr.f32.mxu1 %v2108_v45  ;;  %v1844_v4 = vpop.permute.xlu1 %1843  ;;  %v1846_v43 = vpop.permute.xlu0 %1845  ;;  %v2078_v57 = vadd.f32 %v9231_v11, %v1950_v18  ;;  %v2077_v5 = vadd.f32 %v9231_v11, %v1949_v48 }
 0x4e3   :  { %v1878_v59 = vsel %vm79_vm4, %v1842_v26, %v1844_v4  ;;  %v1926_v37 = vsel %vm79_vm4, %v1844_v4, 0.0  ;;  %2257 = vmatmul.mubr.f32.gmra.mrb[62].mxu1 %v2107_v62 }
 0x4e4   :  { %v1951_v44 = vmax.f32 %v9159_v9, %v1878_v59  ;;  %v1952_v7 = vmax.f32 %v9165_v14, %v1926_v37  ;;  %v2110_v0 = vmax.f32 %v2078_v57, 0.0  ;;  %v2109_v27 = vmax.f32 %v2077_v5, 0.0 }
 0x4e6   :  { %2261 = vmatprep.mubr.f32.mxu1 %v2110_v0  ;;  %v1848_v32 = vpop.permute.xlu0 %1847  ;;  %v1850_v41 = vpop.permute.xlu1 %1849  ;;  %v2080_v56 = vadd.f32 %v9233_v63, %v1952_v7  ;;  %v2079_v42 = vadd.f32 %v9233_v63, %v1951_v44 }
 0x4e7   :  { %v1879_v11 = vsel %vm79_vm4, %v1846_v43, %v1848_v32  ;;  %v1927_v6 = vsel %vm79_vm4, %v1848_v32, 0.0  ;;  %2262 = vmatmul.mubr.f32.gmra.mrb[64].mxu1 %v2109_v27 }
 0x4e8   :  { %v1953_v19 = vmax.f32 %v9167_v50, %v1879_v11  ;;  %v1954_v9 = vmax.f32 %v9173_v12, %v1927_v6  ;;  %v2112_v2 = vmax.f32 %v2080_v56, 0.0  ;;  %v2111_v14 = vmax.f32 %v2079_v42, 0.0 }
 0x4ea   :  { %2266 = vmatprep.mubr.f32.mxu1 %v2112_v2  ;;  %v1852_v15 = vpop.permute.xlu1 %1851  ;;  %v1854_v36 = vpop.permute.xlu0 %1853  ;;  %v2082_v40 = vadd.f32 %v9235_v46, %v1954_v9  ;;  %v2081_v10 = vadd.f32 %v9235_v46, %v1953_v19 }
 0x4eb   :  { %v1880_v63 = vsel %vm79_vm4, %v1850_v41, %v1852_v15  ;;  %v1928_v17 = vsel %vm79_vm4, %v1852_v15, 0.0  ;;  %2267 = vmatmul.mubr.f32.gmra.mrb[66].mxu1 %v2111_v14 }
 0x4ec   :  { %v1955_v38 = vmax.f32 %v9175_v61, %v1880_v63  ;;  %v1956_v50 = vmax.f32 %v9181_v20, %v1928_v17  ;;  %v2114_v55 = vmax.f32 %v2082_v40, 0.0  ;;  %v2113_v12 = vmax.f32 %v2081_v10, 0.0  ;;  %v9334_v63 = vld [vmem:[%s11765_s7] sm:$0xff] }
 0x4ed   :  { %6748 = vmatprep.mubr.msk.f32.mxu0 %vm2450_vm6, %v9334_v63 }
 0x4ee   :  { %2271 = vmatprep.mubr.f32.mxu1 %v2114_v55  ;;  %v1856_v58 = vpop.permute.xlu0 %1855  ;;  %v1858_v16 = vpop.permute.xlu1 %1857  ;;  %v2084_v51 = vadd.f32 %v9237_v23, %v1956_v50  ;;  %v2083_v25 = vadd.f32 %v9237_v23, %v1955_v38 }
 0x4ef   :  { %v1881_v46 = vsel %vm79_vm4, %v1854_v36, %v1856_v58  ;;  %v1929_v8 = vsel %vm79_vm4, %v1856_v58, 0.0  ;;  %2272 = vmatmul.mubr.f32.gmra.mrb[68].mxu1 %v2113_v12 }
 0x4f0   :  { %v1957_v21 = vmax.f32 %v9183_v54, %v1881_v46  ;;  %v1958_v61 = vmax.f32 %v9189_v22, %v1929_v8  ;;  %v2116_v52 = vmax.f32 %v2084_v51, 0.0  ;;  %v2115_v20 = vmax.f32 %v2083_v25, 0.0 }
 0x4f2   :  { %2276 = vmatprep.mubr.f32.mxu1 %v2116_v52  ;;  %v1860_v60 = vpop.permute.xlu1 %1859  ;;  %v2086_v34 = vadd.f32 %v9239_v35, %v1958_v61  ;;  %v2085_v24 = vadd.f32 %v9239_v35, %v1957_v21 }
 0x4f3   :  { %v1882_v26 = vsel %vm79_vm4, %v1858_v16, %v1860_v60  ;;  %v1930_v23 = vsel %vm79_vm4, %v1860_v60, 0.0  ;;  %2277 = vmatmul.mubr.f32.gmra.mrb[70].mxu1 %v2115_v20 }
 0x4f4   :  { %v1959_v30 = vmax.f32 %v9191_v53, %v1882_v26  ;;  %v1960_v3 = vmax.f32 %v9197_v39, %v1930_v23  ;;  %v2118_v54 = vmax.f32 %v2086_v34, 0.0  ;;  %v2117_v28 = vmax.f32 %v2085_v24, 0.0 }
 0x4f6   :  { %2281 = vmatprep.mubr.f32.mxu1 %v2118_v54  ;;  %v2088_v22 = vadd.f32 %v9241_v33, %v1960_v3  ;;  %v2087_v49 = vadd.f32 %v9241_v33, %v1959_v30 }
 0x4f7   :  { %2282 = vmatmul.mubr.f32.gmra.mrb[72].mxu1 %v2117_v28 }
 0x4f8   :  { %v2120_v48 = vmax.f32 %v2088_v22, 0.0  ;;  %v2119_v18 = vmax.f32 %v2087_v49, 0.0 }
 0x4fa   :  { %2286 = vmatprep.mubr.f32.mxu1 %v2120_v48 }
 0x4fb   :  { %2287 = vmatmul.mubr.f32.gmra.mrb[74].mxu1 %v2119_v18 }
 0x4ff   :  { %v2054_v35 = vpop.permute.xlu0 %2053 }
 0x503   :  { %v2059_v45 = vpop.permute.xlu1 %2058  ;;  %v1864_v62 = vpop.permute.xlu0 %1863 }
 0x504   :  { %v1931_v4 = vsel %vm79_vm4, %v1864_v62, 0.0 }
 0x505   :  { %v1962_v53 = vmax.f32 %v9206_v31, %v1931_v4 }
 0x507   :  { %v1862_v39 = vpop.permute.xlu0 %1861  ;;  %v1868_v43 = vpop.permute.xlu1 %1867  ;;  %v2090_v57 = vadd.f32 %v2054_v35, %v1962_v53 }
 0x508   :  { %v1883_v5 = vsel %vm79_vm4, %v1862_v39, %v1864_v62  ;;  %v1932_v59 = vsel %vm79_vm4, %v1868_v43, 0.0 }
 0x509   :  { %v1961_v33 = vmax.f32 %v9202_v1, %v1883_v5  ;;  %v1964_v37 = vmax.f32 %v9215_v29, %v1932_v59  ;;  %v2122_v44 = vmax.f32 %v2090_v57, 0.0 }
 0x50b   :  { %2291 = vmatprep.mubr.f32.mxu1 %v2122_v44  ;;  %v1866_v7 = vpop.permute.xlu0 %1865  ;;  %v2089_v0 = vadd.f32 %v2054_v35, %v1961_v33  ;;  %v2092_v27 = vadd.f32 %v2059_v45, %v1964_v37 }
 0x50c   :  { %v1884_v32 = vsel %vm79_vm4, %v1866_v7, %v1868_v43 }
 0x50d   :  { %v1963_v31 = vmax.f32 %v9211_v47, %v1884_v32  ;;  %v2121_v41 = vmax.f32 %v2089_v0, 0.0  ;;  %v2124_v56 = vmax.f32 %v2092_v27, 0.0  ;;  %v3335_v32 = vld [vmem:[%s11766_s8] sm:$0xff] }
 0x50f   :  { %2292 = vmatmul.mubr.f32.gmra.mrb[76].mxu1 %v2121_v41  ;;  %v2091_v42 = vadd.f32 %v2059_v45, %v1963_v31  ;;  %v3343_v31 = vld [vmem:[%s11766_s8 + $0x40] sm:$0xff] }
 0x510   :  { %2296 = vmatprep.mubr.f32.mxu1 %v2124_v56 }
 0x511   :  { %v2123_v11 = vmax.f32 %v2091_v42, 0.0 }
 0x513   :  { %2297 = vmatmul.mubr.f32.gmra.mrb[78].mxu1 %v2123_v11 }
 0x514   :  { %6802 = vmatprep.mubr.msk.f32.mxu1 %vm2450_vm6, %v9334_v63 }
 0x59a   :  { %v6045_v6 = vpop.f32.mrb[48].mxu1 }
 0x59b   :  { %v6046_v1 = vpop.f32.mrb[49].mxu1 }
 0x59c   :  { %v6047_v19 = vadd.f32 %v6046_v1, %v6045_v6 }
 0x59e   :  { %v6048_v29 = vpop.f32.mrb[50].mxu1 }
 0x59f   :  { %v6049_v9 = vpop.f32.mrb[51].mxu1 }
 0x5a0   :  { %v6050_v2 = vadd.f32 %v6049_v9, %v6048_v29  ;;  %v3339_v9 = vld [vmem:[%s11766_s8 + $0x20] sm:$0xff] }
 0x5a2   :  { %v7819_v14 = vpack.i.bf16 %v6050_v2, %v6047_v19  ;;  %v6051_v15 = vpop.f32.mrb[52].mxu1  ;;  %v9327_v36 = vpack.c.bf16 %v6050_v2, %v6047_v19  ;;  %v3347_v2 = vld [vmem:[%s11766_s8 + $0x60] sm:$0xff] }
 0x5a3   :  { %v6052_v40 = vpop.f32.mrb[53].mxu1 }
 0x5a4   :  { %v6053_v10 = vadd.f32 %v6052_v40, %v6051_v15  ;;  %7820 = vrot.lane.b32.xlu0 %v7819_v14, %s7899_s14  ;;  %7815 = vrot.lane.b32.xlu1 %v7819_v14, %s7900_s17  ;;  %v3351_v14 = vld [vmem:[%s11766_s8 + $0x80] sm:$0xff] }
 0x5a5   :  { %v3355_v15 = vld [vmem:[%s11766_s8 + $0xa0] sm:$0xff] }
 0x5a6   :  { %v6054_v47 = vpop.f32.mrb[54].mxu1 }
 0x5a7   :  { %v6055_v17 = vpop.f32.mrb[55].mxu1 }
 0x5a8   :  { %v6056_v38 = vadd.f32 %v6055_v17, %v6054_v47 }
 0x5aa   :  { %v7829_v50 = vpack.i.bf16 %v6056_v38, %v6053_v10  ;;  %v6057_v55 = vpop.f32.mrb[56].mxu1  ;;  %v9340_v12 = vpack.c.bf16 %v6056_v38, %v6053_v10 }
 0x5ab   :  { %v6058_v58 = vpop.f32.mrb[57].mxu1 }
 0x5ac   :  { %v6059_v16 = vadd.f32 %v6058_v58, %v6057_v55  ;;  %7830 = vrot.lane.b32.xlu0 %v7829_v50, %s7899_s14  ;;  %7825 = vrot.lane.b32.xlu1 %v7829_v50, %s7900_s17 }
 0x5ae   :  { %v6060_v51 = vpop.f32.mrb[58].mxu1 }
 0x5af   :  { %v6061_v25 = vpop.f32.mrb[59].mxu1 }
 0x5b0   :  { %v6062_v46 = vadd.f32 %v6061_v25, %v6060_v51 }
 0x5b2   :  { %v7844_v8 = vpack.i.bf16 %v6062_v46, %v6059_v16  ;;  %v6063_v21 = vpop.f32.mrb[60].mxu1  ;;  %v9344_v61 = vpack.c.bf16 %v6062_v46, %v6059_v16 }
 0x5b3   :  { %v6064_v52 = vpop.f32.mrb[61].mxu1 }
 0x5b4   :  { %v6065_v20 = vadd.f32 %v6064_v52, %v6063_v21  ;;  %7835 = vrot.lane.b32.xlu1 %v7844_v8, %s7900_s17  ;;  %v9412_v52 = vld [vmem:[%s11765_s7 + $0x8] sm:$0xff] }
 0x5b6   :  { %v6066_v60 = vpop.f32.mrb[62].mxu1 }
 0x5b7   :  { %v6067_v34 = vpop.f32.mrb[63].mxu1 }
 0x5b8   :  { %v6068_v24 = vadd.f32 %v6067_v34, %v6066_v60  ;;  %7845 = vrot.lane.b32.xlu1 %v7844_v8, %s7899_s14 }
 0x5ba   :  { %v7849_v26 = vpack.i.bf16 %v6068_v24, %v6065_v20  ;;  %v6069_v23 = vpop.f32.mrb[64].mxu1  ;;  %v9348_v30 = vpack.c.bf16 %v6068_v24, %v6065_v20  ;;  %v9430_v24 = vld [vmem:[%s11765_s7 + $0x18] sm:$0xff] }
 0x5bb   :  { %v6070_v3 = vpop.f32.mrb[65].mxu1 }
 0x5bc   :  { %v6071_v54 = vadd.f32 %v6070_v3, %v6069_v23  ;;  %7840 = vrot.lane.b32.xlu0 %v7849_v26, %s7900_s17 }
 0x5be   :  { %v6072_v28 = vpop.f32.mrb[66].mxu1 }
 0x5bf   :  { %v6073_v22 = vpop.f32.mrb[67].mxu1 }
 0x5c0   :  { %v6074_v49 = vadd.f32 %v6073_v22, %v6072_v28  ;;  %7850 = vrot.lane.b32.xlu0 %v7849_v26, %s7899_s14 }
 0x5c2   :  { %v7864_v48 = vpack.i.bf16 %v6074_v49, %v6071_v54  ;;  %v6075_v18 = vpop.f32.mrb[68].mxu1  ;;  %v9352_v35 = vpack.c.bf16 %v6074_v49, %v6071_v54 }
 0x5c3   :  { %v6076_v45 = vpop.f32.mrb[69].mxu1 }
 0x5c4   :  { %v6077_v62 = vadd.f32 %v6076_v45, %v6075_v18  ;;  %7855 = vrot.lane.b32.xlu1 %v7864_v48, %s7900_s17 }
 0x5c6   :  { %v6078_v4 = vpop.f32.mrb[70].mxu1 }
 0x5c7   :  { %v6079_v53 = vpop.f32.mrb[71].mxu1 }
 0x5c8   :  { %v6080_v39 = vadd.f32 %v6079_v53, %v6078_v4  ;;  %7865 = vrot.lane.b32.xlu1 %v7864_v48, %s7899_s14 }
 0x5ca   :  { %v7869_v43 = vpack.i.bf16 %v6080_v39, %v6077_v62  ;;  %v6081_v57 = vpop.f32.mrb[72].mxu1  ;;  %v9356_v5 = vpack.c.bf16 %v6080_v39, %v6077_v62 }
 0x5cb   :  { %v6082_v59 = vpop.f32.mrb[73].mxu1 }
 0x5cc   :  { %v6083_v33 = vadd.f32 %v6082_v59, %v6081_v57  ;;  %7860 = vrot.lane.b32.xlu0 %v7869_v43, %s7900_s17 }
 0x5ce   :  { %v6084_v37 = vpop.f32.mrb[74].mxu1 }
 0x5cf   :  { %v6085_v44 = vpop.f32.mrb[75].mxu1 }
 0x5d0   :  { %v6086_v7 = vadd.f32 %v6085_v44, %v6084_v37  ;;  %7870 = vrot.lane.b32.xlu0 %v7869_v43, %s7899_s14 }
 0x5d2   :  { %v7884_v0 = vpack.i.bf16 %v6086_v7, %v6083_v33  ;;  %v9360_v27 = vpack.c.bf16 %v6086_v7, %v6083_v33 }
 0x5d4   :  { %7875 = vrot.lane.b32.xlu1 %v7884_v0, %s7900_s17 }
 0x5d8   :  { %7885 = vrot.lane.b32.xlu1 %v7884_v0, %s7899_s14 }
 0x5dc   :  { %3369 = vperm.xlu1 %7773, %v3335_v32  }
 0x5e0   :  { %3409 = vperm.xlu1 %7773, %v3343_v31  }
 0x5e2   :  { %v6087_v41 = vpop.f32.mrb[76].mxu1 }
 0x5e3   :  { %v6088_v56 = vpop.f32.mrb[77].mxu1 }
 0x5e4   :  { %v6089_v42 = vadd.f32 %v6088_v56, %v6087_v41 }
 0x5e6   :  { %v6090_v11 = vpop.f32.mrb[78].mxu1 }
 0x5e7   :  { %v6091_v6 = vpop.f32.mrb[79].mxu1 }
 0x5e8   :  { %v6092_v1 = vadd.f32 %v6091_v6, %v6090_v11 }
 0x5ea   :  { %v7889_v19 = vpack.i.bf16 %v6092_v1, %v6089_v42  ;;  %v9370_v29 = vpack.c.bf16 %v6092_v1, %v6089_v42 }
 0x5ec   :  { %7880 = vrot.lane.b32.xlu0 %v7889_v19, %s7900_s17 }
 0x5f0   :  { %7890 = vrot.lane.b32.xlu0 %v7889_v19, %s7899_s14 }
 0x5f4   :  { %3389 = vperm.xlu0 %7772, %v3339_v9  }
 0x5f8   :  { %3429 = vperm.xlu0 %7772, %v3347_v2  }
 0x5fc   :  { %3449 = vperm.xlu0 %7772, %v3351_v14  }
 0x600   :  { %3469 = vperm.xlu0 %7772, %v3355_v15  }
 0x616   :  { %v7816_v40 = vpop.permute.xlu1 %7815  ;;  %v7821_v38 = vpop.permute.xlu0 %7820 }
 0x617   :  { %v7818_v10 = vunpack.i.h.bf16 %v7816_v40  ;;  %v7817_v47 = vunpack.i.l.bf16 %v7816_v40  ;;  %v7823_v55 = vunpack.i.h.bf16 %v7821_v38  ;;  %v7822_v58 = vunpack.i.l.bf16 %v7821_v38 }
 0x619   :  { %v7096_v50 = vpack.c.bf16 %v7818_v10, %v7817_v47  ;;  %v7106_v51 = vpack.c.bf16 %v7823_v55, %v7822_v58 }
 0x61b   :  { %7098 = vmatprep.subr.msk.bf16.mxu0 %vm9389_vm7, %v7096_v50 }
 0x61c   :  { %7101 = vmatpush3.bf16.msk.msra.mxu0 %vm9389_vm7, %v7096_v50 }
 0x61d   :  { %7103 = vmatprep.subr.bf16.mxu0 %v9327_v36 }
 0x61e   :  { %v7826_v16 = vpop.permute.xlu1 %7825  ;;  %v7831_v21 = vpop.permute.xlu0 %7830 }
 0x61f   :  { %v7828_v25 = vunpack.i.h.bf16 %v7826_v16  ;;  %v7827_v46 = vunpack.i.l.bf16 %v7826_v16  ;;  %v7833_v20 = vunpack.i.h.bf16 %v7831_v21  ;;  %v7832_v60 = vunpack.i.l.bf16 %v7831_v21 }
 0x620   :  { %7105 = vmatpush3.bf16.msra.mxu0 %v9327_v36  ;;  %v9419_v36 = vld [vmem:[%s11765_s7 + $0x10] sm:$0xff] }
 0x621   :  { %7108 = vmatprep.subr.msk.bf16.mxu0 %vm9400_vm8, %v7106_v51  ;;  %v7112_v8 = vpack.c.bf16 %v7828_v25, %v7827_v46  ;;  %v7122_v26 = vpack.c.bf16 %v7833_v20, %v7832_v60 }
 0x624   :  { %7111 = vmatpush3.bf16.msk.msra.mxu0 %vm9400_vm8, %v7106_v51  ;;  %v3363_v51 = vld [vmem:[%s11766_s8 + $0xe0] sm:$0xff] }
 0x625   :  { %7114 = vmatprep.subr.msk.bf16.mxu0 %vm9389_vm7, %v7112_v8 }
 0x626   :  { %v7836_v34 = vpop.permute.xlu1 %7835 }
 0x627   :  { %6749 = vmatmul.mubr.msk.f32.vlgmr.msra.gmra.mrb[32].mxu0 %vm2450_vm6, %v9412_v52  ;;  %v7838_v23 = vunpack.i.h.bf16 %v7836_v34  ;;  %v7837_v3 = vunpack.i.l.bf16 %v7836_v34 }
 0x628   :  { %7117 = vmatpush3.bf16.msk.msra.mxu0 %vm9389_vm7, %v7112_v8  ;;  %6751 = vmatprep.mubr.msk.f32.mxu0 %vm2450_vm6, %v9419_v36 }
 0x629   :  { %7119 = vmatprep.subr.bf16.mxu0 %v9340_v12  ;;  %v7128_v28 = vpack.c.bf16 %v7838_v23, %v7837_v3 }
 0x62a   :  { %v7846_v48 = vpop.permute.xlu1 %7845 }
 0x62b   :  { %6752 = vmatmul.mubr.msk.f32.gmra.mrb[34].mxu0 %vm2450_vm6, %v9430_v24  ;;  %v7847_v62 = vunpack.i.l.bf16 %v7846_v48 }
 0x62c   :  { %7121 = vmatpush3.bf16.msra.mxu0 %v9340_v12  ;;  %6766 = vmatprep.mubr.msk.f32.mxu0 %vm2450_vm6, %v9334_v63  ;;  %v7848_v12 = vunpack.i.h.bf16 %v7846_v48 }
 0x62d   :  { %7124 = vmatprep.subr.msk.bf16.mxu0 %vm9400_vm8, %v7122_v26 }
 0x62e   :  { %v7841_v54 = vpop.permute.xlu0 %7840  ;;  %v7138_v43 = vpack.c.bf16 %v7848_v12, %v7847_v62  ;;  %v4150_v12 = vld [vmem:[%s11767_s9 + $0x80] sm:$0xff]  ;;  %v4151_v62 = vld [vmem:[%s11767_s9 + $0x88] sm:$0xff] }
 0x62f   :  { %v7843_v22 = vunpack.i.h.bf16 %v7841_v54  ;;  %v7842_v49 = vunpack.i.l.bf16 %v7841_v54 }
 0x630   :  { %7127 = vmatpush3.bf16.msk.msra.mxu0 %vm9400_vm8, %v7122_v26 }
 0x631   :  { %v7144_v18 = vpack.c.bf16 %v7843_v22, %v7842_v49  ;;  %7130 = vmatprep.subr.msk.bf16.mxu0 %vm9389_vm7, %v7128_v28 }
 0x632   :  { %v7851_v45 = vpop.permute.xlu0 %7850 }
 0x633   :  { %v7853_v4 = vunpack.i.h.bf16 %v7851_v45  ;;  %v7852_v53 = vunpack.i.l.bf16 %v7851_v45  ;;  %6767 = vmatmul.mubr.msk.f32.vlgmr.msra.gmra.mrb[36].mxu0 %vm2450_vm6, %v9412_v52  ;;  %7146 = vmatprep.subr.msk.bf16.mxu1 %vm9389_vm7, %v7144_v18 }
 0x634   :  { %7133 = vmatpush3.bf16.msk.msra.mxu0 %vm9389_vm7, %v7128_v28  ;;  %7149 = vmatpush3.bf16.msk.msra.mxu1 %vm9389_vm7, %v7144_v18 }
 0x635   :  { %7135 = vmatprep.subr.bf16.mxu0 %v9344_v61  ;;  %7151 = vmatprep.subr.bf16.mxu1 %v9348_v30  ;;  %v7154_v57 = vpack.c.bf16 %v7853_v4, %v7852_v53  ;;  %v4182_v4 = vld [vmem:[%s11767_s9 + $0x180] sm:$0xff]  ;;  %v7224_v53 = vpack.c.bf16 %v4151_v62, %v4150_v12  ;;  %v4171_v12 = vld [vmem:[%s11767_s9 + $0x128] sm:$0xff] }
 0x636   :  { %v7856_v39 = vpop.permute.xlu1 %7855  ;;  %6769 = vmatprep.mubr.msk.f32.mxu0 %vm2450_vm6, %v9419_v36 }
 0x637   :  { %v7858_v59 = vunpack.i.h.bf16 %v7856_v39  ;;  %v7857_v33 = vunpack.i.l.bf16 %v7856_v39  ;;  %6770 = vmatmul.mubr.msk.f32.gmra.mrb[38].mxu0 %vm2450_vm6, %v9430_v24  ;;  %v4183_v39 = vld [vmem:[%s11767_s9 + $0x188] sm:$0xff] }
 0x638   :  { %7137 = vmatpush3.bf16.msra.mxu0 %v9344_v61  ;;  %7153 = vmatpush3.bf16.msra.mxu1 %v9348_v30 }
 0x639   :  { %7140 = vmatprep.subr.msk.bf16.mxu0 %vm9400_vm8, %v7138_v43  ;;  %7156 = vmatprep.subr.msk.bf16.mxu1 %vm9400_vm8, %v7154_v57  ;;  %v7160_v37 = vpack.c.bf16 %v7858_v59, %v7857_v33  ;;  %v7256_v59 = vpack.c.bf16 %v4183_v39, %v4182_v4  ;;  %v4156_v4 = vld [vmem:[%s11767_s9 + $0xb0] sm:$0xff] }
 0x63a   :  { %6784 = vmatprep.mubr.msk.f32.mxu0 %vm2450_vm6, %v9334_v63  ;;  %v7866_v44 = vpop.permute.xlu1 %7865  ;;  %v4188_v39 = vld [vmem:[%s11767_s9 + $0x1b0] sm:$0xff] }
 0x63b   :  { %v7868_v30 = vunpack.i.h.bf16 %v7866_v44  ;;  %v7867_v7 = vunpack.i.l.bf16 %v7866_v44  ;;  %v4167_v44 = vld [vmem:[%s11767_s9 + $0x108] sm:$0xff] }
 0x63c   :  { %7143 = vmatpush3.bf16.msk.msra.mxu0 %vm9400_vm8, %v7138_v43  ;;  %7159 = vmatpush3.bf16.msk.msra.mxu1 %vm9400_vm8, %v7154_v57  ;;  %v4134_v43 = vld [vmem:[%s11767_s9] sm:$0xff]  ;;  %v4135_v57 = vld [vmem:[%s11767_s9 + $0x8] sm:$0xff] }
 0x63d   :  { %7162 = vmatprep.subr.msk.bf16.mxu0 %vm9389_vm7, %v7160_v37  ;;  %v7170_v56 = vpack.c.bf16 %v7868_v30, %v7867_v7  ;;  %v7226_v33 = vpack.c.bf16 %v4135_v57, %v4134_v43  ;;  %v4189_v57 = vld [vmem:[%s11767_s9 + $0x1b8] sm:$0xff] }
 0x63e   :  { %v7861_v61 = vpop.permute.xlu0 %7860 }
 0x63f   :  { %v7863_v0 = vunpack.i.h.bf16 %v7861_v61  ;;  %v7862_v32 = vunpack.i.l.bf16 %v7861_v61  ;;  %6785 = vmatmul.mubr.msk.f32.vlgmr.msra.gmra.mrb[40].mxu0 %vm2450_vm6, %v9412_v52  ;;  %6803 = vmatmul.mubr.msk.f32.vlgmr.msra.gmra.mrb[80].mxu1 %vm2450_vm6, %v9412_v52  ;;  %v4152_v61 = vld [vmem:[%s11767_s9 + $0x90] sm:$0xff] }
 0x640   :  { %7165 = vmatpush3.bf16.msk.msra.mxu0 %vm9389_vm7, %v7160_v37  ;;  %6787 = vmatprep.mubr.msk.f32.mxu0 %vm2450_vm6, %v9419_v36  ;;  %v4166_v37 = vld [vmem:[%s11767_s9 + $0x100] sm:$0xff] }
 0x641   :  { %v7176_v31 = vpack.c.bf16 %v7863_v0, %v7862_v32  ;;  %7167 = vmatprep.subr.bf16.mxu0 %v9352_v35  ;;  %6805 = vmatprep.mubr.msk.f32.mxu1 %vm2450_vm6, %v9419_v36  ;;  %v7258_v7 = vpack.c.bf16 %v4167_v44, %v4166_v37  ;;  %v4153_v0 = vld [vmem:[%s11767_s9 + $0x98] sm:$0xff]  ;;  %v4184_v32 = vld [vmem:[%s11767_s9 + $0x190] sm:$0xff]  ;;  %v7268_v37 = vpack.c.bf16 %v4189_v57, %v4188_v39  ;;  %v4194_v39 = vld [vmem:[%s11767_s9 + $0x1e0] sm:$0xff] }
 0x642   :  { %v7871_v41 = vpop.permute.xlu0 %7870  ;;  %v4195_v57 = vld [vmem:[%s11767_s9 + $0x1e8] sm:$0xff] }
 0x643   :  { %v7873_v42 = vunpack.i.h.bf16 %v7871_v41  ;;  %v7872_v11 = vunpack.i.l.bf16 %v7871_v41  ;;  %7178 = vmatprep.subr.msk.bf16.mxu1 %vm9389_vm7, %v7176_v31  ;;  %6788 = vmatmul.mubr.msk.f32.gmra.mrb[42].mxu0 %vm2450_vm6, %v9430_v24 }
 0x644   :  { %7169 = vmatpush3.bf16.msra.mxu0 %v9352_v35  ;;  %7181 = vmatpush3.bf16.msk.msra.mxu1 %vm9389_vm7, %v7176_v31  ;;  %v4185_v31 = vld [vmem:[%s11767_s9 + $0x198] sm:$0xff] }
 0x645   :  { %7172 = vmatprep.subr.msk.bf16.mxu0 %vm9400_vm8, %v7170_v56  ;;  %7183 = vmatprep.subr.bf16.mxu1 %v9356_v5  ;;  %v7186_v1 = vpack.c.bf16 %v7873_v42, %v7872_v11  ;;  %v7260_v42 = vpack.c.bf16 %v4185_v31, %v4184_v32  ;;  %v4136_v11 = vld [vmem:[%s11767_s9 + $0x10] sm:$0xff]  ;;  %v4158_v32 = vld [vmem:[%s11767_s9 + $0xc0] sm:$0xff]  ;;  %v4159_v31 = vld [vmem:[%s11767_s9 + $0xc8] sm:$0xff] }
 0x646   :  { %v7876_v6 = vpop.permute.xlu1 %7875  ;;  %6820 = vmatprep.mubr.msk.f32.mxu0 %vm2450_vm6, %v9334_v63  ;;  %6806 = vmatmul.mubr.msk.f32.gmra.mrb[82].mxu1 %vm2450_vm6, %v9430_v24 }
 0x647   :  { %v7878_v19 = vunpack.i.h.bf16 %v7876_v6  ;;  %v7877_v9 = vunpack.i.l.bf16 %v7876_v6  ;;  %6838 = vmatprep.mubr.msk.f32.mxu1 %vm2450_vm6, %v9334_v63  ;;  %v4137_v6 = vld [vmem:[%s11767_s9 + $0x18] sm:$0xff] }
 0x648   :  { %7175 = vmatpush3.bf16.msk.msra.mxu0 %vm9400_vm8, %v7170_v56  ;;  %7185 = vmatpush3.bf16.msra.mxu1 %v9356_v5  ;;  %v7228_v56 = vpack.c.bf16 %v4153_v0, %v4152_v61  ;;  %v4172_v61 = vld [vmem:[%s11767_s9 + $0x130] sm:$0xff] }
 0x649   :  { %v7192_v35 = vpack.c.bf16 %v7878_v19, %v7877_v9  ;;  %7188 = vmatprep.subr.msk.bf16.mxu1 %vm9400_vm8, %v7186_v1  ;;  %v7230_v19 = vpack.c.bf16 %v4137_v6, %v4136_v11  ;;  %v4169_v9 = vld [vmem:[%s11767_s9 + $0x118] sm:$0xff]  ;;  %v4191_v11 = vld [vmem:[%s11767_s9 + $0x1c8] sm:$0xff]  ;;  %v4142_v6 = vld [vmem:[%s11767_s9 + $0x40] sm:$0xff] }
 0x64a   :  { %v7886_v2 = vpop.permute.xlu1 %7885 }
 0x64b   :  { %v7888_v14 = vunpack.i.h.bf16 %v7886_v2  ;;  %v7887_v15 = vunpack.i.l.bf16 %v7886_v2  ;;  %6821 = vmatmul.mubr.msk.f32.vlgmr.msra.gmra.mrb[44].mxu0 %vm2450_vm6, %v9412_v52  ;;  %7194 = vmatprep.subr.msk.bf16.mxu0 %vm9389_vm7, %v7192_v35 }
 0x64c   :  { %7191 = vmatpush3.bf16.msk.msra.mxu1 %vm9400_vm8, %v7186_v1  ;;  %7197 = vmatpush3.bf16.msk.msra.mxu0 %vm9389_vm7, %v7192_v35  ;;  %v4168_v1 = vld [vmem:[%s11767_s9 + $0x110] sm:$0xff]  ;;  %v3336_v35 = vld [vmem:[%s11766_s8 + $0x8] sm:$0xff] }
 0x64d   :  { %7199 = vmatprep.subr.bf16.mxu0 %v9360_v27  ;;  %6823 = vmatprep.mubr.msk.f32.mxu0 %vm2450_vm6, %v9419_v36  ;;  %v7202_v5 = vpack.c.bf16 %v7888_v14, %v7887_v15  ;;  %v7262_v2 = vpack.c.bf16 %v4169_v9, %v4168_v1  ;;  %v4143_v1 = vld [vmem:[%s11767_s9 + $0x48] sm:$0xff] }
 0x64e   :  { %v7242_v9 = vpack.c.bf16 %v4143_v1, %v4142_v6  ;;  %v4196_v6 = vld [vmem:[%s11767_s9 + $0x1f0] sm:$0xff] }
 0x64f   :  { %6839 = vmatmul.mubr.msk.f32.vlgmr.msra.gmra.mrb[84].mxu1 %vm2450_vm6, %v9412_v52  ;;  %6824 = vmatmul.mubr.msk.f32.gmra.mrb[46].mxu0 %vm2450_vm6, %v9430_v24 }
 0x650   :  { %7201 = vmatpush3.bf16.msra.mxu0 %v9360_v27  ;;  %6856 = vmatprep.mubr.msk.f32.mxu0 %vm2450_vm6, %v9334_v63 }
 0x651   :  { %7204 = vmatprep.subr.msk.bf16.mxu0 %vm9400_vm8, %v7202_v5  ;;  %6841 = vmatprep.mubr.msk.f32.mxu1 %vm2450_vm6, %v9419_v36 }
 0x653   :  { %6842 = vmatmul.mubr.msk.f32.gmra.mrb[86].mxu1 %vm2450_vm6, %v9430_v24 }
 0x654   :  { %7207 = vmatpush3.bf16.msk.msra.mxu0 %vm9400_vm8, %v7202_v5  ;;  %6874 = vmatprep.mubr.msk.f32.mxu1 %vm2450_vm6, %v9334_v63  ;;  %v4154_v5 = vld [vmem:[%s11767_s9 + $0xa0] sm:$0xff] }
 0x655   :  { %7225 = vmatprep.subr.bf16.mxu0 %v7224_v53  ;;  %v4157_v53 = vld [vmem:[%s11767_s9 + $0xb8] sm:$0xff] }
 0x656   :  { %v7236_v43 = vpack.c.bf16 %v4157_v53, %v4156_v4  ;;  %v4162_v4 = vld [vmem:[%s11767_s9 + $0xe0] sm:$0xff]  ;;  %v4163_v53 = vld [vmem:[%s11767_s9 + $0xe8] sm:$0xff] }
 0x657   :  { %6857 = vmatmul.mubr.msk.f32.vlgmr.msra.gmra.mrb[48].mxu0 %vm2450_vm6, %v9412_v52 }
 0x658   :  { %6859 = vmatprep.mubr.msk.f32.mxu0 %vm2450_vm6, %v9419_v36  ;;  %7227 = vmatpush3.bf16.msra.mxu0 %v7226_v33  ;;  %v4141_v33 = vld [vmem:[%s11767_s9 + $0x38] sm:$0xff] }
 0x659   :  { %7229 = vmatprep.subr.bf16.mxu0 %v7228_v56  ;;  %v4190_v56 = vld [vmem:[%s11767_s9 + $0x1c0] sm:$0xff] }
 0x65b   :  { %6860 = vmatmul.mubr.msk.f32.gmra.mrb[50].mxu0 %vm2450_vm6, %v9430_v24 }
 0x65c   :  { %7231 = vmatpush3.bf16.msra.mxu0 %v7230_v19  ;;  %v7272_v19 = vpack.c.bf16 %v4191_v11, %v4190_v56  ;;  %v3340_v56 = vld [vmem:[%s11766_s8 + $0x28] sm:$0xff]  ;;  %v4165_v11 = vld [vmem:[%s11767_s9 + $0xf8] sm:$0xff] }
 0x65e   :  { %v7881_v27 = vpop.permute.xlu0 %7880 }
 0x65f   :  { %v7883_v40 = vunpack.i.h.bf16 %v7881_v27  ;;  %v7882_v10 = vunpack.i.l.bf16 %v7881_v27  ;;  %v4155_v27 = vld [vmem:[%s11767_s9 + $0xa8] sm:$0xff] }
 0x661   :  { %v7208_v47 = vpack.c.bf16 %v7883_v40, %v7882_v10  ;;  %v4186_v40 = vld [vmem:[%s11767_s9 + $0x1a0] sm:$0xff]  ;;  %v7232_v10 = vpack.c.bf16 %v4155_v27, %v4154_v5  ;;  %v4160_v27 = vld [vmem:[%s11767_s9 + $0xd0] sm:$0xff] }
 0x662   :  { %v7891_v38 = vpop.permute.xlu0 %7890 }
 0x663   :  { %v7893_v50 = vunpack.i.h.bf16 %v7891_v38  ;;  %v7892_v55 = vunpack.i.l.bf16 %v7891_v38  ;;  %7210 = vmatprep.subr.msk.bf16.mxu1 %vm9389_vm7, %v7208_v47  ;;  %v4138_v38 = vld [vmem:[%s11767_s9 + $0x20] sm:$0xff]  ;;  %7233 = vmatprep.subr.bf16.mxu0 %v7232_v10  ;;  %v4192_v10 = vld [vmem:[%s11767_s9 + $0x1d0] sm:$0xff] }
 0x664   :  { %7213 = vmatpush3.bf16.msk.msra.mxu1 %vm9389_vm7, %v7208_v47  ;;  %v4187_v47 = vld [vmem:[%s11767_s9 + $0x1a8] sm:$0xff] }
 0x665   :  { %7215 = vmatprep.subr.bf16.mxu1 %v9370_v29  ;;  %v7218_v63 = vpack.c.bf16 %v7893_v50, %v7892_v55  ;;  %v4139_v50 = vld [vmem:[%s11767_s9 + $0x28] sm:$0xff] }
 0x666   :  { %v3344_v55 = vld [vmem:[%s11766_s8 + $0x48] sm:$0xff] }
 0x668   :  { %7217 = vmatpush3.bf16.msra.mxu1 %v9370_v29  ;;  %v3359_v29 = vld [vmem:[%s11766_s8 + $0xc0] sm:$0xff] }
 0x669   :  { %7220 = vmatprep.subr.msk.bf16.mxu1 %vm9400_vm8, %v7218_v63 }
 0x66c   :  { %7223 = vmatpush3.bf16.msk.msra.mxu1 %vm9400_vm8, %v7218_v63  ;;  %v7264_v63 = vpack.c.bf16 %v4187_v47, %v4186_v40  ;;  %v4161_v40 = vld [vmem:[%s11767_s9 + $0xd8] sm:$0xff] }
 0x66d   :  { %7257 = vmatprep.subr.bf16.mxu1 %v7256_v59  ;;  %v4140_v59 = vld [vmem:[%s11767_s9 + $0x30] sm:$0xff]  ;;  %v7244_v47 = vpack.c.bf16 %v4161_v40, %v4160_v27  ;;  %v4181_v27 = vld [vmem:[%s11767_s9 + $0x178] sm:$0xff] }
 0x66e   :  { %v7238_v44 = vpack.c.bf16 %v4141_v33, %v4140_v59  ;;  %v4146_v59 = vld [vmem:[%s11767_s9 + $0x60] sm:$0xff]  ;;  %v4147_v33 = vld [vmem:[%s11767_s9 + $0x68] sm:$0xff] }
 0x66f   :  { %6875 = vmatmul.mubr.msk.f32.vlgmr.msra.gmra.mrb[88].mxu1 %vm2450_vm6, %v9412_v52 }
 0x670   :  { %6877 = vmatprep.mubr.msk.f32.mxu1 %vm2450_vm6, %v9419_v36  ;;  %7259 = vmatpush3.bf16.msra.mxu1 %v7258_v7  ;;  %v4173_v7 = vld [vmem:[%s11767_s9 + $0x138] sm:$0xff] }
 0x671   :  { %7261 = vmatprep.subr.bf16.mxu1 %v7260_v42  ;;  %v7270_v0 = vpack.c.bf16 %v4173_v7, %v4172_v61  ;;  %v7240_v42 = vpack.c.bf16 %v4159_v31, %v4158_v32  ;;  %v4178_v61 = vld [vmem:[%s11767_s9 + $0x160] sm:$0xff]  ;;  %v4179_v7 = vld [vmem:[%s11767_s9 + $0x168] sm:$0xff] }
 0x672   :  { %v7282_v32 = vpack.c.bf16 %v4179_v7, %v4178_v61  ;;  %v3341_v61 = vld [vmem:[%s11766_s8 + $0x30] sm:$0xff] }
 0x673   :  { %6878 = vmatmul.mubr.msk.f32.gmra.mrb[90].mxu1 %vm2450_vm6, %v9430_v24 }
 0x674   :  { %7263 = vmatpush3.bf16.msra.mxu1 %v7262_v2  ;;  %v4175_v2 = vld [vmem:[%s11767_s9 + $0x148] sm:$0xff] }
 0x675   :  { %7265 = vmatprep.subr.bf16.mxu1 %v7264_v63 }
 0x6fa   :  { %v9554_v17 = vpop.f32.mrb[32].mxu0 }
 0x6fb   :  { %v9556_v58 = vpop.f32.mrb[33].mxu0 }
 0x6fc   :  { %3175 = vrot.lane.b32.xlu0 %v9556_v58, %s7899_s14 }
 0x6fe   :  { %v9563_v16 = vpop.f32.mrb[34].mxu0 }
 0x6ff   :  { %v9565_v13 = vpop.f32.mrb[35].mxu0 }
 0x700   :  { %3489 = vperm.xlu0 %7772, %v3359_v29   ;;  %v7234_v29 = vpack.c.bf16 %v4139_v50, %v4138_v38  ;;  %v4193_v38 = vld [vmem:[%s11767_s9 + $0x1d8] sm:$0xff]  ;;  %v4144_v50 = vld [vmem:[%s11767_s9 + $0x50] sm:$0xff] }
 0x701   :  { %v7276_v63 = vpack.c.bf16 %v4193_v38, %v4192_v10 }
 0x702   :  { %7235 = vmatpush3.bf16.msra.mxu0 %v7234_v29 }
 0x703   :  { %7237 = vmatprep.subr.bf16.mxu0 %v7236_v43  ;;  %v7248_v43 = vpack.c.bf16 %v4163_v53, %v4162_v4  ;;  %v3337_v4 = vld [vmem:[%s11766_s8 + $0x10] sm:$0xff]  ;;  %v3352_v53 = vld [vmem:[%s11766_s8 + $0x88] sm:$0xff] }
 0x704   :  { %3509 = vperm.xlu0 %7772, %v3363_v51   ;;  %v4170_v51 = vld [vmem:[%s11767_s9 + $0x120] sm:$0xff] }
 0x705   :  { %v7266_v62 = vpack.c.bf16 %v4171_v12, %v4170_v51  ;;  %v4176_v51 = vld [vmem:[%s11767_s9 + $0x150] sm:$0xff]  ;;  %v4177_v12 = vld [vmem:[%s11767_s9 + $0x158] sm:$0xff] }
 0x706   :  { %v9570_v25 = vpop.f32.mrb[36].mxu0  ;;  %7239 = vmatpush3.bf16.msra.mxu0 %v7238_v44  ;;  %v7250_v44 = vpack.c.bf16 %v4147_v33, %v4146_v59  ;;  %v3360_v59 = vld [vmem:[%s11766_s8 + $0xc8] sm:$0xff] }
 0x707   :  { %v9572_v46 = vpop.f32.mrb[37].mxu0  ;;  %7267 = vmatpush3.bf16.msra.mxu1 %v7266_v62  ;;  %7241 = vmatprep.subr.bf16.mxu0 %v7240_v42  ;;  %v7278_v62 = vpack.c.bf16 %v4177_v12, %v4176_v51  ;;  %v4164_v42 = vld [vmem:[%s11767_s9 + $0xf0] sm:$0xff]  ;;  %v4247_v51 = vld [vmem:[%s11767_s9 + $0x388] sm:$0xff] }
 0x708   :  { %3183 = vrot.lane.b32.xlu1 %v9572_v46, %s7899_s14  ;;  %7269 = vmatprep.subr.bf16.mxu1 %v7268_v37  ;;  %v7280_v37 = vpack.c.bf16 %v4195_v57, %v4194_v39  ;;  %v7252_v1 = vpack.c.bf16 %v4165_v11, %v4164_v42  ;;  %v3345_v39 = vld [vmem:[%s11766_s8 + $0x50] sm:$0xff]  ;;  %v3390_v57 = vpop.permute.xlu0 %3389  ;;  %v3364_v33 = vld [vmem:[%s11766_s8 + $0xe8] sm:$0xff] }
 0x70a   :  { %v9576_v8 = vpop.f32.mrb[38].mxu0  ;;  %7243 = vmatpush3.bf16.msra.mxu0 %v7242_v9  ;;  %v4148_v9 = vld [vmem:[%s11767_s9 + $0x70] sm:$0xff] }
 0x70b   :  { %v9578_v21 = vpop.f32.mrb[39].mxu0  ;;  %7271 = vmatpush3.bf16.msra.mxu1 %v7270_v0  ;;  %7245 = vmatprep.subr.bf16.mxu0 %v7244_v47 }
 0x70c   :  { %7273 = vmatprep.subr.bf16.mxu1 %v7272_v19  ;;  %v4197_v19 = vld [vmem:[%s11767_s9 + $0x1f8] sm:$0xff] }
 0x712   :  { %v9580_v52 = vpop.f32.mrb[40].mxu0  ;;  %v9582_v36 = vpop.f32.mrb[80].mxu1 }
 0x713   :  { %v9584_v20 = vpop.f32.mrb[41].mxu0  ;;  %v9586_v60 = vpop.f32.mrb[81].mxu1 }
 0x714   :  { %3191 = vrot.lane.b32.xlu1 %v9584_v20, %s7899_s14 }
 0x716   :  { %v9590_v34 = vpop.f32.mrb[42].mxu0 }
 0x717   :  { %v9592_v24 = vpop.f32.mrb[43].mxu0 }
 0x718   :  { %3199 = vrot.lane.b32.xlu1 %v9586_v60, %s7899_s14 }
 0x719   :  { %v9596_v26 = vpop.f32.mrb[82].mxu1 }
 0x71a   :  { %v9598_v23 = vpop.f32.mrb[83].mxu1 }
 0x71e   :  { %v9600_v3 = vpop.f32.mrb[44].mxu0 }
 0x71f   :  { %v9602_v54 = vpop.f32.mrb[45].mxu0 }
 0x720   :  { %3207 = vrot.lane.b32.xlu1 %v9602_v54, %s7899_s14 }
 0x722   :  { %v9606_v28 = vpop.f32.mrb[84].mxu1  ;;  %v9608_v22 = vpop.f32.mrb[46].mxu0 }
 0x723   :  { %11785 = vst [vmem:[#allocation4_spill] sm:$0xff] %v9608_v22  ;;  %v9610_v49 = vpop.f32.mrb[85].mxu1  ;;  %v9612_v48 = vpop.f32.mrb[47].mxu0 }
 0x724   :  { %3215 = vrot.lane.b32.xlu1 %v9610_v49, %s7899_s14 }
 0x726   :  { %v9616_v18 = vpop.f32.mrb[86].mxu1 }
 0x727   :  { %11786 = vst [vmem:[#allocation5_spill] sm:$0xff] %v9616_v18  ;;  %v9618_v45 = vpop.f32.mrb[87].mxu1 }
 0x72a   :  { %v9647_v30 = vpop.f32.mrb[48].mxu0 }
 0x72b   :  { %v9658_v41 = vpop.f32.mrb[49].mxu0 }
 0x72c   :  { %3223 = vrot.lane.b32.xlu1 %v9658_v41, %s7899_s14 }
 0x72e   :  { %v9677_v14 = vpop.f32.mrb[50].mxu0 }
 0x72f   :  { %11787 = vst [vmem:[#allocation6_spill] sm:$0xff] %v9677_v14  ;;  %v9679_v15 = vpop.f32.mrb[51].mxu0 }
 0x730   :  { %3374 = vperm.xlu1 %7773, %v3336_v35   ;;  %v4174_v35 = vld [vmem:[%s11767_s9 + $0x140] sm:$0xff] }
 0x731   :  { %v7274_v5 = vpack.c.bf16 %v4175_v2, %v4174_v35  ;;  %v7284_v35 = vpack.c.bf16 %v4197_v19, %v4196_v6  ;;  %v4149_v2 = vld [vmem:[%s11767_s9 + $0x78] sm:$0xff]  ;;  %v3370_v6 = vpop.permute.xlu1 %3369  ;;  %v3353_v19 = vld [vmem:[%s11766_s8 + $0x90] sm:$0xff] }
 0x732   :  { %v7254_v10 = vpack.c.bf16 %v4149_v2, %v4148_v9  ;;  %v3346_v9 = vld [vmem:[%s11766_s8 + $0x58] sm:$0xff] }
 0x733   :  { %7275 = vmatpush3.bf16.msra.mxu1 %v7274_v5  ;;  %v4180_v5 = vld [vmem:[%s11767_s9 + $0x170] sm:$0xff] }
 0x734   :  { %3414 = vperm.xlu1 %7773, %v3344_v55   ;;  %v4145_v55 = vld [vmem:[%s11767_s9 + $0x58] sm:$0xff]  ;;  %7277 = vmatprep.subr.bf16.mxu1 %v7276_v63  ;;  %v7286_v47 = vpack.c.bf16 %v4181_v27, %v4180_v5  ;;  %v4246_v63 = vld [vmem:[%s11767_s9 + $0x380] sm:$0xff]  ;;  %v3357_v5 = vld [vmem:[%s11766_s8 + $0xb0] sm:$0xff] }
 0x735   :  { %v7246_v29 = vpack.c.bf16 %v4145_v55, %v4144_v50  ;;  %v4214_v50 = vld [vmem:[%s11767_s9 + $0x280] sm:$0xff]  ;;  %v4215_v55 = vld [vmem:[%s11767_s9 + $0x288] sm:$0xff]  ;;  %v7320_v12 = vpack.c.bf16 %v4247_v51, %v4246_v63  ;;  %v3410_v27 = vpop.permute.xlu1 %3409 }
 0x737   :  { %7247 = vmatpush3.bf16.msra.mxu0 %v7246_v29  ;;  %7279 = vmatpush3.bf16.msra.mxu1 %v7278_v62  ;;  %v7288_v29 = vpack.c.bf16 %v4215_v55, %v4214_v50  ;;  %v3348_v62 = vld [vmem:[%s11766_s8 + $0x68] sm:$0xff]  ;;  %v3365_v55 = vld [vmem:[%s11766_s8 + $0xf0] sm:$0xff] }
 0x738   :  { %3185 = vrot.lane.b32.xlu1 %v9570_v25, %s7899_s14  ;;  %7249 = vmatprep.subr.bf16.mxu0 %v7248_v43  ;;  %v3356_v43 = vld [vmem:[%s11766_s8 + $0xa8] sm:$0xff] }
 0x739   :  { %7281 = vmatprep.subr.bf16.mxu1 %v7280_v37  ;;  %v3430_v37 = vpop.permute.xlu0 %3429 }
 0x73b   :  { %7251 = vmatpush3.bf16.msra.mxu0 %v7250_v44  ;;  %7283 = vmatpush3.bf16.msra.mxu1 %v7282_v32  ;;  %v3349_v32 = vld [vmem:[%s11766_s8 + $0x70] sm:$0xff] }
 0x73c   :  { %3193 = vrot.lane.b32.xlu1 %v9580_v52, %s7899_s14  ;;  %7253 = vmatprep.subr.bf16.mxu0 %v7252_v1 }
 0x73d   :  { %7285 = vmatprep.subr.bf16.mxu1 %v7284_v35  ;;  %v9894_v44 = vpop.permute.xlu0 %3449 }
 0x73f   :  { %7255 = vmatpush3.bf16.msra.mxu0 %v7254_v10  ;;  %7287 = vmatpush3.bf16.msra.mxu1 %v7286_v47 }
 0x740   :  { %3201 = vrot.lane.b32.xlu1 %v9582_v36, %s7899_s14  ;;  %7289 = vmatprep.subr.bf16.mxu0 %v7288_v29 }
 0x741   :  { %7321 = vmatprep.subr.bf16.mxu1 %v7320_v12  ;;  %v9905_v7 = vpop.permute.xlu0 %3469 }
 0x742   :  { %v9810_v0 = vpop.f32.mrb[88].mxu1 }
 0x743   :  { %v9812_v31 = vpop.f32.mrb[89].mxu1 }
 0x744   :  { %3231 = vrot.lane.b32.xlu0 %v9812_v31, %s7899_s14  ;;  %3209 = vrot.lane.b32.xlu1 %v9600_v3, %s7899_s14 }
 0x746   :  { %v9845_v40 = vpop.f32.mrb[90].mxu1 }
 0x747   :  { %11788 = vst [vmem:[#allocation7_spill] sm:$0xff] %v9845_v40  ;;  %v9847_v38 = vpop.f32.mrb[91].mxu1 }
 0x748   :  { %3394 = vperm.xlu0 %7772, %v3340_v56   ;;  %3217 = vrot.lane.b32.xlu1 %v9606_v28, %s7899_s14  ;;  %v3338_v56 = vld [vmem:[%s11766_s8 + $0x18] sm:$0xff] }
 0x74c   :  { %3177 = vrot.lane.b32.xlu0 %v9554_v17, %s7899_s14  ;;  %3225 = vrot.lane.b32.xlu1 %v9647_v30, %s7899_s14 }
 0x750   :  { %3434 = vperm.xlu0 %7772, %v3348_v62   ;;  %3379 = vperm.xlu1 %7773, %v3337_v4  }
 0x754   :  { %3454 = vperm.xlu0 %7772, %v3352_v53   ;;  %3419 = vperm.xlu1 %7773, %v3345_v39  }
 0x758   :  { %3474 = vperm.xlu0 %7772, %v3356_v43   ;;  %3187 = vrot.lane.b32.xlu1 %v9578_v21, %s7899_s14 }
 0x75c   :  { %3494 = vperm.xlu0 %7772, %v3360_v59   ;;  %3195 = vrot.lane.b32.xlu1 %v9592_v24, %s7899_s14 }
 0x760   :  { %3514 = vperm.xlu0 %7772, %v3364_v33   ;;  %3203 = vrot.lane.b32.xlu1 %v9598_v23, %s7899_s14 }
 0x764   :  { %3233 = vrot.lane.b32.xlu0 %v9810_v0, %s7899_s14  ;;  %3211 = vrot.lane.b32.xlu1 %v9612_v48, %s7899_s14 }
 0x768   :  { %3399 = vperm.xlu0 %7772, %v3341_v61   ;;  %3219 = vrot.lane.b32.xlu1 %v9618_v45, %s7899_s14  ;;  %v3354_v61 = vld [vmem:[%s11766_s8 + $0x98] sm:$0xff] }
 0x76c   :  { %3179 = vrot.lane.b32.xlu0 %v9565_v13, %s7899_s14  ;;  %3227 = vrot.lane.b32.xlu1 %v9679_v15, %s7899_s14 }
 0x76e   :  { %v3176_v42 = vpop.permute.xlu0 %3175 }
 0x76f   :  { %v3271_v11 = vsel %vm79_vm4, %v3176_v42, 0.0  ;;  %v3358_v42 = vld [vmem:[%s11766_s8 + $0xb8] sm:$0xff] }
 0x770   :  { %v3303_v1 = vmax.f32 %v9556_v58, %v3271_v11  ;;  %3439 = vperm.xlu0 %7772, %v3349_v32   ;;  %3384 = vperm.xlu1 %7773, %v3338_v56   ;;  %v3361_v58 = vld [vmem:[%s11766_s8 + $0xd0] sm:$0xff] }
 0x772   :  { %v3527_v35 = vadd.f32 %v3370_v6, %v3303_v1 }
 0x774   :  { %v3559_v2 = vmax.f32 %v3527_v35, 0.0  ;;  %3459 = vperm.xlu0 %7772, %v3353_v19   ;;  %3424 = vperm.xlu1 %7773, %v3346_v9   ;;  %v3362_v9 = vld [vmem:[%s11766_s8 + $0xd8] sm:$0xff] }
 0x776   :  { %3591 = vst [vmem:[#allocation2] sm:$0xff] %v3559_v2 }
 0x778   :  { %3479 = vperm.xlu0 %7772, %v3357_v5   ;;  %3189 = vrot.lane.b32.xlu1 %v9576_v8, %s7899_s14 }
 0x77a   :  { %v3184_v10 = vpop.permute.xlu1 %3183 }
 0x77b   :  { %v3275_v47 = vsel %vm79_vm4, %v3184_v10, 0.0 }
 0x77c   :  { %v3307_v50 = vmax.f32 %v9572_v46, %v3275_v47  ;;  %3499 = vperm.xlu0 %7772, %v3361_v58   ;;  %3197 = vrot.lane.b32.xlu1 %v9590_v34, %s7899_s14  ;;  %v3342_v46 = vld [vmem:[%s11766_s8 + $0x38] sm:$0xff] }
 0x77e   :  { %v3531_v63 = vadd.f32 %v3390_v57, %v3307_v50 }
 0x780   :  { %v3563_v29 = vmax.f32 %v3531_v63, 0.0  ;;  %3519 = vperm.xlu0 %7772, %v3365_v55   ;;  %3205 = vrot.lane.b32.xlu1 %v9596_v26, %s7899_s14 }
 0x782   :  { %3595 = vst [vmem:[#allocation2 + $0x20] sm:$0xff] %v3563_v29 }
 0x784   :  { %3235 = vrot.lane.b32.xlu0 %v9847_v38, %s7899_s14  ;;  %3213 = vrot.lane.b32.xlu1 %v9608_v22, %s7899_s14 }
 0x786   :  { %v3192_v51 = vpop.permute.xlu1 %3191 }
 0x787   :  { %v3279_v12 = vsel %vm79_vm4, %v3192_v51, 0.0 }
 0x788   :  { %v3311_v62 = vmax.f32 %v9584_v20, %v3279_v12  ;;  %3404 = vperm.xlu0 %7772, %v3342_v46   ;;  %3221 = vrot.lane.b32.xlu1 %v9616_v18, %s7899_s14  ;;  %v3350_v20 = vld [vmem:[%s11766_s8 + $0x78] sm:$0xff] }
 0x789   :  { %v3640_v55 = vld [vmem:[#allocation2 + $0x1] ss:$32 sm:$0x2]  ;;  %v3672_v63 = vld [vmem:[#allocation2 + $0x3] ss:$32 sm:$0x2] }
 0x78a   :  { %v3535_v4 = vadd.f32 %v3410_v27, %v3311_v62  ;;  %v3200_v53 = vpop.permute.xlu1 %3199  ;;  %v3490_v27 = vpop.permute.xlu0 %3489  ;;  %v3624_v46 = vld [vmem:[#allocation2] ss:$32 sm:$0x2]  ;;  %v3656_v51 = vld [vmem:[#allocation2 + $0x2] ss:$32 sm:$0x2] }
 0x78b   :  { %v3283_v39 = vsel %vm79_vm4, %v3200_v53, 0.0  ;;  %v3704_v12 = vld [vmem:[#allocation2 + $0x5] ss:$32 sm:$0x2] }
 0x78c   :  { %v3567_v43 = vmax.f32 %v3535_v4, 0.0  ;;  %v3315_v57 = vmax.f32 %v9586_v60, %v3283_v39  ;;  %3181 = vrot.lane.b32.xlu0 %v9563_v16, %s7899_s14  ;;  %3229 = vrot.lane.b32.xlu1 %v9677_v14, %s7899_s14  ;;  %v3639_v4 = vld [vmem:[#allocation2 + $0x1] ss:$32 sm:$0x1] }
 0x78d   :  { %v3671_v39 = vld [vmem:[#allocation2 + $0x3] ss:$32 sm:$0x1] }
 0x78e   :  { %3599 = vst [vmem:[#allocation2 + $0x40] sm:$0xff] %v3567_v43  ;;  %v3539_v59 = vadd.f32 %v3430_v37, %v3315_v57  ;;  %v3510_v47 = vpop.permute.xlu0 %3509 }
 0x790   :  { %v3571_v33 = vmax.f32 %v3539_v59, 0.0  ;;  %3444 = vperm.xlu0 %7772, %v3350_v20   ;;  %v3623_v20 = vld [vmem:[#allocation2] ss:$32 sm:$0x1] }
 0x792   :  { %3603 = vst [vmem:[#allocation2 + $0x60] sm:$0xff] %v3571_v33  ;;  %v3208_v60 = vpop.permute.xlu1 %3207  ;;  %v3655_v33 = vld [vmem:[#allocation2 + $0x2] ss:$32 sm:$0x1] }
 0x793   :  { %v3287_v32 = vsel %vm79_vm4, %v3208_v60, 0.0  ;;  %v3703_v60 = vld [vmem:[#allocation2 + $0x5] ss:$32 sm:$0x1] }
 0x794   :  { %v3319_v56 = vmax.f32 %v9602_v54, %v3287_v32  ;;  %3464 = vperm.xlu0 %7772, %v3354_v61   ;;  %v3736_v32 = vld [vmem:[#allocation2 + $0x7] ss:$32 sm:$0x2] }
 0x795   :  { %v3642_v53 = vld [vmem:[#allocation2 + $0x1] ss:$32 sm:$0x4]  ;;  %v3674_v43 = vld [vmem:[#allocation2 + $0x3] ss:$32 sm:$0x4] }
 0x796   :  { %v3543_v11 = vadd.f32 %v9894_v44, %v3319_v56  ;;  %v3216_v37 = vpop.permute.xlu1 %3215  ;;  %v3366_v44 = vld [vmem:[%s11766_s8 + $0xf8] sm:$0xff]  ;;  %v3626_v59 = vld [vmem:[#allocation2] ss:$32 sm:$0x4] }
 0x797   :  { %v3291_v6 = vsel %vm79_vm4, %v3216_v37, 0.0  ;;  %v3658_v61 = vld [vmem:[#allocation2 + $0x2] ss:$32 sm:$0x4] }
 0x798   :  { %v3575_v1 = vmax.f32 %v3543_v11, 0.0  ;;  %v3323_v19 = vmax.f32 %v9610_v49, %v3291_v6  ;;  %3484 = vperm.xlu0 %7772, %v3358_v42   ;;  %v3706_v11 = vld [vmem:[#allocation2 + $0x5] ss:$32 sm:$0x4]  ;;  %v3641_v6 = vor.u32 %v3640_v55, %v3639_v4 }
 0x799   :  { %v3644_v56 = vld [vmem:[#allocation2 + $0x1] ss:$32 sm:$0x8]  ;;  %v3676_v42 = vld [vmem:[#allocation2 + $0x3] ss:$32 sm:$0x8] }
 0x79a   :  { %3607 = vst [vmem:[#allocation2 + $0x80] sm:$0xff] %v3575_v1  ;;  %v3547_v54 = vadd.f32 %v9905_v7, %v3323_v19  ;;  %v3673_v1 = vor.u32 %v3672_v63, %v3671_v39  ;;  %v3628_v19 = vld [vmem:[#allocation2] ss:$32 sm:$0x8] }
 0x79c   :  { %v3579_v35 = vmax.f32 %v3547_v54, 0.0  ;;  %3504 = vperm.xlu0 %7772, %v3362_v9   ;;  %v3660_v9 = vld [vmem:[#allocation2 + $0x2] ss:$32 sm:$0x8] }
 0x79d   :  { %v3735_v54 = vld [vmem:[#allocation2 + $0x7] ss:$32 sm:$0x1] }
 0x79e   :  { %3611 = vst [vmem:[#allocation2 + $0xa0] sm:$0xff] %v3579_v35  ;;  %v3224_v2 = vpop.permute.xlu1 %3223  ;;  %v3738_v35 = vld [vmem:[#allocation2 + $0x7] ss:$32 sm:$0x4]  ;;  %v3737_v18 = vor.u32 %v3736_v32, %v3735_v54 }
 0x79f   :  { %v3295_v5 = vsel %vm79_vm4, %v3224_v2, 0.0 }
 0x7a0   :  { %v3327_v49 = vmax.f32 %v9658_v41, %v3295_v5  ;;  %3524 = vperm.xlu0 %7772, %v3366_v44  }
 0x7a1   :  { %v3646_v2 = vld [vmem:[#allocation2 + $0x1] ss:$32 sm:$0x10]  ;;  %v3678_v5 = vld [vmem:[#allocation2 + $0x3] ss:$32 sm:$0x10] }
 0x7a2   :  { %v3551_v58 = vadd.f32 %v3490_v27, %v3327_v49  ;;  %v3657_v49 = vor.u32 %v3656_v51, %v3655_v33  ;;  %v3705_v27 = vor.u32 %v3704_v12, %v3703_v60  ;;  %v3630_v14 = vld [vmem:[#allocation2] ss:$32 sm:$0x10]  ;;  %v3662_v39 = vld [vmem:[#allocation2 + $0x2] ss:$32 sm:$0x10] }
 0x7a3   :  { %v3742_v33 = vld [vmem:[#allocation2 + $0x7] ss:$32 sm:$0x10] }
 0x7a4   :  { %v3583_v10 = vmax.f32 %v3551_v58, 0.0  ;;  %3237 = vrot.lane.b32.xlu0 %v9845_v40, %s7899_s14  ;;  %v3708_v58 = vld [vmem:[#allocation2 + $0x5] ss:$32 sm:$0x8]  ;;  %v3675_v40 = vor.u32 %v3674_v43, %v3673_v1  ;;  %v3659_v4 = vor.u32 %v3658_v61, %v3657_v49  ;;  %v4231_v49 = vld [vmem:[%s11767_s9 + $0x308] sm:$0xff] }
 0x7a5   :  { %v3680_v12 = vld [vmem:[#allocation2 + $0x3] ss:$32 sm:$0x20]  ;;  %v3632_v43 = vld [vmem:[#allocation2] ss:$32 sm:$0x20] }
 0x7a6   :  { %3615 = vst [vmem:[#allocation2 + $0xc0] sm:$0xff] %v3583_v10  ;;  %v3677_v51 = vor.u32 %v3676_v42, %v3675_v40  ;;  %v3664_v1 = vld [vmem:[#allocation2 + $0x2] ss:$32 sm:$0x20]  ;;  %v3739_v40 = vor.u32 %v3738_v35, %v3737_v18 }
 0x7a7   :  { %v3712_v42 = vld [vmem:[#allocation2 + $0x5] ss:$32 sm:$0x20] }
 0x7ad   :  { %v3650_v32 = vld [vmem:[#allocation2 + $0x1] ss:$32 sm:$0x40]  ;;  %v3634_v35 = vld [vmem:[#allocation2] ss:$32 sm:$0x40] }
 0x7af   :  { %v9984_v7 = vpop.permute.xlu1 %3374 }
 0x7b3   :  { %v3415_v50 = vpop.permute.xlu1 %3414 }
 0x7b6   :  { %v3232_v29 = vpop.permute.xlu0 %3231 }
 0x7b7   :  { %v3299_v41 = vsel %vm79_vm4, %v3232_v29, 0.0  ;;  %v9987_v62 = vpop.permute.xlu1 %3185 }
 0x7b8   :  { %v3331_v57 = vmax.f32 %v9812_v31, %v3299_v41  ;;  %v3625_v31 = vor.u32 %v3624_v46, %v3623_v20  ;;  %v3643_v41 = vor.u32 %v3642_v53, %v3641_v6  ;;  %v3648_v46 = vld [vmem:[#allocation2 + $0x1] ss:$32 sm:$0x20]  ;;  %v3707_v20 = vor.u32 %v3706_v11, %v3705_v27  ;;  %v3744_v11 = vld [vmem:[#allocation2 + $0x7] ss:$32 sm:$0x20] }
 0x7b9   :  { %v3661_v6 = vor.u32 %v3660_v9, %v3659_v4  ;;  %v3682_v9 = vld [vmem:[#allocation2 + $0x3] ss:$32 sm:$0x40] }
 0x7ba   :  { %v3555_v37 = vadd.f32 %v3510_v47, %v3331_v57  ;;  %v3740_v47 = vld [vmem:[#allocation2 + $0x7] ss:$32 sm:$0x8]  ;;  %v3627_v63 = vor.u32 %v3626_v59, %v3625_v31  ;;  %v3710_v57 = vld [vmem:[#allocation2 + $0x5] ss:$32 sm:$0x10]  ;;  %v3645_v22 = vor.u32 %v3644_v56, %v3643_v41  ;;  %v3709_v56 = vor.u32 %v3708_v58, %v3707_v20 }
 0x7bb   :  { %v3194_v44 = vpop.permute.xlu1 %3193  ;;  %v10002_v59 = vld [vmem:[%s11767_s9 + $0x208] sm:$0xff]  ;;  %v4230_v31 = vld [vmem:[%s11767_s9 + $0x300] sm:$0xff]  ;;  %v3741_v27 = vor.u32 %v3740_v47, %v3739_v40  ;;  %v3276_v58 = vsel %vm79_vm4, %v9987_v62, 0.0  ;;  %v10022_v47 = vld [vmem:[%s11767_s9 + $0x298] sm:$0xff] }
 0x7bc   :  { %v3587_v10 = vmax.f32 %v3555_v37, 0.0  ;;  %v3280_v29 = vsel %vm79_vm4, %v3194_v44, 0.0  ;;  %v3629_v53 = vor.u32 %v3628_v19, %v3627_v63  ;;  %v3647_v61 = vor.u32 %v3646_v2, %v3645_v22  ;;  %v3666_v2 = vld [vmem:[#allocation2 + $0x2] ss:$32 sm:$0x40]  ;;  %v10027_v62 = vld [vmem:[%s11767_s9 + $0x390] sm:$0xff] }
 0x7bd   :  { %v3312_v55 = vmax.f32 %v9580_v52, %v3280_v29  ;;  %v9997_v52 = vld [vmem:[%s11767_s9 + $0x200] sm:$0xff]  ;;  %v3663_v44 = vor.u32 %v3662_v39, %v3661_v6  ;;  %v3743_v41 = vor.u32 %v3742_v33, %v3741_v27  ;;  %v10032_v63 = vld [vmem:[%s11767_s9 + $0x398] sm:$0xff]  ;;  %v4200_v6 = vld [vmem:[%s11767_s9 + $0x210] sm:$0xff]  ;;  %v3308_v40 = vmax.f32 %v9570_v25, %v3276_v58 }
 0x7be   :  { %3619 = vst [vmem:[#allocation2 + $0xe0] sm:$0xff] %v3587_v10  ;;  %v3631_v54 = vor.u32 %v3630_v14, %v3629_v53  ;;  %v3649_v18 = vor.u32 %v3648_v46, %v3647_v61  ;;  %v3714_v46 = vld [vmem:[#allocation2 + $0x5] ss:$32 sm:$0x40]  ;;  %v4251_v58 = vld [vmem:[%s11767_s9 + $0x3a8] sm:$0xff] }
 0x7bf   :  { %v3536_v60 = vadd.f32 %v3415_v50, %v3312_v55  ;;  %v9992_v37 = vpop.permute.xlu1 %3201  ;;  %v3679_v50 = vor.u32 %v3678_v5, %v3677_v51  ;;  %v3711_v5 = vor.u32 %v3710_v57, %v3709_v56  ;;  %v3665_v29 = vor.u32 %v3664_v1, %v3663_v44  ;;  %v10017_v55 = vld [vmem:[%s11767_s9 + $0x290] sm:$0xff]  ;;  %v3746_v51 = vld [vmem:[#allocation2 + $0x7] ss:$32 sm:$0x40]  ;;  %v4201_v1 = vld [vmem:[%s11767_s9 + $0x218] sm:$0xff] }
 0x7c0   :  { %v3633_v10 = vor.u32 %v3632_v43, %v3631_v54  ;;  %v3651_v4 = vor.u32 %v3650_v32, %v3649_v18  ;;  %v7290_v57 = vpack.c.bf16 %v10002_v59, %v9997_v52  ;;  %v3745_v43 = vor.u32 %v3744_v11, %v3743_v41  ;;  %v4232_v52 = vld [vmem:[%s11767_s9 + $0x310] sm:$0xff]  ;;  %v4233_v59 = vld [vmem:[%s11767_s9 + $0x318] sm:$0xff]  ;;  %v4218_v11 = vld [vmem:[%s11767_s9 + $0x2a0] sm:$0xff] }
 0x7c1   :  { %v3568_v19 = vmax.f32 %v3536_v60, 0.0  ;;  %v3681_v22 = vor.u32 %v3680_v12, %v3679_v50  ;;  %v3667_v60 = vor.u32 %v3666_v2, %v3665_v29  ;;  %v3713_v53 = vor.u32 %v3712_v42, %v3711_v5  ;;  %v4250_v5 = vld [vmem:[%s11767_s9 + $0x3a0] sm:$0xff] }
 0x7c2   :  { %v3635_v33 = vor.u32 %v3634_v35, %v3633_v10  ;;  %v7322_v42 = vpack.c.bf16 %v4231_v49, %v4230_v31  ;;  %v7292_v25 = vpack.c.bf16 %v10022_v47, %v10017_v55  ;;  %v7324_v31 = vpack.c.bf16 %v10032_v63, %v10027_v62  ;;  %v4219_v49 = vld [vmem:[%s11767_s9 + $0x2a8] sm:$0xff]  ;;  %v4202_v62 = vld [vmem:[%s11767_s9 + $0x220] sm:$0xff] }
 0x7c3   :  { %3600 = vst [vmem:[#allocation2 + $0x48] sm:$0xff] %v3568_v19  ;;  %v10012_v14 = vpop.permute.xlu1 %3209  ;;  %v3683_v39 = vor.u32 %v3682_v9, %v3681_v22  ;;  %v3715_v27 = vor.u32 %v3714_v46, %v3713_v53  ;;  %v3747_v22 = vor.u32 %v3746_v51, %v3745_v43  ;;  %v7294_v55 = vpack.c.bf16 %v4201_v1, %v4200_v6  ;;  %v4203_v63 = vld [vmem:[%s11767_s9 + $0x228] sm:$0xff]  ;;  %v4252_v53 = vld [vmem:[%s11767_s9 + $0x3b0] sm:$0xff]  ;;  %v4253_v43 = vld [vmem:[%s11767_s9 + $0x3b8] sm:$0xff] }
 0x7c4   :  { %v7326_v47 = vpack.c.bf16 %v4233_v59, %v4232_v52  ;;  %v7328_v51 = vpack.c.bf16 %v4251_v58, %v4250_v5  ;;  %v7298_v52 = vpack.c.bf16 %v4203_v63, %v4202_v62  ;;  %v4225_v62 = vld [vmem:[%s11767_s9 + $0x2d8] sm:$0xff]  ;;  %v4256_v63 = vld [vmem:[%s11767_s9 + $0x3d0] sm:$0xff] }
 0x7c5   :  { %v3652_v12 = vld [vmem:[#allocation2 + $0x1] ss:$32 sm:$0x80]  ;;  %v3684_v20 = vld [vmem:[#allocation2 + $0x3] ss:$32 sm:$0x80] }
 0x7c6   :  { %v3653_v61 = vor.u32 %v3652_v12, %v3651_v4  ;;  %v3685_v32 = vor.u32 %v3684_v20, %v3683_v39  ;;  %v3636_v50 = vld [vmem:[#allocation2] ss:$32 sm:$0x80]  ;;  %v3668_v56 = vld [vmem:[#allocation2 + $0x2] ss:$32 sm:$0x80] }
 0x7c7   :  { %v3395_v19 = vpop.permute.xlu0 %3394  ;;  %v10052_v9 = vpop.permute.xlu1 %3217  ;;  %v3637_v54 = vor.u32 %v3636_v50, %v3635_v33  ;;  %v3669_v44 = vor.u32 %v3668_v56, %v3667_v60  ;;  %v3716_v18 = vld [vmem:[#allocation2 + $0x5] ss:$32 sm:$0x80]  ;;  %v3748_v35 = vld [vmem:[#allocation2 + $0x7] ss:$32 sm:$0x80] }
 0x7c8   :  { %v3532_v2 = vadd.f32 %v3395_v19, %v3308_v40  ;;  %4717 = vmatprep.mubr.f32.mxu0 %v3653_v61  ;;  %4787 = vmatprep.mubr.f32.mxu1 %v3685_v32  ;;  %v3717_v10 = vor.u32 %v3716_v18, %v3715_v27  ;;  %v3749_v29 = vor.u32 %v3748_v35, %v3747_v22  ;;  %v3284_v4 = vsel %vm79_vm4, %v9992_v37, 0.0  ;;  %v4234_v12 = vld [vmem:[%s11767_s9 + $0x320] sm:$0xff]  ;;  %v4235_v20 = vld [vmem:[%s11767_s9 + $0x328] sm:$0xff]  ;;  %v4220_v33 = vld [vmem:[%s11767_s9 + $0x2b0] sm:$0xff] }
 0x7c9   :  { %4718 = vmatmul.mubr.f32.vlgmr.msra.gmra.mrb[52].mxu0 %v3637_v54  ;;  %4788 = vmatmul.mubr.f32.vlgmr.msra.gmra.mrb[92].mxu1 %v3669_v44  ;;  %v4221_v60 = vld [vmem:[%s11767_s9 + $0x2b8] sm:$0xff]  ;;  %v3316_v1 = vmax.f32 %v9582_v36, %v3284_v4  ;;  %v7330_v59 = vpack.c.bf16 %v4235_v20, %v4234_v12  ;;  %v4204_v40 = vld [vmem:[%s11767_s9 + $0x230] sm:$0xff]  ;;  %v3288_v32 = vsel %vm79_vm4, %v10012_v14, 0.0  ;;  %v4222_v14 = vld [vmem:[%s11767_s9 + $0x2c0] sm:$0xff]  ;;  %v3292_v5 = vsel %vm79_vm4, %v10052_v9, 0.0 }
 0x7ca   :  { %v3564_v41 = vmax.f32 %v3532_v2, 0.0  ;;  %7291 = vmatpush3.bf16.msra.mxu0 %v7290_v57  ;;  %7323 = vmatpush3.bf16.msra.mxu1 %v7322_v42  ;;  %v7296_v57 = vpack.c.bf16 %v4219_v49, %v4218_v11  ;;  %v4205_v61 = vld [vmem:[%s11767_s9 + $0x238] sm:$0xff]  ;;  %v7300_v36 = vpack.c.bf16 %v4221_v60, %v4220_v33  ;;  %v7332_v42 = vpack.c.bf16 %v4253_v43, %v4252_v53  ;;  %v4236_v11 = vld [vmem:[%s11767_s9 + $0x330] sm:$0xff]  ;;  %v4223_v54 = vld [vmem:[%s11767_s9 + $0x2c8] sm:$0xff] }
 0x7cb   :  { %4857 = vmatprep.mubr.f32.mxu0 %v3717_v10  ;;  %4927 = vmatprep.mubr.f32.mxu1 %v3749_v29  ;;  %v3178_v39 = vpop.permute.xlu0 %3177  ;;  %v10075_v46 = vpop.permute.xlu1 %3225  ;;  %v4237_v19 = vld [vmem:[%s11767_s9 + $0x338] sm:$0xff]  ;;  %v4254_v44 = vld [vmem:[%s11767_s9 + $0x3c0] sm:$0xff]  ;;  %v4255_v27 = vld [vmem:[%s11767_s9 + $0x3c8] sm:$0xff]  ;;  %v3320_v22 = vmax.f32 %v9600_v3, %v3288_v32  ;;  %v7302_v2 = vpack.c.bf16 %v4205_v61, %v4204_v40  ;;  %v7304_v3 = vpack.c.bf16 %v4223_v54, %v4222_v14 }
 0x7cc   :  { %3596 = vst [vmem:[#allocation2 + $0x28] sm:$0xff] %v3564_v41  ;;  %v3272_v37 = vsel %vm79_vm4, %v3178_v39, 0.0  ;;  %7293 = vmatprep.subr.bf16.mxu0 %v7292_v25  ;;  %7325 = vmatprep.subr.bf16.mxu1 %v7324_v31  ;;  %v7334_v25 = vpack.c.bf16 %v4237_v19, %v4236_v11  ;;  %v4206_v31 = vld [vmem:[%s11767_s9 + $0x240] sm:$0xff]  ;;  %v4207_v49 = vld [vmem:[%s11767_s9 + $0x248] sm:$0xff]  ;;  %v7336_v29 = vpack.c.bf16 %v4255_v27, %v4254_v44  ;;  %v4224_v9 = vld [vmem:[%s11767_s9 + $0x2d0] sm:$0xff] }
 0x7cd   :  { %v3304_v6 = vmax.f32 %v9554_v17, %v3272_v37  ;;  %v4238_v41 = vld [vmem:[%s11767_s9 + $0x340] sm:$0xff]  ;;  %v4257_v4 = vld [vmem:[%s11767_s9 + $0x3d8] sm:$0xff]  ;;  %v10159_v39 = vld [vmem:[%s11767_s9 + $0x250] sm:$0xff]  ;;  %v3324_v12 = vmax.f32 %v9606_v28, %v3292_v5  ;;  %v7306_v33 = vpack.c.bf16 %v4207_v49, %v4206_v31  ;;  %v3296_v28 = vsel %vm79_vm4, %v10075_v46, 0.0 }
 0x7ce   :  { %7295 = vmatpush3.bf16.msra.mxu0 %v7294_v55  ;;  %7327 = vmatpush3.bf16.msra.mxu1 %v7326_v47  ;;  %v4239_v55 = vld [vmem:[%s11767_s9 + $0x348] sm:$0xff]  ;;  %v10175_v60 = vld [vmem:[%s11767_s9 + $0x358] sm:$0xff]  ;;  %v10180_v53 = vld [vmem:[%s11767_s9 + $0x2e0] sm:$0xff] }
 0x7cf   :  { %v3528_v50 = vadd.f32 %v9984_v7, %v3304_v6  ;;  %v3435_v17 = vpop.permute.xlu0 %3434  ;;  %v10107_v56 = vpop.permute.xlu1 %3379  ;;  %7297 = vmatprep.subr.bf16.mxu0 %v7296_v57  ;;  %7329 = vmatprep.subr.bf16.mxu1 %v7328_v51  ;;  %v10164_v57 = vld [vmem:[%s11767_s9 + $0x258] sm:$0xff]  ;;  %v10169_v51 = vld [vmem:[%s11767_s9 + $0x350] sm:$0xff]  ;;  %v7338_v37 = vpack.c.bf16 %v4239_v55, %v4238_v41  ;;  %v10185_v43 = vld [vmem:[%s11767_s9 + $0x2e8] sm:$0xff] }
 0x7d0   :  { %v3540_v7 = vadd.f32 %v3435_v17, %v3316_v1  ;;  %v10194_v40 = vld [vmem:[%s11767_s9 + $0x3e0] sm:$0xff]  ;;  %v10199_v61 = vld [vmem:[%s11767_s9 + $0x3e8] sm:$0xff]  ;;  %v10226_v54 = vld [vmem:[%s11767_s9 + $0x2f0] sm:$0xff] }
 0x7d1   :  { %v3560_v18 = vmax.f32 %v3528_v50, 0.0  ;;  %v3687_v32 = vld [vmem:[#allocation2 + $0x4] ss:$32 sm:$0x1]  ;;  %v10219_v11 = vld [vmem:[%s11767_s9 + $0x368] sm:$0xff]  ;;  %v10231_v44 = vld [vmem:[%s11767_s9 + $0x2f8] sm:$0xff] }
 0x7d2   :  { %v3572_v35 = vmax.f32 %v3540_v7, 0.0  ;;  %7299 = vmatpush3.bf16.msra.mxu0 %v7298_v52  ;;  %7331 = vmatpush3.bf16.msra.mxu1 %v7330_v59  ;;  %v7308_v52 = vpack.c.bf16 %v4225_v62, %v4224_v9  ;;  %v7340_v59 = vpack.c.bf16 %v4257_v4, %v4256_v63  ;;  %v3688_v50 = vld [vmem:[#allocation2 + $0x4] ss:$32 sm:$0x2]  ;;  %v7310_v7 = vpack.c.bf16 %v10164_v57, %v10159_v39  ;;  %v10244_v31 = vld [vmem:[%s11767_s9 + $0x3f8] sm:$0xff]  ;;  %v10254_v63 = vld [vmem:[%s11767_s9 + $0x270] sm:$0xff] }
 0x7d3   :  { %3592 = vst [vmem:[#allocation2 + $0x8] sm:$0xff] %v3560_v18  ;;  %v3455_v58 = vpop.permute.xlu0 %3454  ;;  %v10136_v10 = vpop.permute.xlu1 %3419  ;;  %7301 = vmatprep.subr.bf16.mxu0 %v7300_v36  ;;  %7333 = vmatprep.subr.bf16.mxu1 %v7332_v42  ;;  %v10204_v17 = vld [vmem:[%s11767_s9 + $0x260] sm:$0xff]  ;;  %v10209_v36 = vld [vmem:[%s11767_s9 + $0x268] sm:$0xff]  ;;  %v3689_v49 = vor.u32 %v3688_v50, %v3687_v32  ;;  %v10259_v4 = vld [vmem:[%s11767_s9 + $0x278] sm:$0xff] }
 0x7d4   :  { %3604 = vst [vmem:[#allocation2 + $0x68] sm:$0xff] %v3572_v35  ;;  %v3544_v47 = vadd.f32 %v3455_v58, %v3320_v22  ;;  %v10214_v42 = vld [vmem:[%s11767_s9 + $0x360] sm:$0xff]  ;;  %v3328_v22 = vmax.f32 %v9647_v30, %v3296_v28  ;;  %v10298_v32 = vld [vmem:[%s11767_s9 + $0x588] sm:$0xff] }
 0x7d5   :  { %v3719_v19 = vld [vmem:[#allocation2 + $0x6] ss:$32 sm:$0x1]  ;;  %v3690_v27 = vld [vmem:[#allocation2 + $0x4] ss:$32 sm:$0x4] }
 0x7d6   :  { %v3576_v20 = vmax.f32 %v3544_v47, 0.0  ;;  %7303 = vmatpush3.bf16.msra.mxu0 %v7302_v2  ;;  %7335 = vmatpush3.bf16.msra.mxu1 %v7334_v25  ;;  %v3720_v14 = vld [vmem:[#allocation2 + $0x6] ss:$32 sm:$0x2]  ;;  %v7342_v2 = vpack.c.bf16 %v10175_v60, %v10169_v51  ;;  %v10239_v25 = vld [vmem:[%s11767_s9 + $0x3f0] sm:$0xff]  ;;  %v3691_v39 = vor.u32 %v3690_v27, %v3689_v49 }
 0x7d7   :  { %v3475_v6 = vpop.permute.xlu0 %3474  ;;  %v10189_v1 = vpop.permute.xlu1 %3187  ;;  %7305 = vmatprep.subr.bf16.mxu0 %v7304_v3  ;;  %7337 = vmatprep.subr.bf16.mxu1 %v7336_v29  ;;  %v3692_v18 = vld [vmem:[#allocation2 + $0x4] ss:$32 sm:$0x8]  ;;  %v3722_v5 = vld [vmem:[#allocation2 + $0x6] ss:$32 sm:$0x4]  ;;  %v7312_v3 = vpack.c.bf16 %v10185_v43, %v10180_v53  ;;  %v7344_v29 = vpack.c.bf16 %v10199_v61, %v10194_v40  ;;  %v3721_v55 = vor.u32 %v3720_v14, %v3719_v19 }
 0x7d8   :  { %3608 = vst [vmem:[#allocation2 + $0x88] sm:$0xff] %v3576_v20  ;;  %v3548_v46 = vadd.f32 %v3475_v6, %v3324_v12  ;;  %v3694_v41 = vld [vmem:[#allocation2 + $0x4] ss:$32 sm:$0x10]  ;;  %v7314_v12 = vpack.c.bf16 %v10209_v36, %v10204_v17  ;;  %v7346_v20 = vpack.c.bf16 %v10219_v11, %v10214_v42  ;;  %v10284_v43 = vld [vmem:[%s11767_s9 + $0x488] sm:$0xff]  ;;  %v3693_v40 = vor.u32 %v3692_v18, %v3691_v39  ;;  %v4312_v39 = vld [vmem:[%s11767_s9 + $0x590] sm:$0xff] }
 0x7d9   :  { %v3724_v9 = vld [vmem:[#allocation2 + $0x6] ss:$32 sm:$0x8]  ;;  %v3723_v60 = vor.u32 %v3722_v5, %v3721_v55  ;;  %v3768_v50 = vld [vmem:[#allocation2 + $0x9] ss:$32 sm:$0x2] }
 0x7da   :  { %v3580_v35 = vmax.f32 %v3548_v46, 0.0  ;;  %7307 = vmatpush3.bf16.msra.mxu0 %v7306_v33  ;;  %7339 = vmatpush3.bf16.msra.mxu1 %v7338_v37  ;;  %v3767_v57 = vld [vmem:[#allocation2 + $0x9] ss:$32 sm:$0x1]  ;;  %v10269_v33 = vld [vmem:[%s11767_s9 + $0x370] sm:$0xff]  ;;  %v10274_v37 = vld [vmem:[%s11767_s9 + $0x378] sm:$0xff] }
 0x7db   :  { %v3495_v58 = vpop.permute.xlu0 %3494  ;;  %v3196_v30 = vpop.permute.xlu1 %3195  ;;  %7309 = vmatprep.subr.bf16.mxu0 %v7308_v52  ;;  %7341 = vmatprep.subr.bf16.mxu1 %v7340_v59  ;;  %v3726_v53 = vld [vmem:[#allocation2 + $0x6] ss:$32 sm:$0x10]  ;;  %v3799_v28 = vld [vmem:[#allocation2 + $0xb] ss:$32 sm:$0x1]  ;;  %v7316_v52 = vpack.c.bf16 %v10231_v44, %v10226_v54  ;;  %v7348_v59 = vpack.c.bf16 %v10244_v31, %v10239_v25  ;;  %v3725_v11 = vor.u32 %v3724_v9, %v3723_v60 }
 0x7dc   :  { %3612 = vst [vmem:[#allocation2 + $0xa8] sm:$0xff] %v3580_v35  ;;  %v3552_v47 = vadd.f32 %v3495_v58, %v3328_v22  ;;  %v3281_v62 = vsel %vm79_vm4, %v3196_v30, 0.0  ;;  %v10293_v61 = vld [vmem:[%s11767_s9 + $0x580] sm:$0xff]  ;;  %v10311_v14 = vld [vmem:[%s11767_s9 + $0x408] sm:$0xff]  ;;  %v7318_v25 = vpack.c.bf16 %v10259_v4, %v10254_v63  ;;  %v10328_v5 = vld [vmem:[%s11767_s9 + $0x490] sm:$0xff]  ;;  %v7350_v30 = vpack.c.bf16 %v10274_v37, %v10269_v33 }
 0x7dd   :  { %v3313_v51 = vmax.f32 %v9592_v24, %v3281_v62  ;;  %v10279_v24 = vld [vmem:[%s11767_s9 + $0x480] sm:$0xff]  ;;  %v3800_v54 = vld [vmem:[#allocation2 + $0xb] ss:$32 sm:$0x2]  ;;  %v3727_v31 = vor.u32 %v3726_v53, %v3725_v11  ;;  %v10333_v58 = vld [vmem:[%s11767_s9 + $0x498] sm:$0xff]  ;;  %v3277_v9 = vsel %vm79_vm4, %v10189_v1, 0.0  ;;  %v7384_v4 = vpack.c.bf16 %v10298_v32, %v10293_v61 }
 0x7de   :  { %v3584_v6 = vmax.f32 %v3552_v47, 0.0  ;;  %7311 = vmatpush3.bf16.msra.mxu0 %v7310_v7  ;;  %7343 = vmatpush3.bf16.msra.mxu1 %v7342_v2  ;;  %v3696_v42 = vld [vmem:[#allocation2 + $0x4] ss:$32 sm:$0x20]  ;;  %v3769_v7 = vor.u32 %v3768_v50, %v3767_v57  ;;  %v10321_v22 = vld [vmem:[%s11767_s9 + $0x508] sm:$0xff]  ;;  %v3801_v35 = vor.u32 %v3800_v54, %v3799_v28  ;;  %v4313_v57 = vld [vmem:[%s11767_s9 + $0x598] sm:$0xff]  ;;  %v7356_v28 = vpack.c.bf16 %v10333_v58, %v10328_v5 }
 0x7df   :  { %v3537_v46 = vadd.f32 %v10136_v10, %v3313_v51  ;;  %v3515_v17 = vpop.permute.xlu0 %3514  ;;  %v10301_v36 = vpop.permute.xlu1 %3203  ;;  %7313 = vmatprep.subr.bf16.mxu0 %v7312_v3  ;;  %7345 = vmatprep.subr.bf16.mxu1 %v7344_v29  ;;  %v10306_v19 = vld [vmem:[%s11767_s9 + $0x400] sm:$0xff]  ;;  %v3695_v10 = vor.u32 %v3694_v41, %v3693_v40  ;;  %v7352_v41 = vpack.c.bf16 %v10284_v43, %v10279_v24  ;;  %v3770_v55 = vld [vmem:[#allocation2 + $0x9] ss:$32 sm:$0x4]  ;;  %v4296_v61 = vld [vmem:[%s11767_s9 + $0x510] sm:$0xff] }
 0x7e0   :  { %3616 = vst [vmem:[#allocation2 + $0xc8] sm:$0xff] %v3584_v6  ;;  %v3698_v44 = vld [vmem:[#allocation2 + $0x4] ss:$32 sm:$0x40]  ;;  %v3771_v51 = vor.u32 %v3770_v55, %v3769_v7  ;;  %v7354_v37 = vpack.c.bf16 %v10311_v14, %v10306_v19  ;;  %v10362_v6 = vld [vmem:[%s11767_s9 + $0x410] sm:$0xff]  ;;  %v7388_v40 = vpack.c.bf16 %v4313_v57, %v4312_v39  ;;  %v4297_v32 = vld [vmem:[%s11767_s9 + $0x518] sm:$0xff] }
 0x7e1   :  { %v3728_v27 = vld [vmem:[#allocation2 + $0x6] ss:$32 sm:$0x20]  ;;  %v3569_v2 = vmax.f32 %v3537_v46, 0.0  ;;  %v3697_v3 = vor.u32 %v3696_v42, %v3695_v10  ;;  %v4283_v14 = vld [vmem:[%s11767_s9 + $0x4a8] sm:$0xff]  ;;  %v7390_v5 = vpack.c.bf16 %v4297_v32, %v4296_v61 }
 0x7e2   :  { %v10316_v18 = vld [vmem:[%s11767_s9 + $0x500] sm:$0xff]  ;;  %7315 = vmatpush3.bf16.msra.mxu0 %v7314_v12  ;;  %7347 = vmatpush3.bf16.msra.mxu1 %v7346_v20  ;;  %v3729_v63 = vor.u32 %v3728_v27, %v3727_v31  ;;  %v3802_v1 = vld [vmem:[#allocation2 + $0xb] ss:$32 sm:$0x4] }
 0x7e3   :  { %v3730_v49 = vld [vmem:[#allocation2 + $0x6] ss:$32 sm:$0x40]  ;;  %v3700_v29 = vld [vmem:[#allocation2 + $0x4] ss:$32 sm:$0x80]  ;;  %v3234_v47 = vpop.permute.xlu0 %3233  ;;  %v10341_v62 = vpop.permute.xlu1 %3211  ;;  %7317 = vmatprep.subr.bf16.mxu0 %v7316_v52  ;;  %7349 = vmatprep.subr.bf16.mxu1 %v7348_v59  ;;  %v3699_v20 = vor.u32 %v3698_v44, %v3697_v3  ;;  %v3803_v60 = vor.u32 %v3802_v1, %v3801_v35  ;;  %v7386_v43 = vpack.c.bf16 %v10321_v22, %v10316_v18 }
 0x7e4   :  { %3601 = vst [vmem:[#allocation2 + $0x50] sm:$0xff] %v3569_v2  ;;  %v3300_v12 = vsel %vm79_vm4, %v3234_v47, 0.0  ;;  %v3732_v33 = vld [vmem:[#allocation2 + $0x6] ss:$32 sm:$0x80]  ;;  %v3731_v24 = vor.u32 %v3730_v49, %v3729_v63  ;;  %v4265_v52 = vld [vmem:[%s11767_s9 + $0x418] sm:$0xff]  ;;  %v3309_v59 = vmax.f32 %v9578_v21, %v3277_v9 }
 0x7e5   :  { %v3332_v53 = vmax.f32 %v9810_v0, %v3300_v12  ;;  %v3701_v0 = vor.u32 %v3700_v29, %v3699_v20  ;;  %v3772_v50 = vld [vmem:[#allocation2 + $0x9] ss:$32 sm:$0x8]  ;;  %v4282_v21 = vld [vmem:[%s11767_s9 + $0x4a0] sm:$0xff]  ;;  %v7358_v49 = vpack.c.bf16 %v4265_v52, %v10362_v6  ;;  %v10412_v3 = vld [vmem:[%s11767_s9 + $0x4b0] sm:$0xff]  ;;  %v3285_v29 = vsel %vm79_vm4, %v10301_v36, 0.0 }
 0x7e6   :  { %7319 = vmatpush3.bf16.msra.mxu0 %v7318_v25  ;;  %7351 = vmatpush3.bf16.msra.mxu1 %v7350_v30  ;;  %v3733_v19 = vor.u32 %v3732_v33, %v3731_v24  ;;  %v3773_v7 = vor.u32 %v3772_v50, %v3771_v51  ;;  %v3804_v54 = vld [vmem:[#allocation2 + $0xb] ss:$32 sm:$0x8]  ;;  %v3774_v27 = vld [vmem:[#allocation2 + $0x9] ss:$32 sm:$0x10]  ;;  %v7360_v9 = vpack.c.bf16 %v4283_v14, %v4282_v21 }
 0x7e7   :  { %v3556_v46 = vadd.f32 %v3515_v17, %v3332_v53  ;;  %v3400_v42 = vpop.permute.xlu0 %3399  ;;  %v10374_v11 = vpop.permute.xlu1 %3219  ;;  %7353 = vmatprep.subr.bf16.mxu0 %v7352_v41  ;;  %7385 = vmatprep.subr.bf16.mxu1 %v7384_v4  ;;  %v4314_v17 = vld [vmem:[%s11767_s9 + $0x5a0] sm:$0xff]  ;;  %v4315_v44 = vld [vmem:[%s11767_s9 + $0x5a8] sm:$0xff]  ;;  %v3805_v18 = vor.u32 %v3804_v54, %v3803_v60  ;;  %v10421_v63 = vld [vmem:[%s11767_s9 + $0x4b8] sm:$0xff] }
 0x7e8   :  { %v3533_v10 = vadd.f32 %v3400_v42, %v3309_v59  ;;  %v10391_v35 = vld [vmem:[%s11767_s9 + $0x420] sm:$0xff]  ;;  %v10396_v2 = vld [vmem:[%s11767_s9 + $0x428] sm:$0xff]  ;;  %v7392_v47 = vpack.c.bf16 %v4315_v44, %v4314_v17  ;;  %v10426_v4 = vld [vmem:[%s11767_s9 + $0x5b0] sm:$0xff]  ;;  %v3775_v39 = vor.u32 %v3774_v27, %v3773_v7 }
 0x7e9   :  { %v3588_v22 = vmax.f32 %v3556_v46, 0.0  ;;  %4858 = vmatmul.mubr.f32.vlgmr.msra.gmra.mrb[54].mxu0 %v3701_v0  ;;  %4928 = vmatmul.mubr.f32.vlgmr.msra.gmra.mrb[94].mxu1 %v3733_v19  ;;  %v3806_v25 = vld [vmem:[#allocation2 + $0xb] ss:$32 sm:$0x10]  ;;  %v10402_v58 = vld [vmem:[%s11767_s9 + $0x520] sm:$0xff]  ;;  %v10431_v36 = vld [vmem:[%s11767_s9 + $0x5b8] sm:$0xff] }
 0x7ea   :  { %v3565_v31 = vmax.f32 %v3533_v10, 0.0  ;;  %7355 = vmatpush3.bf16.msra.mxu0 %v7354_v37  ;;  %7387 = vmatpush3.bf16.msra.mxu1 %v7386_v43  ;;  %v10407_v30 = vld [vmem:[%s11767_s9 + $0x528] sm:$0xff]  ;;  %v10437_v51 = vld [vmem:[%s11767_s9 + $0x430] sm:$0xff]  ;;  %v10442_v1 = vld [vmem:[%s11767_s9 + $0x438] sm:$0xff]  ;;  %v3807_v20 = vor.u32 %v3806_v25, %v3805_v18  ;;  %v7362_v37 = vpack.c.bf16 %v10396_v2, %v10391_v35  ;;  %v3317_v43 = vmax.f32 %v9598_v23, %v3285_v29 }
 0x7eb   :  { %3620 = vst [vmem:[#allocation2 + $0xe8] sm:$0xff] %v3588_v22  ;;  %v3180_v41 = vpop.permute.xlu0 %3179  ;;  %v10416_v55 = vpop.permute.xlu1 %3227  ;;  %7357 = vmatprep.subr.bf16.mxu0 %v7356_v28  ;;  %7389 = vmatprep.subr.bf16.mxu1 %v7388_v40  ;;  %v3776_v12 = vld [vmem:[#allocation2 + $0x9] ss:$32 sm:$0x20]  ;;  %v10450_v60 = vld [vmem:[%s11767_s9 + $0x530] sm:$0xff]  ;;  %v10455_v53 = vld [vmem:[%s11767_s9 + $0x538] sm:$0xff]  ;;  %v7364_v28 = vpack.c.bf16 %v10421_v63, %v10412_v3  ;;  %v7396_v50 = vpack.c.bf16 %v10431_v36, %v10426_v4 }
 0x7ec   :  { %3597 = vst [vmem:[#allocation2 + $0x30] sm:$0xff] %v3565_v31  ;;  %v3273_v57 = vsel %vm79_vm4, %v3180_v41, 0.0  ;;  %v3808_v24 = vld [vmem:[#allocation2 + $0xb] ss:$32 sm:$0x20]  ;;  %v10465_v52 = vld [vmem:[%s11767_s9 + $0x4c0] sm:$0xff]  ;;  %v3777_v46 = vor.u32 %v3776_v12, %v3775_v39  ;;  %v7366_v18 = vpack.c.bf16 %v10442_v1, %v10437_v51  ;;  %v7398_v35 = vpack.c.bf16 %v10455_v53, %v10450_v60 }
 0x7ed   :  { %v3305_v33 = vmax.f32 %v9565_v13, %v3273_v57  ;;  %v7394_v13 = vpack.c.bf16 %v10407_v30, %v10402_v58  ;;  %v3778_v6 = vld [vmem:[#allocation2 + $0x9] ss:$32 sm:$0x40]  ;;  %v10472_v23 = vld [vmem:[#allocation2 + $0x8] ss:$32 sm:$0x1]  ;;  %v3809_v14 = vor.u32 %v3808_v24, %v3807_v20 }
 0x7ee   :  { %7359 = vmatpush3.bf16.msra.mxu0 %v7358_v49  ;;  %7391 = vmatpush3.bf16.msra.mxu1 %v7390_v5  ;;  %v10470_v59 = vld [vmem:[%s11767_s9 + $0x4c8] sm:$0xff]  ;;  %v3289_v0 = vsel %vm79_vm4, %v10341_v62, 0.0  ;;  %v10484_v19 = vld [vmem:[%s11767_s9 + $0x5c0] sm:$0xff]  ;;  %v3779_v22 = vor.u32 %v3778_v6, %v3777_v46  ;;  %v10529_v29 = vld [vmem:[%s11767_s9 + $0x4d0] sm:$0xff] }
 0x7ef   :  { %v3529_v40 = vadd.f32 %v10107_v56, %v3305_v33  ;;  %v3440_v61 = vpop.permute.xlu0 %3439  ;;  %v10477_v32 = vpop.permute.xlu1 %3384  ;;  %7361 = vmatprep.subr.bf16.mxu0 %v7360_v9  ;;  %7393 = vmatprep.subr.bf16.mxu1 %v7392_v47  ;;  %v3810_v42 = vld [vmem:[#allocation2 + $0xb] ss:$32 sm:$0x40]  ;;  %v3752_v56 = vld [vmem:[#allocation2 + $0x8] ss:$32 sm:$0x2]  ;;  %v3321_v5 = vmax.f32 %v9612_v48, %v3289_v0  ;;  %v7368_v39 = vpack.c.bf16 %v10470_v59, %v10465_v52 }
 0x7f0   :  { %v10489_v62 = vld [vmem:[%s11767_s9 + $0x5c8] sm:$0xff]  ;;  %v3541_v21 = vadd.f32 %v3440_v61, %v3317_v43  ;;  %v10494_v7 = vld [vmem:[%s11767_s9 + $0x440] sm:$0xff]  ;;  %v3811_v3 = vor.u32 %v3810_v42, %v3809_v14  ;;  %v10534_v41 = vld [vmem:[%s11767_s9 + $0x4d8] sm:$0xff]  ;;  %v3753_v9 = vor.u32 %v3752_v56, %v10472_v23  ;;  %v3293_v48 = vsel %vm79_vm4, %v10374_v11, 0.0 }
 0x7f1   :  { %v10499_v54 = vld [vmem:[%s11767_s9 + $0x448] sm:$0xff]  ;;  %v3561_v27 = vmax.f32 %v3529_v40, 0.0  ;;  %v10514_v2 = vld [vmem:[%s11767_s9 + $0x540] sm:$0xff]  ;;  %v4320_v57 = vld [vmem:[%s11767_s9 + $0x5d0] sm:$0xff]  ;;  %v7400_v20 = vpack.c.bf16 %v10489_v62, %v10484_v19  ;;  %v3325_v52 = vmax.f32 %v9618_v45, %v3293_v48  ;;  %v3297_v45 = vsel %vm79_vm4, %v10416_v55, 0.0 }
 0x7f2   :  { %v10501_v10 = vld [vmem:[#allocation2 + $0xa] ss:$32 sm:$0x1]  ;;  %v10505_v44 = vld [vmem:[#allocation2 + $0xd] ss:$32 sm:$0x1]  ;;  %7363 = vmatpush3.bf16.msra.mxu0 %v7362_v37  ;;  %7395 = vmatpush3.bf16.msra.mxu1 %v7394_v13  ;;  %v7370_v24 = vpack.c.bf16 %v10499_v54, %v10494_v7  ;;  %v7372_v19 = vpack.c.bf16 %v10534_v41, %v10529_v29 }
 0x7f3   :  { %v10503_v17 = vld [vmem:[#allocation2 + $0xa] ss:$32 sm:$0x2]  ;;  %v10521_v31 = vld [vmem:[#allocation2 + $0xd] ss:$32 sm:$0x2]  ;;  %v3460_v47 = vpop.permute.xlu0 %3459  ;;  %v10539_v63 = vpop.permute.xlu1 %3424  ;;  %7365 = vmatprep.subr.bf16.mxu0 %v7364_v28  ;;  %7397 = vmatprep.subr.bf16.mxu1 %v7396_v50 }
 0x7f4   :  { %v10519_v25 = vld [vmem:[%s11767_s9 + $0x548] sm:$0xff]  ;;  %v3573_v58 = vmax.f32 %v3541_v21, 0.0  ;;  %3593 = vst [vmem:[#allocation2 + $0x10] sm:$0xff] %v3561_v27  ;;  %v4321_v51 = vld [vmem:[%s11767_s9 + $0x5d8] sm:$0xff]  ;;  %v3785_v11 = vor.u32 %v10503_v17, %v10501_v10  ;;  %v3545_v1 = vadd.f32 %v3460_v47, %v3321_v5  ;;  %v10556_v33 = vld [vmem:[%s11767_s9 + $0x450] sm:$0xff]  ;;  %v3833_v60 = vor.u32 %v10521_v31, %v10505_v44 }
 0x7f5   :  { %v10523_v49 = vld [vmem:[#allocation2 + $0xf] ss:$32 sm:$0x1]  ;;  %v3780_v30 = vld [vmem:[#allocation2 + $0x9] ss:$32 sm:$0x80]  ;;  %v7402_v23 = vpack.c.bf16 %v10519_v25, %v10514_v2  ;;  %v7404_v62 = vpack.c.bf16 %v4321_v51, %v4320_v57  ;;  %v3329_v31 = vmax.f32 %v9679_v15, %v3297_v45 }
 0x7f6   :  { %v3781_v4 = vor.u32 %v3780_v30, %v3779_v22  ;;  %v3812_v36 = vld [vmem:[#allocation2 + $0xb] ss:$32 sm:$0x80]  ;;  %3605 = vst [vmem:[#allocation2 + $0x70] sm:$0xff] %v3573_v58  ;;  %v10561_v37 = vld [vmem:[%s11767_s9 + $0x458] sm:$0xff]  ;;  %v10570_v43 = vld [vmem:[%s11767_s9 + $0x550] sm:$0xff]  ;;  %7367 = vmatpush3.bf16.msra.mxu0 %v7366_v18  ;;  %7399 = vmatpush3.bf16.msra.mxu1 %v7398_v35 }
 0x7f7   :  { %v3813_v12 = vor.u32 %v3812_v36, %v3811_v3  ;;  %v3864_v53 = vld [vmem:[#allocation2 + $0xf] ss:$32 sm:$0x2]  ;;  %v10575_v13 = vld [vmem:[%s11767_s9 + $0x558] sm:$0xff]  ;;  %v3577_v59 = vmax.f32 %v3545_v1, 0.0  ;;  %v10584_v0 = vld [vmem:[%s11767_s9 + $0x4e0] sm:$0xff]  ;;  %v3480_v46 = vpop.permute.xlu0 %3479  ;;  %v10595_v42 = vpop.permute.xlu1 %3189  ;;  %7369 = vmatprep.subr.bf16.mxu0 %v7368_v39  ;;  %7401 = vmatprep.subr.bf16.mxu1 %v7400_v20  ;;  %v7374_v27 = vpack.c.bf16 %v10561_v37, %v10556_v33 }
 0x7f8   :  { %4997 = vmatprep.mubr.f32.mxu0 %v3781_v4  ;;  %v3754_v28 = vld [vmem:[#allocation2 + $0x8] ss:$32 sm:$0x4]  ;;  %v3865_v6 = vor.u32 %v3864_v53, %v10523_v49  ;;  %v3786_v50 = vld [vmem:[#allocation2 + $0xa] ss:$32 sm:$0x4]  ;;  %v3549_v7 = vadd.f32 %v3480_v46, %v3325_v52  ;;  %v7406_v5 = vpack.c.bf16 %v10575_v13, %v10570_v43 }
 0x7f9   :  { %v10589_v40 = vld [vmem:[%s11767_s9 + $0x4e8] sm:$0xff]  ;;  %v10591_v61 = vor.u32 %v3754_v28, %v3753_v9  ;;  %5067 = vmatprep.mubr.f32.mxu1 %v3813_v12  ;;  %v10602_v56 = vld [vmem:[%s11767_s9 + $0x5e0] sm:$0xff]  ;;  %v10609_v55 = vor.u32 %v3786_v50, %v3785_v11  ;;  %3609 = vst [vmem:[#allocation2 + $0x90] sm:$0xff] %v3577_v59  ;;  %v10643_v58 = vld [vmem:[%s11767_s9 + $0x4f0] sm:$0xff] }
 0x7fa   :  { %v10607_v21 = vld [vmem:[%s11767_s9 + $0x5e8] sm:$0xff]  ;;  %v10614_v54 = vld [vmem:[%s11767_s9 + $0x460] sm:$0xff]  ;;  %v3581_v49 = vmax.f32 %v3549_v7, 0.0  ;;  %7371 = vmatpush3.bf16.msra.mxu0 %v7370_v24  ;;  %7403 = vmatpush3.bf16.msra.mxu1 %v7402_v23  ;;  %v10648_v30 = vld [vmem:[%s11767_s9 + $0x4f8] sm:$0xff]  ;;  %v7376_v9 = vpack.c.bf16 %v10589_v40, %v10584_v0 }
 0x7fb   :  { %v3834_v14 = vld [vmem:[#allocation2 + $0xd] ss:$32 sm:$0x4]  ;;  %v3866_v44 = vld [vmem:[#allocation2 + $0xf] ss:$32 sm:$0x4]  ;;  %v3500_v15 = vpop.permute.xlu0 %3499  ;;  %v3198_v41 = vpop.permute.xlu1 %3197  ;;  %7373 = vmatprep.subr.bf16.mxu0 %v7372_v19  ;;  %7405 = vmatprep.subr.bf16.mxu1 %v7404_v62  ;;  %v7408_v48 = vpack.c.bf16 %v10607_v21, %v10602_v56  ;;  %v7380_v52 = vpack.c.bf16 %v10648_v30, %v10643_v58 }
 0x7fc   :  { %v10619_v10 = vld [vmem:[%s11767_s9 + $0x468] sm:$0xff]  ;;  %v10621_v17 = vor.u32 %v3834_v14, %v3833_v60  ;;  %v10628_v18 = vld [vmem:[%s11767_s9 + $0x560] sm:$0xff]  ;;  %v10635_v25 = vor.u32 %v3866_v44, %v3865_v6  ;;  %3613 = vst [vmem:[#allocation2 + $0xb0] sm:$0xff] %v3581_v49  ;;  %v3553_v39 = vadd.f32 %v3500_v15, %v3329_v31  ;;  %v3282_v57 = vsel %vm79_vm4, %v3198_v41, 0.0  ;;  %v4324_v51 = vld [vmem:[%s11767_s9 + $0x5f0] sm:$0xff] }
 0x7fd   :  { %v10633_v22 = vld [vmem:[%s11767_s9 + $0x568] sm:$0xff]  ;;  %v4325_v11 = vld [vmem:[%s11767_s9 + $0x5f8] sm:$0xff]  ;;  %v3314_v20 = vmax.f32 %v9590_v34, %v3282_v57  ;;  %v7378_v33 = vpack.c.bf16 %v10619_v10, %v10614_v54  ;;  %v10670_v37 = vld [vmem:[%s11767_s9 + $0x470] sm:$0xff] }
 0x7fe   :  { %v3756_v35 = vld [vmem:[#allocation2 + $0x8] ss:$32 sm:$0x8]  ;;  %v3788_v29 = vld [vmem:[#allocation2 + $0xa] ss:$32 sm:$0x8]  ;;  %7375 = vmatpush3.bf16.msra.mxu0 %v7374_v27  ;;  %7407 = vmatpush3.bf16.msra.mxu1 %v7406_v5  ;;  %v7410_v6 = vpack.c.bf16 %v10633_v22, %v10628_v18  ;;  %v7412_v19 = vpack.c.bf16 %v4325_v11, %v4324_v51 }
 0x7ff   :  { %v3758_v2 = vld [vmem:[#allocation2 + $0x8] ss:$32 sm:$0x10]  ;;  %v3757_v3 = vor.u32 %v3756_v35, %v10591_v61  ;;  %v3789_v47 = vor.u32 %v3788_v29, %v10609_v55  ;;  %v3790_v4 = vld [vmem:[#allocation2 + $0xa] ss:$32 sm:$0x10]  ;;  %v3538_v45 = vadd.f32 %v10539_v63, %v3314_v20  ;;  %v3520_v46 = vpop.permute.xlu0 %3519  ;;  %7377 = vmatprep.subr.bf16.mxu0 %v7376_v9  ;;  %7409 = vmatprep.subr.bf16.mxu1 %v7408_v48  ;;  %v10731_v22 = vpop.permute.xlu1 %3205 }
 0x800   :  { %v3836_v36 = vld [vmem:[#allocation2 + $0xd] ss:$32 sm:$0x8]  ;;  %v3868_v12 = vld [vmem:[#allocation2 + $0xf] ss:$32 sm:$0x8] }
 0x801   :  { %v3837_v1 = vor.u32 %v3836_v36, %v10621_v17  ;;  %v10675_v60 = vld [vmem:[%s11767_s9 + $0x478] sm:$0xff]  ;;  %v10680_v53 = vld [vmem:[%s11767_s9 + $0x570] sm:$0xff]  ;;  %v3760_v24 = vld [vmem:[#allocation2 + $0x8] ss:$32 sm:$0x20]  ;;  %v3869_v13 = vor.u32 %v3868_v12, %v10635_v25  ;;  %v3585_v28 = vmax.f32 %v3553_v39, 0.0  ;;  %v3759_v59 = vor.u32 %v3758_v2, %v3757_v3 }
 0x802   :  { %v10685_v34 = vld [vmem:[%s11767_s9 + $0x578] sm:$0xff]  ;;  %v3838_v43 = vld [vmem:[#allocation2 + $0xd] ss:$32 sm:$0x10]  ;;  %v10695_v23 = vld [vmem:[%s11767_s9 + $0x680] sm:$0xff]  ;;  %v3791_v62 = vor.u32 %v3790_v4, %v3789_v47  ;;  %v3570_v10 = vmax.f32 %v3538_v45, 0.0  ;;  %7379 = vmatpush3.bf16.msra.mxu0 %v7378_v33  ;;  %7411 = vmatpush3.bf16.msra.mxu1 %v7410_v6  ;;  %v7382_v35 = vpack.c.bf16 %v10675_v60, %v10670_v37 }
 0x803   :  { %v10700_v0 = vld [vmem:[%s11767_s9 + $0x688] sm:$0xff]  ;;  %v10705_v40 = vld [vmem:[%s11767_s9 + $0x780] sm:$0xff]  ;;  %3617 = vst [vmem:[#allocation2 + $0xd0] sm:$0xff] %v3585_v28  ;;  %v3839_v54 = vor.u32 %v3838_v43, %v3837_v1  ;;  %v7414_v2 = vpack.c.bf16 %v10685_v34, %v10680_v53  ;;  %v3761_v25 = vor.u32 %v3760_v24, %v3759_v59  ;;  %v3278_v5 = vsel %vm79_vm4, %v10595_v42, 0.0  ;;  %v3236_v58 = vpop.permute.xlu0 %3235  ;;  %7381 = vmatprep.subr.bf16.mxu0 %v7380_v52  ;;  %v4344_v42 = vld [vmem:[%s11767_s9 + $0x690] sm:$0xff]  ;;  %v3214_v6 = vpop.permute.xlu1 %3213 }
 0x804   :  { %v4375_v61 = vld [vmem:[%s11767_s9 + $0x788] sm:$0xff]  ;;  %v10714_v21 = vld [vmem:[%s11767_s9 + $0x600] sm:$0xff]  ;;  %3602 = vst [vmem:[#allocation2 + $0x58] sm:$0xff] %v3570_v10  ;;  %7413 = vmatprep.subr.bf16.mxu1 %v7412_v19  ;;  %v7416_v29 = vpack.c.bf16 %v10700_v0, %v10695_v23  ;;  %v3301_v41 = vsel %vm79_vm4, %v3236_v58, 0.0  ;;  %v4345_v36 = vld [vmem:[%s11767_s9 + $0x698] sm:$0xff]  ;;  %v3310_v33 = vmax.f32 %v9576_v8, %v3278_v5 }
 0x805   :  { %v3870_v50 = vld [vmem:[#allocation2 + $0xf] ss:$32 sm:$0x10]  ;;  %v3792_v56 = vld [vmem:[#allocation2 + $0xa] ss:$32 sm:$0x20]  ;;  %v7448_v15 = vpack.c.bf16 %v4375_v61, %v10705_v40  ;;  %v3333_v39 = vmax.f32 %v9847_v38, %v3301_v41  ;;  %v7420_v23 = vpack.c.bf16 %v4345_v36, %v4344_v42 }
 0x806   :  { %v10719_v55 = vld [vmem:[%s11767_s9 + $0x608] sm:$0xff]  ;;  %v10724_v44 = vld [vmem:[%s11767_s9 + $0x700] sm:$0xff]  ;;  %v3871_v18 = vor.u32 %v3870_v50, %v3869_v13  ;;  %v3793_v3 = vor.u32 %v3792_v56, %v3791_v62  ;;  %v4376_v12 = vld [vmem:[%s11767_s9 + $0x790] sm:$0xff]  ;;  %7383 = vmatpush3.bf16.msra.mxu0 %v7382_v35  ;;  %7415 = vmatpush3.bf16.msra.mxu1 %v7414_v2  ;;  %v3290_v41 = vsel %vm79_vm4, %v3214_v6, 0.0 }
 0x807   :  { %v3840_v14 = vld [vmem:[#allocation2 + $0xd] ss:$32 sm:$0x20]  ;;  %v3762_v7 = vld [vmem:[#allocation2 + $0x8] ss:$32 sm:$0x40]  ;;  %v7418_v47 = vpack.c.bf16 %v10719_v55, %v10714_v21  ;;  %v3557_v53 = vadd.f32 %v3520_v46, %v3333_v39  ;;  %v3405_v34 = vpop.permute.xlu0 %3404  ;;  %7417 = vmatprep.subr.bf16.mxu0 %v7416_v29  ;;  %7449 = vmatprep.subr.bf16.mxu1 %v7448_v15 }
 0x808   :  { %v3794_v63 = vld [vmem:[#allocation2 + $0xa] ss:$32 sm:$0x40]  ;;  %v3842_v17 = vld [vmem:[#allocation2 + $0xd] ss:$32 sm:$0x40]  ;;  %v3763_v9 = vor.u32 %v3762_v7, %v3761_v25  ;;  %v3841_v4 = vor.u32 %v3840_v14, %v3839_v54  ;;  %v3534_v52 = vadd.f32 %v3405_v34, %v3310_v33 }
 0x809   :  { %v10729_v27 = vld [vmem:[%s11767_s9 + $0x708] sm:$0xff]  ;;  %v3795_v57 = vor.u32 %v3794_v63, %v3793_v3  ;;  %v4377_v20 = vld [vmem:[%s11767_s9 + $0x798] sm:$0xff]  ;;  %v4328_v13 = vld [vmem:[%s11767_s9 + $0x610] sm:$0xff]  ;;  %v3589_v45 = vmax.f32 %v3557_v53, 0.0  ;;  %v3286_v14 = vsel %vm79_vm4, %v10731_v22, 0.0 }
 0x80a   :  { %v3872_v31 = vld [vmem:[#allocation2 + $0xf] ss:$32 sm:$0x20]  ;;  %v3764_v30 = vld [vmem:[#allocation2 + $0x8] ss:$32 sm:$0x80]  ;;  %v7450_v11 = vpack.c.bf16 %v10729_v27, %v10724_v44  ;;  %v3843_v38 = vor.u32 %v3842_v17, %v3841_v4  ;;  %v7452_v0 = vpack.c.bf16 %v4377_v20, %v4376_v12  ;;  %v3318_v58 = vmax.f32 %v9596_v26, %v3286_v14 }
 0x80b   :  { %v3874_v49 = vld [vmem:[#allocation2 + $0xf] ss:$32 sm:$0x40]  ;;  %v3796_v48 = vld [vmem:[#allocation2 + $0xa] ss:$32 sm:$0x80]  ;;  %v3873_v1 = vor.u32 %v3872_v31, %v3871_v18  ;;  %v3765_v37 = vor.u32 %v3764_v30, %v3763_v9  ;;  %v3182_v7 = vpop.permute.xlu0 %3181  ;;  %v3222_v30 = vpop.permute.xlu1 %3221 }
 0x80c   :  { %v3844_v51 = vld [vmem:[#allocation2 + $0xd] ss:$32 sm:$0x80]  ;;  %v3876_v60 = vld [vmem:[#allocation2 + $0xf] ss:$32 sm:$0x80]  ;;  %v3797_v24 = vor.u32 %v3796_v48, %v3795_v57 }
 0x80d   :  { %v3875_v43 = vor.u32 %v3874_v49, %v3873_v1  ;;  %v4329_v28 = vld [vmem:[%s11767_s9 + $0x618] sm:$0xff]  ;;  %v4360_v8 = vld [vmem:[%s11767_s9 + $0x710] sm:$0xff]  ;;  %v3845_v59 = vor.u32 %v3844_v51, %v3843_v38  ;;  %v4346_v61 = vld [vmem:[%s11767_s9 + $0x6a0] sm:$0xff]  ;;  %4998 = vmatmul.mubr.f32.vlgmr.msra.gmra.mrb[56].mxu0 %v3765_v37  ;;  %v3566_v56 = vmax.f32 %v3534_v52, 0.0  ;;  %3621 = vst [vmem:[#allocation2 + $0xf0] sm:$0xff] %v3589_v45  ;;  %v3274_v27 = vsel %vm79_vm4, %v3182_v7, 0.0 }
 0x80e   :  { %v4361_v40 = vld [vmem:[%s11767_s9 + $0x718] sm:$0xff]  ;;  %v4347_v50 = vld [vmem:[%s11767_s9 + $0x6a8] sm:$0xff]  ;;  %5068 = vmatmul.mubr.f32.vlgmr.msra.gmra.mrb[96].mxu1 %v3797_v24  ;;  %v4378_v19 = vld [vmem:[%s11767_s9 + $0x7a0] sm:$0xff]  ;;  %7419 = vmatpush3.bf16.msra.mxu0 %v7418_v47  ;;  %v7422_v21 = vpack.c.bf16 %v4329_v28, %v4328_v13  ;;  %v3306_v25 = vmax.f32 %v9563_v16, %v3274_v27  ;;  %v3294_v13 = vsel %vm79_vm4, %v3222_v30, 0.0 }
 0x80f   :  { %v3877_v46 = vor.u32 %v3876_v60, %v3875_v43  ;;  %v4379_v62 = vld [vmem:[%s11767_s9 + $0x7a8] sm:$0xff]  ;;  %5137 = vmatprep.mubr.f32.mxu0 %v3845_v59  ;;  %v4330_v55 = vld [vmem:[%s11767_s9 + $0x620] sm:$0xff]  ;;  %7451 = vmatpush3.bf16.msra.mxu1 %v7450_v11  ;;  %v7454_v63 = vpack.c.bf16 %v4361_v40, %v4360_v8  ;;  %v7424_v54 = vpack.c.bf16 %v4347_v50, %v4346_v61  ;;  %v4348_v22 = vld [vmem:[%s11767_s9 + $0x6b0] sm:$0xff]  ;;  %v3445_v9 = vpop.permute.xlu0 %3444  ;;  %v3230_v40 = vpop.permute.xlu1 %3229 }
 0x810   :  { %v4331_v10 = vld [vmem:[%s11767_s9 + $0x628] sm:$0xff]  ;;  %v4362_v17 = vld [vmem:[%s11767_s9 + $0x720] sm:$0xff]  ;;  %3598 = vst [vmem:[#allocation2 + $0x38] sm:$0xff] %v3566_v56  ;;  %7421 = vmatprep.subr.bf16.mxu0 %v7420_v23  ;;  %7453 = vmatprep.subr.bf16.mxu1 %v7452_v0  ;;  %v7456_v18 = vpack.c.bf16 %v4379_v62, %v4378_v19  ;;  %v4349_v35 = vld [vmem:[%s11767_s9 + $0x6b8] sm:$0xff]  ;;  %v3530_v26 = vadd.f32 %v10477_v32, %v3306_v25 }
 0x811   :  { %5207 = vmatprep.mubr.f32.mxu1 %v3877_v46  ;;  %v4363_v44 = vld [vmem:[%s11767_s9 + $0x728] sm:$0xff]  ;;  %v4380_v2 = vld [vmem:[%s11767_s9 + $0x7b0] sm:$0xff]  ;;  %v4381_v31 = vld [vmem:[%s11767_s9 + $0x7b8] sm:$0xff]  ;;  %v7426_v3 = vpack.c.bf16 %v4331_v10, %v4330_v55  ;;  %v7428_v47 = vpack.c.bf16 %v4349_v35, %v4348_v22  ;;  %v3542_v39 = vadd.f32 %v3445_v9, %v3318_v58  ;;  %v3298_v22 = vsel %vm79_vm4, %v3230_v40, 0.0 }
 0x812   :  { %v4332_v49 = vld [vmem:[%s11767_s9 + $0x630] sm:$0xff]  ;;  %v4333_v5 = vld [vmem:[%s11767_s9 + $0x638] sm:$0xff]  ;;  %7423 = vmatpush3.bf16.msra.mxu0 %v7422_v21  ;;  %v10831_v15 = vld [vmem:[%s11767_s9 + $0x6c0] sm:$0xff]  ;;  %v7458_v48 = vpack.c.bf16 %v4363_v44, %v4362_v17  ;;  %v7460_v32 = vpack.c.bf16 %v4381_v31, %v4380_v2  ;;  %v3562_v11 = vmax.f32 %v3530_v26, 0.0 }
 0x813   :  { %v10823_v16 = vld [vmem:[%s11767_s9 + $0x730] sm:$0xff]  ;;  %v4365_v29 = vld [vmem:[%s11767_s9 + $0x738] sm:$0xff]  ;;  %7455 = vmatpush3.bf16.msra.mxu1 %v7454_v63  ;;  %7425 = vmatprep.subr.bf16.mxu0 %v7424_v54  ;;  %v4351_v4 = vld [vmem:[%s11767_s9 + $0x6c8] sm:$0xff]  ;;  %v3574_v60 = vmax.f32 %v3542_v39, 0.0  ;;  %v7430_v53 = vpack.c.bf16 %v4333_v5, %v4332_v49  ;;  %v3465_v28 = vpop.permute.xlu0 %3464 }
 0x814   :  { %v10841_v42 = vld [vmem:[%s11767_s9 + $0x7c0] sm:$0xff]  ;;  %v4383_v36 = vld [vmem:[%s11767_s9 + $0x7c8] sm:$0xff]  ;;  %7457 = vmatprep.subr.bf16.mxu1 %v7456_v18  ;;  %v3895_v43 = vld [vmem:[#allocation2 + $0x11] ss:$32 sm:$0x1]  ;;  %3594 = vst [vmem:[#allocation2 + $0x18] sm:$0xff] %v3562_v11  ;;  %v7462_v8 = vpack.c.bf16 %v4365_v29, %v10823_v16  ;;  %v7432_v6 = vpack.c.bf16 %v4351_v4, %v10831_v15 }
 0x815   :  { %v3815_v57 = vld [vmem:[#allocation2 + $0xc] ss:$32 sm:$0x1]  ;;  %v10849_v1 = vld [vmem:[%s11767_s9 + $0x640] sm:$0xff]  ;;  %v4352_v52 = vld [vmem:[%s11767_s9 + $0x6d0] sm:$0xff]  ;;  %3606 = vst [vmem:[#allocation2 + $0x78] sm:$0xff] %v3574_v60  ;;  %v7464_v50 = vpack.c.bf16 %v4383_v36, %v10841_v42 }
 0x816   :  { %v3816_v51 = vld [vmem:[#allocation2 + $0xc] ss:$32 sm:$0x2]  ;;  %v3847_v20 = vld [vmem:[#allocation2 + $0xe] ss:$32 sm:$0x1]  ;;  %7427 = vmatpush3.bf16.msra.mxu0 %v7426_v3 }
 0x817   :  { %v10854_v12 = vld [vmem:[%s11767_s9 + $0x648] sm:$0xff]  ;;  %v10860_v34 = vld [vmem:[%s11767_s9 + $0x740] sm:$0xff]  ;;  %7459 = vmatpush3.bf16.msra.mxu1 %v7458_v48  ;;  %7429 = vmatprep.subr.bf16.mxu0 %v7428_v47  ;;  %v4353_v59 = vld [vmem:[%s11767_s9 + $0x6d8] sm:$0xff]  ;;  %v3817_v23 = vor.u32 %v3816_v51, %v3815_v57  ;;  %v3485_v35 = vpop.permute.xlu0 %3484 }
 0x818   :  { %v3848_v33 = vld [vmem:[#allocation2 + $0xe] ss:$32 sm:$0x2]  ;;  %v11789_v37 = vld [vmem:[#allocation4_spill] sm:$0xff]  ;;  %7461 = vmatprep.subr.bf16.mxu1 %v7460_v32  ;;  %v4384_v45 = vld [vmem:[%s11767_s9 + $0x7d0] sm:$0xff]  ;;  %v7434_v10 = vpack.c.bf16 %v10854_v12, %v10849_v1  ;;  %v7436_v25 = vpack.c.bf16 %v4353_v59, %v4352_v52 }
 0x819   :  { %v3322_v38 = vmax.f32 %v11789_v37, %v3290_v41  ;;  %v10865_v24 = vld [vmem:[%s11767_s9 + $0x748] sm:$0xff]  ;;  %v3927_v0 = vld [vmem:[#allocation2 + $0x13] ss:$32 sm:$0x1]  ;;  %v4385_v46 = vld [vmem:[%s11767_s9 + $0x7d8] sm:$0xff]  ;;  %v3849_v19 = vor.u32 %v3848_v33, %v3847_v20 }
 0x81a   :  { %v3896_v62 = vld [vmem:[#allocation2 + $0x11] ss:$32 sm:$0x2]  ;;  %v10891_v21 = vld [vmem:[%s11767_s9 + $0x658] sm:$0xff]  ;;  %v11790_v7 = vld [vmem:[#allocation5_spill] sm:$0xff]  ;;  %7431 = vmatpush3.bf16.msra.mxu0 %v7430_v53  ;;  %v7466_v2 = vpack.c.bf16 %v10865_v24, %v10860_v34  ;;  %v7468_v3 = vpack.c.bf16 %v4385_v46, %v4384_v45 }
 0x81b   :  { %v3546_v61 = vadd.f32 %v3465_v28, %v3322_v38  ;;  %v10886_v56 = vld [vmem:[%s11767_s9 + $0x650] sm:$0xff]  ;;  %v3897_v55 = vor.u32 %v3896_v62, %v3895_v43  ;;  %v3326_v63 = vmax.f32 %v11790_v7, %v3294_v13  ;;  %v10904_v44 = vld [vmem:[%s11767_s9 + $0x758] sm:$0xff]  ;;  %v3818_v27 = vld [vmem:[#allocation2 + $0xc] ss:$32 sm:$0x4]  ;;  %7463 = vmatpush3.bf16.msra.mxu1 %v7462_v8  ;;  %7433 = vmatprep.subr.bf16.mxu0 %v7432_v6  ;;  %v3505_v20 = vpop.permute.xlu0 %3504 }
 0x81c   :  { %v3928_v14 = vld [vmem:[#allocation2 + $0x13] ss:$32 sm:$0x2]  ;;  %v4354_v31 = vld [vmem:[%s11767_s9 + $0x6e0] sm:$0xff]  ;;  %v4355_v49 = vld [vmem:[%s11767_s9 + $0x6e8] sm:$0xff]  ;;  %v3819_v5 = vor.u32 %v3818_v27, %v3817_v23  ;;  %7465 = vmatprep.subr.bf16.mxu1 %v7464_v50  ;;  %v7438_v39 = vpack.c.bf16 %v10891_v21, %v10886_v56 }
 0x81d   :  { %v3578_v54 = vmax.f32 %v3546_v61, 0.0  ;;  %v10899_v17 = vld [vmem:[%s11767_s9 + $0x750] sm:$0xff]  ;;  %v3929_v18 = vor.u32 %v3928_v14, %v3927_v0  ;;  %v3850_v58 = vld [vmem:[#allocation2 + $0xe] ss:$32 sm:$0x4]  ;;  %v3550_v30 = vadd.f32 %v3485_v35, %v3326_v63  ;;  %v4386_v16 = vld [vmem:[%s11767_s9 + $0x7e0] sm:$0xff]  ;;  %v7440_v37 = vpack.c.bf16 %v4355_v49, %v4354_v31 }
 0x81e   :  { %v4387_v29 = vld [vmem:[%s11767_s9 + $0x7e8] sm:$0xff]  ;;  %v3851_v15 = vor.u32 %v3850_v58, %v3849_v19  ;;  %v3898_v41 = vld [vmem:[#allocation2 + $0x11] ss:$32 sm:$0x4]  ;;  %v10924_v26 = vld [vmem:[%s11767_s9 + $0x660] sm:$0xff]  ;;  %7435 = vmatpush3.bf16.msra.mxu0 %v7434_v10  ;;  %v7470_v33 = vpack.c.bf16 %v10904_v44, %v10899_v17 }
 0x81f   :  { %3610 = vst [vmem:[#allocation2 + $0x98] sm:$0xff] %v3578_v54  ;;  %v10929_v9 = vld [vmem:[%s11767_s9 + $0x668] sm:$0xff]  ;;  %v3899_v48 = vor.u32 %v3898_v41, %v3897_v55  ;;  %v3930_v47 = vld [vmem:[#allocation2 + $0x13] ss:$32 sm:$0x4]  ;;  %v3582_v36 = vmax.f32 %v3550_v30, 0.0  ;;  %7467 = vmatpush3.bf16.msra.mxu1 %v7466_v2  ;;  %7437 = vmatprep.subr.bf16.mxu0 %v7436_v25  ;;  %v7472_v43 = vpack.c.bf16 %v4387_v29, %v4386_v16  ;;  %v3525_v62 = vpop.permute.xlu0 %3524 }
 0x820   :  { %v11791_v4 = vld [vmem:[#allocation6_spill] sm:$0xff]  ;;  %v4370_v32 = vld [vmem:[%s11767_s9 + $0x760] sm:$0xff]  ;;  %v4371_v57 = vld [vmem:[%s11767_s9 + $0x768] sm:$0xff]  ;;  %v3931_v12 = vor.u32 %v3930_v47, %v3929_v18  ;;  %7469 = vmatprep.subr.bf16.mxu1 %v7468_v3  ;;  %v7442_v61 = vpack.c.bf16 %v10929_v9, %v10924_v26 }
 0x821   :  { %v3330_v42 = vmax.f32 %v11791_v4, %v3298_v22  ;;  %v4356_v51 = vld [vmem:[%s11767_s9 + $0x6f0] sm:$0xff]  ;;  %v4357_v11 = vld [vmem:[%s11767_s9 + $0x6f8] sm:$0xff]  ;;  %v3820_v1 = vld [vmem:[#allocation2 + $0xc] ss:$32 sm:$0x8]  ;;  %3614 = vst [vmem:[#allocation2 + $0xb8] sm:$0xff] %v3582_v36  ;;  %v7474_v56 = vpack.c.bf16 %v4371_v57, %v4370_v32 }
 0x822   :  { %v4388_v38 = vld [vmem:[%s11767_s9 + $0x7f0] sm:$0xff]  ;;  %v4389_v60 = vld [vmem:[%s11767_s9 + $0x7f8] sm:$0xff]  ;;  %v3821_v53 = vor.u32 %v3820_v1, %v3819_v5  ;;  %v3852_v34 = vld [vmem:[#allocation2 + $0xe] ss:$32 sm:$0x8]  ;;  %7439 = vmatpush3.bf16.msra.mxu0 %v7438_v39  ;;  %v7444_v21 = vpack.c.bf16 %v4357_v11, %v4356_v51 }
 0x823   :  { %v3554_v24 = vadd.f32 %v3505_v20, %v3330_v42  ;;  %v3822_v13 = vld [vmem:[#allocation2 + $0xc] ss:$32 sm:$0x10]  ;;  %v3853_v28 = vor.u32 %v3852_v34, %v3851_v15  ;;  %v3900_v8 = vld [vmem:[#allocation2 + $0x11] ss:$32 sm:$0x8]  ;;  %7471 = vmatpush3.bf16.msra.mxu1 %v7470_v33  ;;  %7441 = vmatprep.subr.bf16.mxu0 %v7440_v37  ;;  %v7476_v54 = vpack.c.bf16 %v4389_v60, %v4388_v38  ;;  %v3238_v16 = vpop.permute.xlu0 %3237 }
 0x824   :  { %v4340_v6 = vld [vmem:[%s11767_s9 + $0x670] sm:$0xff]  ;;  %v4341_v52 = vld [vmem:[%s11767_s9 + $0x678] sm:$0xff]  ;;  %v3854_v59 = vld [vmem:[#allocation2 + $0xe] ss:$32 sm:$0x10]  ;;  %v3901_v23 = vor.u32 %v3900_v8, %v3899_v48  ;;  %v3823_v55 = vor.u32 %v3822_v13, %v3821_v53  ;;  %7473 = vmatprep.subr.bf16.mxu1 %v7472_v43  ;;  %v3302_v47 = vsel %vm79_vm4, %v3238_v16, 0.0 }
 0x825   :  { %v3932_v0 = vld [vmem:[#allocation2 + $0x13] ss:$32 sm:$0x8]  ;;  %v3586_v40 = vmax.f32 %v3554_v24, 0.0  ;;  %v4373_v45 = vld [vmem:[%s11767_s9 + $0x778] sm:$0xff]  ;;  %v4406_v14 = vld [vmem:[%s11767_s9 + $0x880] sm:$0xff]  ;;  %v3855_v17 = vor.u32 %v3854_v59, %v3853_v28  ;;  %v7446_v5 = vpack.c.bf16 %v4341_v52, %v4340_v6 }
 0x826   :  { %v4372_v50 = vld [vmem:[%s11767_s9 + $0x770] sm:$0xff]  ;;  %v3933_v19 = vor.u32 %v3932_v0, %v3931_v12  ;;  %v4407_v7 = vld [vmem:[%s11767_s9 + $0x888] sm:$0xff]  ;;  %v4438_v44 = vld [vmem:[%s11767_s9 + $0x980] sm:$0xff]  ;;  %7443 = vmatpush3.bf16.msra.mxu0 %v7442_v61 }
 0x827   :  { %v3902_v46 = vld [vmem:[#allocation2 + $0x11] ss:$32 sm:$0x10]  ;;  %v3934_v63 = vld [vmem:[#allocation2 + $0x13] ss:$32 sm:$0x10]  ;;  %7475 = vmatpush3.bf16.msra.mxu1 %v7474_v56  ;;  %7445 = vmatprep.subr.bf16.mxu0 %v7444_v21  ;;  %v7478_v29 = vpack.c.bf16 %v4373_v45, %v4372_v50  ;;  %v7480_v26 = vpack.c.bf16 %v4407_v7, %v4406_v14 }
 0x828   :  { %3618 = vst [vmem:[#allocation2 + $0xd8] sm:$0xff] %v3586_v40  ;;  %v3824_v10 = vld [vmem:[#allocation2 + $0xc] ss:$32 sm:$0x20]  ;;  %v4390_v35 = vld [vmem:[%s11767_s9 + $0x800] sm:$0xff]  ;;  %v3903_v25 = vor.u32 %v3902_v46, %v3901_v23  ;;  %v3935_v3 = vor.u32 %v3934_v63, %v3933_v19  ;;  %v4408_v48 = vld [vmem:[%s11767_s9 + $0x890] sm:$0xff]  ;;  %7477 = vmatprep.subr.bf16.mxu1 %v7476_v54 }
 0x829   :  { %v4439_v27 = vld [vmem:[%s11767_s9 + $0x988] sm:$0xff]  ;;  %v10989_v31 = vld [vmem:[%s11767_s9 + $0x900] sm:$0xff]  ;;  %v3904_v30 = vld [vmem:[#allocation2 + $0x11] ss:$32 sm:$0x20]  ;;  %v3825_v15 = vor.u32 %v3824_v10, %v3823_v55 }
 0x82a   :  { %v3826_v18 = vld [vmem:[#allocation2 + $0xc] ss:$32 sm:$0x40]  ;;  %v3856_v22 = vld [vmem:[#allocation2 + $0xe] ss:$32 sm:$0x20]  ;;  %v7512_v42 = vpack.c.bf16 %v4439_v27, %v4438_v44  ;;  %v3905_v12 = vor.u32 %v3904_v30, %v3903_v25  ;;  %7447 = vmatpush3.bf16.msra.mxu0 %v7446_v5 }
 0x82b   :  { %v4391_v2 = vld [vmem:[%s11767_s9 + $0x808] sm:$0xff]  ;;  %v3936_v9 = vld [vmem:[#allocation2 + $0x13] ss:$32 sm:$0x20]  ;;  %v3857_v4 = vor.u32 %v3856_v22, %v3855_v17  ;;  %v4409_v39 = vld [vmem:[%s11767_s9 + $0x898] sm:$0xff]  ;;  %v3827_v11 = vor.u32 %v3826_v18, %v3825_v15  ;;  %7479 = vmatpush3.bf16.msra.mxu1 %v7478_v29  ;;  %7481 = vmatprep.subr.bf16.mxu0 %v7480_v26 }
 0x82c   :  { %v4423_v49 = vld [vmem:[%s11767_s9 + $0x908] sm:$0xff]  ;;  %v3906_v36 = vld [vmem:[#allocation2 + $0x11] ss:$32 sm:$0x40]  ;;  %v11792_v57 = vld [vmem:[#allocation7_spill] sm:$0xff]  ;;  %v7482_v37 = vpack.c.bf16 %v4391_v2, %v4390_v35  ;;  %v3937_v53 = vor.u32 %v3936_v9, %v3935_v3  ;;  %7513 = vmatprep.subr.bf16.mxu1 %v7512_v42  ;;  %v7484_v0 = vpack.c.bf16 %v4409_v39, %v4408_v48 }
 0x82d   :  { %v3828_v58 = vld [vmem:[#allocation2 + $0xc] ss:$32 sm:$0x80]  ;;  %v3858_v41 = vld [vmem:[#allocation2 + $0xe] ss:$32 sm:$0x40]  ;;  %v3334_v51 = vmax.f32 %v11792_v57, %v3302_v47  ;;  %v7514_v60 = vpack.c.bf16 %v4423_v49, %v10989_v31  ;;  %v3907_v28 = vor.u32 %v3906_v36, %v3905_v12 }
 0x82e   :  { %v4440_v32 = vld [vmem:[%s11767_s9 + $0x990] sm:$0xff]  ;;  %v3860_v1 = vld [vmem:[#allocation2 + $0xe] ss:$32 sm:$0x80]  ;;  %v3859_v33 = vor.u32 %v3858_v41, %v3857_v4  ;;  %v4441_v34 = vld [vmem:[%s11767_s9 + $0x998] sm:$0xff]  ;;  %v3829_v13 = vor.u32 %v3828_v58, %v3827_v11 }
 0x82f   :  { %v3938_v20 = vld [vmem:[#allocation2 + $0x13] ss:$32 sm:$0x40]  ;;  %v3908_v38 = vld [vmem:[#allocation2 + $0x11] ss:$32 sm:$0x80]  ;;  %v3558_v43 = vadd.f32 %v3525_v62, %v3334_v51  ;;  %v7516_v19 = vpack.c.bf16 %v4441_v34, %v4440_v32 }
 0x830   :  { %v4392_v24 = vld [vmem:[%s11767_s9 + $0x810] sm:$0xff]  ;;  %v4393_v6 = vld [vmem:[%s11767_s9 + $0x818] sm:$0xff]  ;;  %v3861_v59 = vor.u32 %v3860_v1, %v3859_v33  ;;  %v3939_v23 = vor.u32 %v3938_v20, %v3937_v53  ;;  %v4410_v61 = vld [vmem:[%s11767_s9 + $0x8a0] sm:$0xff]  ;;  %5138 = vmatmul.mubr.f32.vlgmr.msra.gmra.mrb[58].mxu0 %v3829_v13  ;;  %v3909_v46 = vor.u32 %v3908_v38, %v3907_v28 }
 0x831   :  { %v3940_v8 = vld [vmem:[#allocation2 + $0x13] ss:$32 sm:$0x80]  ;;  %v4425_v40 = vld [vmem:[%s11767_s9 + $0x918] sm:$0xff]  ;;  %v4411_v50 = vld [vmem:[%s11767_s9 + $0x8a8] sm:$0xff]  ;;  %v3590_v45 = vmax.f32 %v3558_v43, 0.0  ;;  %7483 = vmatpush3.bf16.msra.mxu0 %v7482_v37  ;;  %v7486_v55 = vpack.c.bf16 %v4393_v6, %v4392_v24 }
 0x832   :  { %v4424_v52 = vld [vmem:[%s11767_s9 + $0x910] sm:$0xff]  ;;  %v4442_v62 = vld [vmem:[%s11767_s9 + $0x9a0] sm:$0xff]  ;;  %v4443_v56 = vld [vmem:[%s11767_s9 + $0x9a8] sm:$0xff]  ;;  %5208 = vmatmul.mubr.f32.vlgmr.msra.gmra.mrb[98].mxu1 %v3861_v59  ;;  %v3941_v21 = vor.u32 %v3940_v8, %v3939_v23  ;;  %5277 = vmatprep.mubr.f32.mxu0 %v3909_v46  ;;  %v7488_v7 = vpack.c.bf16 %v4411_v50, %v4410_v61 }
 0x833   :  { %3622 = vst [vmem:[#allocation2 + $0xf8] sm:$0xff] %v3590_v45  ;;  %7515 = vmatpush3.bf16.msra.mxu1 %v7514_v60  ;;  %v7518_v14 = vpack.c.bf16 %v4425_v40, %v4424_v52  ;;  %v4394_v63 = vld [vmem:[%s11767_s9 + $0x820] sm:$0xff]  ;;  %v4395_v54 = vld [vmem:[%s11767_s9 + $0x828] sm:$0xff]  ;;  %7485 = vmatprep.subr.bf16.mxu0 %v7484_v0  ;;  %v7520_v17 = vpack.c.bf16 %v4443_v56, %v4442_v62  ;;  %v4412_v27 = vld [vmem:[%s11767_s9 + $0x8b0] sm:$0xff] }
 0x834   :  { %v4426_v10 = vld [vmem:[%s11767_s9 + $0x920] sm:$0xff]  ;;  %5347 = vmatprep.mubr.f32.mxu1 %v3941_v21  ;;  %v4427_v44 = vld [vmem:[%s11767_s9 + $0x928] sm:$0xff]  ;;  %v4413_v18 = vld [vmem:[%s11767_s9 + $0x8b8] sm:$0xff]  ;;  %7517 = vmatprep.subr.bf16.mxu1 %v7516_v19  ;;  %v7490_v2 = vpack.c.bf16 %v4395_v54, %v4394_v63 }
 0x835   :  { %v4444_v22 = vld [vmem:[%s11767_s9 + $0x9b0] sm:$0xff]  ;;  %v4445_v35 = vld [vmem:[%s11767_s9 + $0x9b8] sm:$0xff]  ;;  %7487 = vmatpush3.bf16.msra.mxu0 %v7486_v55  ;;  %v7522_v5 = vpack.c.bf16 %v4427_v44, %v4426_v10  ;;  %v7492_v58 = vpack.c.bf16 %v4413_v18, %v4412_v27  ;;  %v4414_v3 = vld [vmem:[%s11767_s9 + $0x8c0] sm:$0xff] }
 0x836   :  { %v4396_v25 = vld [vmem:[%s11767_s9 + $0x830] sm:$0xff]  ;;  %v4397_v31 = vld [vmem:[%s11767_s9 + $0x838] sm:$0xff]  ;;  %7489 = vmatprep.subr.bf16.mxu0 %v7488_v7  ;;  %v4415_v16 = vld [vmem:[%s11767_s9 + $0x8c8] sm:$0xff]  ;;  %v7524_v29 = vpack.c.bf16 %v4445_v35, %v4444_v22 }
 0x837   :  { %v4428_v49 = vld [vmem:[%s11767_s9 + $0x930] sm:$0xff]  ;;  %7519 = vmatpush3.bf16.msra.mxu1 %v7518_v14  ;;  %v4429_v30 = vld [vmem:[%s11767_s9 + $0x938] sm:$0xff]  ;;  %v4446_v15 = vld [vmem:[%s11767_s9 + $0x9c0] sm:$0xff]  ;;  %v7494_v4 = vpack.c.bf16 %v4397_v31, %v4396_v25  ;;  %v7496_v1 = vpack.c.bf16 %v4415_v16, %v4414_v3 }
 0x838   :  { %7521 = vmatprep.subr.bf16.mxu1 %v7520_v17  ;;  %v4447_v41 = vld [vmem:[%s11767_s9 + $0x9c8] sm:$0xff]  ;;  %v3879_v26 = vld [vmem:[#allocation2 + $0x10] ss:$32 sm:$0x1]  ;;  %v4398_v9 = vld [vmem:[%s11767_s9 + $0x840] sm:$0xff]  ;;  %v7526_v11 = vpack.c.bf16 %v4429_v30, %v4428_v49 }
 0x839   :  { %v4399_v48 = vld [vmem:[%s11767_s9 + $0x848] sm:$0xff]  ;;  %v3911_v47 = vld [vmem:[#allocation2 + $0x12] ss:$32 sm:$0x1]  ;;  %7491 = vmatpush3.bf16.msra.mxu0 %v7490_v2  ;;  %v4430_v42 = vld [vmem:[%s11767_s9 + $0x940] sm:$0xff]  ;;  %v7528_v37 = vpack.c.bf16 %v4447_v41, %v4446_v15 }
 0x83a   :  { %v4431_v36 = vld [vmem:[%s11767_s9 + $0x948] sm:$0xff]  ;;  %v4416_v39 = vld [vmem:[%s11767_s9 + $0x8d0] sm:$0xff]  ;;  %v4417_v32 = vld [vmem:[%s11767_s9 + $0x8d8] sm:$0xff]  ;;  %7493 = vmatprep.subr.bf16.mxu0 %v7492_v58  ;;  %v7498_v8 = vpack.c.bf16 %v4399_v48, %v4398_v9 }
 0x83b   :  { %v3880_v57 = vld [vmem:[#allocation2 + $0x10] ss:$32 sm:$0x2]  ;;  %v3959_v51 = vld [vmem:[#allocation2 + $0x15] ss:$32 sm:$0x1]  ;;  %7523 = vmatpush3.bf16.msra.mxu1 %v7522_v5  ;;  %v7530_v0 = vpack.c.bf16 %v4431_v36, %v4430_v42  ;;  %v7500_v40 = vpack.c.bf16 %v4417_v32, %v4416_v39 }
 0x83c   :  { %v3881_v12 = vor.u32 %v3880_v57, %v3879_v26  ;;  %v3912_v20 = vld [vmem:[#allocation2 + $0x12] ss:$32 sm:$0x2]  ;;  %v3991_v33 = vld [vmem:[#allocation2 + $0x17] ss:$32 sm:$0x1]  ;;  %7525 = vmatprep.subr.bf16.mxu1 %v7524_v29 }
 0x83d   :  { %v4448_v38 = vld [vmem:[%s11767_s9 + $0x9d0] sm:$0xff]  ;;  %v4449_v60 = vld [vmem:[%s11767_s9 + $0x9d8] sm:$0xff]  ;;  %v3913_v53 = vor.u32 %v3912_v20, %v3911_v47  ;;  %7495 = vmatpush3.bf16.msra.mxu0 %v7494_v4  ;;  %v4418_v61 = vld [vmem:[%s11767_s9 + $0x8e0] sm:$0xff] }
 0x83e   :  { %v3960_v34 = vld [vmem:[#allocation2 + $0x15] ss:$32 sm:$0x2]  ;;  %v4401_v43 = vld [vmem:[%s11767_s9 + $0x858] sm:$0xff]  ;;  %7497 = vmatprep.subr.bf16.mxu0 %v7496_v1  ;;  %v4419_v50 = vld [vmem:[%s11767_s9 + $0x8e8] sm:$0xff]  ;;  %v7532_v19 = vpack.c.bf16 %v4449_v60, %v4448_v38 }
 0x83f   :  { %v4400_v24 = vld [vmem:[%s11767_s9 + $0x850] sm:$0xff]  ;;  %v3961_v13 = vor.u32 %v3960_v34, %v3959_v51  ;;  %v4433_v52 = vld [vmem:[%s11767_s9 + $0x958] sm:$0xff]  ;;  %7527 = vmatpush3.bf16.msra.mxu1 %v7526_v11  ;;  %v4450_v62 = vld [vmem:[%s11767_s9 + $0x9e0] sm:$0xff]  ;;  %v7504_v25 = vpack.c.bf16 %v4419_v50, %v4418_v61 }
 0x840   :  { %v3992_v28 = vld [vmem:[#allocation2 + $0x17] ss:$32 sm:$0x2]  ;;  %v3882_v59 = vld [vmem:[#allocation2 + $0x10] ss:$32 sm:$0x4]  ;;  %7529 = vmatprep.subr.bf16.mxu1 %v7528_v37  ;;  %v7502_v10 = vpack.c.bf16 %v4401_v43, %v4400_v24 }
 0x841   :  { %v4432_v6 = vld [vmem:[%s11767_s9 + $0x950] sm:$0xff]  ;;  %v3993_v23 = vor.u32 %v3992_v28, %v3991_v33  ;;  %v3883_v45 = vor.u32 %v3882_v59, %v3881_v12  ;;  %v4451_v56 = vld [vmem:[%s11767_s9 + $0x9e8] sm:$0xff]  ;;  %v4402_v14 = vld [vmem:[%s11767_s9 + $0x860] sm:$0xff]  ;;  %7499 = vmatpush3.bf16.msra.mxu0 %v7498_v8 }
 0x842   :  { %v3914_v46 = vld [vmem:[#allocation2 + $0x12] ss:$32 sm:$0x4]  ;;  %v3962_v55 = vld [vmem:[#allocation2 + $0x15] ss:$32 sm:$0x4]  ;;  %7501 = vmatprep.subr.bf16.mxu0 %v7500_v40  ;;  %v7534_v2 = vpack.c.bf16 %v4433_v52, %v4432_v6  ;;  %v7536_v30 = vpack.c.bf16 %v4451_v56, %v4450_v62 }
 0x843   :  { %v3915_v21 = vor.u32 %v3914_v46, %v3913_v53  ;;  %v4403_v7 = vld [vmem:[%s11767_s9 + $0x868] sm:$0xff]  ;;  %v3963_v63 = vor.u32 %v3962_v55, %v3961_v13  ;;  %v3994_v54 = vld [vmem:[#allocation2 + $0x17] ss:$32 sm:$0x4]  ;;  %v4434_v17 = vld [vmem:[%s11767_s9 + $0x960] sm:$0xff]  ;;  %7531 = vmatpush3.bf16.msra.mxu1 %v7530_v0 }
 0x844   :  { %v4435_v44 = vld [vmem:[%s11767_s9 + $0x968] sm:$0xff]  ;;  %v4420_v27 = vld [vmem:[%s11767_s9 + $0x8f0] sm:$0xff]  ;;  %v4421_v18 = vld [vmem:[%s11767_s9 + $0x8f8] sm:$0xff]  ;;  %v3995_v35 = vor.u32 %v3994_v54, %v3993_v23  ;;  %7533 = vmatprep.subr.bf16.mxu1 %v7532_v19  ;;  %v7506_v47 = vpack.c.bf16 %v4403_v7, %v4402_v14 }
 0x845   :  { %v3884_v22 = vld [vmem:[#allocation2 + $0x10] ss:$32 sm:$0x8]  ;;  %v4453_v49 = vld [vmem:[%s11767_s9 + $0x9f8] sm:$0xff]  ;;  %7503 = vmatpush3.bf16.msra.mxu0 %v7502_v10  ;;  %v7538_v32 = vpack.c.bf16 %v4435_v44, %v4434_v17  ;;  %v7508_v57 = vpack.c.bf16 %v4421_v18, %v4420_v27  ;;  %v4470_v11 = vld [vmem:[%s11767_s9 + $0xa80] sm:$0xff] }
 0x846   :  { %v4452_v31 = vld [vmem:[%s11767_s9 + $0x9f0] sm:$0xff]  ;;  %v3885_v5 = vor.u32 %v3884_v22, %v3883_v45  ;;  %v4405_v41 = vld [vmem:[%s11767_s9 + $0x878] sm:$0xff]  ;;  %7505 = vmatprep.subr.bf16.mxu0 %v7504_v25  ;;  %v4471_v1 = vld [vmem:[%s11767_s9 + $0xa88] sm:$0xff] }
 0x847   :  { %v3916_v58 = vld [vmem:[#allocation2 + $0x12] ss:$32 sm:$0x8]  ;;  %v3886_v3 = vld [vmem:[#allocation2 + $0x10] ss:$32 sm:$0x10]  ;;  %7535 = vmatpush3.bf16.msra.mxu1 %v7534_v2  ;;  %v7540_v20 = vpack.c.bf16 %v4453_v49, %v4452_v31  ;;  %v7544_v61 = vpack.c.bf16 %v4471_v1, %v4470_v11 }
 0x848   :  { %v3917_v16 = vor.u32 %v3916_v58, %v3915_v21  ;;  %v3964_v29 = vld [vmem:[#allocation2 + $0x15] ss:$32 sm:$0x8]  ;;  %v3918_v26 = vld [vmem:[#allocation2 + $0x12] ss:$32 sm:$0x10]  ;;  %v3887_v51 = vor.u32 %v3886_v3, %v3885_v5  ;;  %7537 = vmatprep.subr.bf16.mxu1 %v7536_v30 }
 0x849   :  { %v4404_v15 = vld [vmem:[%s11767_s9 + $0x870] sm:$0xff]  ;;  %v3965_v9 = vor.u32 %v3964_v29, %v3963_v63  ;;  %v4437_v42 = vld [vmem:[%s11767_s9 + $0x978] sm:$0xff]  ;;  %v4502_v38 = vld [vmem:[%s11767_s9 + $0xb80] sm:$0xff]  ;;  %7507 = vmatpush3.bf16.msra.mxu0 %v7506_v47 }
 0x84a   :  { %v3996_v48 = vld [vmem:[#allocation2 + $0x17] ss:$32 sm:$0x8]  ;;  %v3966_v36 = vld [vmem:[#allocation2 + $0x15] ss:$32 sm:$0x10]  ;;  %v3919_v37 = vor.u32 %v3918_v26, %v3917_v16  ;;  %v7510_v13 = vpack.c.bf16 %v4405_v41, %v4404_v15  ;;  %7509 = vmatprep.subr.bf16.mxu0 %v7508_v57 }
 0x84b   :  { %v4436_v4 = vld [vmem:[%s11767_s9 + $0x970] sm:$0xff]  ;;  %v3997_v39 = vor.u32 %v3996_v48, %v3995_v35  ;;  %v4503_v60 = vld [vmem:[%s11767_s9 + $0xb88] sm:$0xff]  ;;  %v4454_v34 = vld [vmem:[%s11767_s9 + $0xa00] sm:$0xff]  ;;  %v3967_v43 = vor.u32 %v3966_v36, %v3965_v9  ;;  %7539 = vmatpush3.bf16.msra.mxu1 %v7538_v32 }
 0x84c   :  { %v3998_v12 = vld [vmem:[#allocation2 + $0x17] ss:$32 sm:$0x10]  ;;  %v3888_v33 = vld [vmem:[#allocation2 + $0x10] ss:$32 sm:$0x20]  ;;  %v7542_v23 = vpack.c.bf16 %v4437_v42, %v4436_v4  ;;  %7541 = vmatprep.subr.bf16.mxu1 %v7540_v20  ;;  %v7576_v56 = vpack.c.bf16 %v4503_v60, %v4502_v38 }
 0x84d   :  { %v3920_v53 = vld [vmem:[#allocation2 + $0x12] ss:$32 sm:$0x20]  ;;  %v4455_v24 = vld [vmem:[%s11767_s9 + $0xa08] sm:$0xff]  ;;  %v4486_v6 = vld [vmem:[%s11767_s9 + $0xb00] sm:$0xff]  ;;  %v3999_v59 = vor.u32 %v3998_v12, %v3997_v39  ;;  %v3889_v0 = vor.u32 %v3888_v33, %v3887_v51  ;;  %7511 = vmatpush3.bf16.msra.mxu0 %v7510_v13 }
 0x84e   :  { %v3890_v28 = vld [vmem:[#allocation2 + $0x10] ss:$32 sm:$0x40]  ;;  %v3968_v8 = vld [vmem:[#allocation2 + $0x15] ss:$32 sm:$0x20]  ;;  %v3921_v62 = vor.u32 %v3920_v53, %v3919_v37  ;;  %v7546_v17 = vpack.c.bf16 %v4455_v24, %v4454_v34  ;;  %7545 = vmatprep.subr.bf16.mxu0 %v7544_v61 }
 0x84f   :  { %v4487_v52 = vld [vmem:[%s11767_s9 + $0xb08] sm:$0xff]  ;;  %v3922_v40 = vld [vmem:[#allocation2 + $0x12] ss:$32 sm:$0x40]  ;;  %v4473_v46 = vld [vmem:[%s11767_s9 + $0xa98] sm:$0xff]  ;;  %v3891_v14 = vor.u32 %v3890_v28, %v3889_v0  ;;  %v3969_v63 = vor.u32 %v3968_v8, %v3967_v43  ;;  %7543 = vmatpush3.bf16.msra.mxu1 %v7542_v23 }
 0x850   :  { %v4000_v50 = vld [vmem:[#allocation2 + $0x17] ss:$32 sm:$0x20]  ;;  %v3892_v19 = vld [vmem:[#allocation2 + $0x10] ss:$32 sm:$0x80]  ;;  %v3923_v10 = vor.u32 %v3922_v40, %v3921_v62  ;;  %v7578_v25 = vpack.c.bf16 %v4487_v52, %v4486_v6  ;;  %7577 = vmatprep.subr.bf16.mxu1 %v7576_v56 }
 0x851   :  { %v4472_v45 = vld [vmem:[%s11767_s9 + $0xa90] sm:$0xff]  ;;  %v4001_v27 = vor.u32 %v4000_v50, %v3999_v59  ;;  %v4505_v18 = vld [vmem:[%s11767_s9 + $0xb98] sm:$0xff]  ;;  %v3893_v35 = vor.u32 %v3892_v19, %v3891_v14  ;;  %v4474_v29 = vld [vmem:[%s11767_s9 + $0xaa0] sm:$0xff] }
 0x852   :  { %v3970_v21 = vld [vmem:[#allocation2 + $0x15] ss:$32 sm:$0x40]  ;;  %v3924_v7 = vld [vmem:[#allocation2 + $0x12] ss:$32 sm:$0x80]  ;;  %v7548_v3 = vpack.c.bf16 %v4473_v46, %v4472_v45 }
 0x853   :  { %v4504_v55 = vld [vmem:[%s11767_s9 + $0xb90] sm:$0xff]  ;;  %v3971_v2 = vor.u32 %v3970_v21, %v3969_v63  ;;  %v4457_v49 = vld [vmem:[%s11767_s9 + $0xa18] sm:$0xff]  ;;  %v3925_v58 = vor.u32 %v3924_v7, %v3923_v10  ;;  %v4475_v15 = vld [vmem:[%s11767_s9 + $0xaa8] sm:$0xff]  ;;  %5278 = vmatmul.mubr.f32.vlgmr.msra.gmra.mrb[60].mxu0 %v3893_v35 }
 0x854   :  { %v4002_v54 = vld [vmem:[#allocation2 + $0x17] ss:$32 sm:$0x40]  ;;  %v3972_v44 = vld [vmem:[#allocation2 + $0x15] ss:$32 sm:$0x80]  ;;  %v7580_v26 = vpack.c.bf16 %v4505_v18, %v4504_v55  ;;  %7547 = vmatpush3.bf16.msra.mxu0 %v7546_v17  ;;  %v7552_v36 = vpack.c.bf16 %v4475_v15, %v4474_v29 }
 0x855   :  { %v4456_v22 = vld [vmem:[%s11767_s9 + $0xa10] sm:$0xff]  ;;  %v4003_v30 = vor.u32 %v4002_v54, %v4001_v27  ;;  %v4489_v16 = vld [vmem:[%s11767_s9 + $0xb18] sm:$0xff]  ;;  %v3973_v41 = vor.u32 %v3972_v44, %v3971_v2  ;;  %v4506_v9 = vld [vmem:[%s11767_s9 + $0xba0] sm:$0xff]  ;;  %5348 = vmatmul.mubr.f32.vlgmr.msra.gmra.mrb[100].mxu1 %v3925_v58  ;;  %7549 = vmatprep.subr.bf16.mxu0 %v7548_v3 }
 0x856   :  { %v4004_v31 = vld [vmem:[#allocation2 + $0x17] ss:$32 sm:$0x80]  ;;  %v4507_v48 = vld [vmem:[%s11767_s9 + $0xba8] sm:$0xff]  ;;  %v7550_v4 = vpack.c.bf16 %v4457_v49, %v4456_v22  ;;  %7579 = vmatpush3.bf16.msra.mxu1 %v7578_v25  ;;  %v4458_v39 = vld [vmem:[%s11767_s9 + $0xa20] sm:$0xff] }
 0x857   :  { %v4488_v5 = vld [vmem:[%s11767_s9 + $0xb10] sm:$0xff]  ;;  %v4005_v47 = vor.u32 %v4004_v31, %v4003_v30  ;;  %5417 = vmatprep.mubr.f32.mxu0 %v3973_v41  ;;  %v4459_v32 = vld [vmem:[%s11767_s9 + $0xa28] sm:$0xff]  ;;  %v4490_v57 = vld [vmem:[%s11767_s9 + $0xb20] sm:$0xff]  ;;  %v7584_v51 = vpack.c.bf16 %v4507_v48, %v4506_v9  ;;  %7581 = vmatprep.subr.bf16.mxu1 %v7580_v26 }
 0x858   :  { %v7582_v42 = vpack.c.bf16 %v4489_v16, %v4488_v5  ;;  %v4491_v11 = vld [vmem:[%s11767_s9 + $0xb28] sm:$0xff]  ;;  %v4476_v1 = vld [vmem:[%s11767_s9 + $0xab0] sm:$0xff]  ;;  %v4477_v12 = vld [vmem:[%s11767_s9 + $0xab8] sm:$0xff]  ;;  %7551 = vmatpush3.bf16.msra.mxu0 %v7550_v4  ;;  %v7554_v37 = vpack.c.bf16 %v4459_v32, %v4458_v39 }
 0x859   :  { %5487 = vmatprep.mubr.f32.mxu1 %v4005_v47  ;;  %v4508_v20 = vld [vmem:[%s11767_s9 + $0xbb0] sm:$0xff]  ;;  %v4509_v33 = vld [vmem:[%s11767_s9 + $0xbb8] sm:$0xff]  ;;  %7553 = vmatprep.subr.bf16.mxu0 %v7552_v36  ;;  %v7586_v34 = vpack.c.bf16 %v4491_v11, %v4490_v57  ;;  %v7556_v24 = vpack.c.bf16 %v4477_v12, %v4476_v1  ;;  %v4478_v13 = vld [vmem:[%s11767_s9 + $0xac0] sm:$0xff] }
 0x85a   :  { %v4460_v38 = vld [vmem:[%s11767_s9 + $0xa30] sm:$0xff]  ;;  %v4461_v60 = vld [vmem:[%s11767_s9 + $0xa38] sm:$0xff]  ;;  %7583 = vmatpush3.bf16.msra.mxu1 %v7582_v42  ;;  %v4479_v28 = vld [vmem:[%s11767_s9 + $0xac8] sm:$0xff]  ;;  %v7588_v8 = vpack.c.bf16 %v4509_v33, %v4508_v20 }
 0x85b   :  { %v4492_v53 = vld [vmem:[%s11767_s9 + $0xb30] sm:$0xff]  ;;  %v4493_v43 = vld [vmem:[%s11767_s9 + $0xb38] sm:$0xff]  ;;  %7585 = vmatprep.subr.bf16.mxu1 %v7584_v51  ;;  %v4510_v6 = vld [vmem:[%s11767_s9 + $0xbc0] sm:$0xff]  ;;  %v7558_v61 = vpack.c.bf16 %v4461_v60, %v4460_v38  ;;  %v7560_v55 = vpack.c.bf16 %v4479_v28, %v4478_v13 }
 0x85c   :  { %v4511_v52 = vld [vmem:[%s11767_s9 + $0xbc8] sm:$0xff]  ;;  %v3943_v59 = vld [vmem:[#allocation2 + $0x14] ss:$32 sm:$0x1]  ;;  %v4462_v23 = vld [vmem:[%s11767_s9 + $0xa40] sm:$0xff]  ;;  %7555 = vmatpush3.bf16.msra.mxu0 %v7554_v37  ;;  %v7590_v21 = vpack.c.bf16 %v4493_v43, %v4492_v53 }
 0x85d   :  { %v4463_v0 = vld [vmem:[%s11767_s9 + $0xa48] sm:$0xff]  ;;  %v3975_v40 = vld [vmem:[#allocation2 + $0x16] ss:$32 sm:$0x1]  ;;  %v4494_v50 = vld [vmem:[%s11767_s9 + $0xb40] sm:$0xff]  ;;  %7557 = vmatprep.subr.bf16.mxu0 %v7556_v24  ;;  %v7592_v54 = vpack.c.bf16 %v4511_v52, %v4510_v6 }
 0x85e   :  { %v4495_v45 = vld [vmem:[%s11767_s9 + $0xb48] sm:$0xff]  ;;  %v4480_v46 = vld [vmem:[%s11767_s9 + $0xad0] sm:$0xff]  ;;  %v4481_v19 = vld [vmem:[%s11767_s9 + $0xad8] sm:$0xff]  ;;  %7587 = vmatpush3.bf16.msra.mxu1 %v7586_v34  ;;  %v7562_v25 = vpack.c.bf16 %v4463_v0, %v4462_v23 }
 0x85f   :  { %v3944_v62 = vld [vmem:[#allocation2 + $0x14] ss:$32 sm:$0x2]  ;;  %v4023_v56 = vld [vmem:[#allocation2 + $0x19] ss:$32 sm:$0x1]  ;;  %7589 = vmatprep.subr.bf16.mxu1 %v7588_v8  ;;  %v7594_v30 = vpack.c.bf16 %v4495_v45, %v4494_v50  ;;  %v7564_v3 = vpack.c.bf16 %v4481_v19, %v4480_v46 }
 0x860   :  { %v3945_v14 = vor.u32 %v3944_v62, %v3943_v59  ;;  %v3976_v7 = vld [vmem:[#allocation2 + $0x16] ss:$32 sm:$0x2]  ;;  %v4055_v63 = vld [vmem:[#allocation2 + $0x1b] ss:$32 sm:$0x1]  ;;  %7559 = vmatpush3.bf16.msra.mxu0 %v7558_v61 }
 0x861   :  { %v4512_v10 = vld [vmem:[%s11767_s9 + $0xbd0] sm:$0xff]  ;;  %v4513_v17 = vld [vmem:[%s11767_s9 + $0xbd8] sm:$0xff]  ;;  %v3977_v44 = vor.u32 %v3976_v7, %v3975_v40  ;;  %7561 = vmatprep.subr.bf16.mxu0 %v7560_v55  ;;  %v4482_v16 = vld [vmem:[%s11767_s9 + $0xae0] sm:$0xff] }
 0x862   :  { %v4024_v27 = vld [vmem:[#allocation2 + $0x19] ss:$32 sm:$0x2]  ;;  %v4464_v18 = vld [vmem:[%s11767_s9 + $0xa50] sm:$0xff]  ;;  %7591 = vmatpush3.bf16.msra.mxu1 %v7590_v21  ;;  %v4483_v29 = vld [vmem:[%s11767_s9 + $0xae8] sm:$0xff]  ;;  %v7596_v26 = vpack.c.bf16 %v4513_v17, %v4512_v10 }
 0x863   :  { %v4465_v22 = vld [vmem:[%s11767_s9 + $0xa58] sm:$0xff]  ;;  %v4025_v35 = vor.u32 %v4024_v27, %v4023_v56  ;;  %v4496_v31 = vld [vmem:[%s11767_s9 + $0xb50] sm:$0xff]  ;;  %7593 = vmatprep.subr.bf16.mxu1 %v7592_v54  ;;  %v4514_v9 = vld [vmem:[%s11767_s9 + $0xbe0] sm:$0xff]  ;;  %v7568_v38 = vpack.c.bf16 %v4483_v29, %v4482_v16 }
 0x864   :  { %v4056_v2 = vld [vmem:[#allocation2 + $0x1b] ss:$32 sm:$0x2]  ;;  %v3946_v5 = vld [vmem:[#allocation2 + $0x14] ss:$32 sm:$0x4]  ;;  %7563 = vmatpush3.bf16.msra.mxu0 %v7562_v25  ;;  %v7566_v57 = vpack.c.bf16 %v4465_v22, %v4464_v18 }
 0x865   :  { %v4497_v49 = vld [vmem:[%s11767_s9 + $0xb58] sm:$0xff]  ;;  %v4057_v58 = vor.u32 %v4056_v2, %v4055_v63  ;;  %v3947_v15 = vor.u32 %v3946_v5, %v3945_v14  ;;  %v3978_v41 = vld [vmem:[#allocation2 + $0x16] ss:$32 sm:$0x4]  ;;  %v4515_v48 = vld [vmem:[%s11767_s9 + $0xbe8] sm:$0xff]  ;;  %7565 = vmatprep.subr.bf16.mxu0 %v7564_v3 }
 0x866   :  { %v3979_v47 = vor.u32 %v3978_v41, %v3977_v44  ;;  %v4026_v4 = vld [vmem:[#allocation2 + $0x19] ss:$32 sm:$0x4]  ;;  %v4466_v42 = vld [vmem:[%s11767_s9 + $0xa60] sm:$0xff]  ;;  %v4467_v36 = vld [vmem:[%s11767_s9 + $0xa68] sm:$0xff]  ;;  %7595 = vmatpush3.bf16.msra.mxu1 %v7594_v30  ;;  %v7598_v37 = vpack.c.bf16 %v4497_v49, %v4496_v31  ;;  %v7600_v43 = vpack.c.bf16 %v4515_v48, %v4514_v9 }
 0x867   :  { %v4027_v39 = vor.u32 %v4026_v4, %v4025_v35  ;;  %v4058_v32 = vld [vmem:[#allocation2 + $0x1b] ss:$32 sm:$0x4]  ;;  %v4498_v51 = vld [vmem:[%s11767_s9 + $0xb60] sm:$0xff]  ;;  %v4499_v11 = vld [vmem:[%s11767_s9 + $0xb68] sm:$0xff]  ;;  %7597 = vmatprep.subr.bf16.mxu1 %v7596_v26  ;;  %v7570_v40 = vpack.c.bf16 %v4467_v36, %v4466_v42 }
 0x868   :  { %v4484_v1 = vld [vmem:[%s11767_s9 + $0xaf0] sm:$0xff]  ;;  %v4485_v12 = vld [vmem:[%s11767_s9 + $0xaf8] sm:$0xff]  ;;  %v4059_v33 = vor.u32 %v4058_v32, %v4057_v58  ;;  %7567 = vmatpush3.bf16.msra.mxu0 %v7566_v57  ;;  %v7602_v62 = vpack.c.bf16 %v4499_v11, %v4498_v51  ;;  %v4534_v55 = vld [vmem:[%s11767_s9 + $0xc80] sm:$0xff] }
 0x869   :  { %v3948_v20 = vld [vmem:[#allocation2 + $0x14] ss:$32 sm:$0x8]  ;;  %v4517_v53 = vld [vmem:[%s11767_s9 + $0xbf8] sm:$0xff]  ;;  %7569 = vmatprep.subr.bf16.mxu0 %v7568_v38  ;;  %v7572_v56 = vpack.c.bf16 %v4485_v12, %v4484_v1  ;;  %v4535_v14 = vld [vmem:[%s11767_s9 + $0xc88] sm:$0xff] }
 0x86a   :  { %v4516_v60 = vld [vmem:[%s11767_s9 + $0xbf0] sm:$0xff]  ;;  %v3949_v34 = vor.u32 %v3948_v20, %v3947_v15  ;;  %v4028_v8 = vld [vmem:[#allocation2 + $0x19] ss:$32 sm:$0x8]  ;;  %7599 = vmatpush3.bf16.msra.mxu1 %v7598_v37  ;;  %v4566_v27 = vld [vmem:[%s11767_s9 + $0xd80] sm:$0xff]  ;;  %v7608_v16 = vpack.c.bf16 %v4535_v14, %v4534_v55 }
 0x86b   :  { %v3980_v24 = vld [vmem:[#allocation2 + $0x16] ss:$32 sm:$0x8]  ;;  %v3950_v13 = vld [vmem:[#allocation2 + $0x14] ss:$32 sm:$0x10]  ;;  %v4029_v23 = vor.u32 %v4028_v8, %v4027_v39  ;;  %7601 = vmatprep.subr.bf16.mxu1 %v7600_v43  ;;  %v7604_v63 = vpack.c.bf16 %v4517_v53, %v4516_v60 }
 0x86c   :  { %v3981_v28 = vor.u32 %v3980_v24, %v3979_v47  ;;  %v4468_v6 = vld [vmem:[%s11767_s9 + $0xa70] sm:$0xff]  ;;  %v4469_v52 = vld [vmem:[%s11767_s9 + $0xa78] sm:$0xff]  ;;  %v3951_v21 = vor.u32 %v3950_v13, %v3949_v34  ;;  %v4567_v18 = vld [vmem:[%s11767_s9 + $0xd88] sm:$0xff]  ;;  %7571 = vmatpush3.bf16.msra.mxu0 %v7570_v40 }
 0x86d   :  { %v3982_v59 = vld [vmem:[#allocation2 + $0x16] ss:$32 sm:$0x10]  ;;  %v4060_v0 = vld [vmem:[#allocation2 + $0x1b] ss:$32 sm:$0x8]  ;;  %v7574_v35 = vpack.c.bf16 %v4469_v52, %v4468_v6  ;;  %7573 = vmatprep.subr.bf16.mxu0 %v7572_v56  ;;  %v7640_v26 = vpack.c.bf16 %v4567_v18, %v4566_v27 }
 0x86e   :  { %v4500_v61 = vld [vmem:[%s11767_s9 + $0xb70] sm:$0xff]  ;;  %v4501_v50 = vld [vmem:[%s11767_s9 + $0xb78] sm:$0xff]  ;;  %v4061_v19 = vor.u32 %v4060_v0, %v4059_v33  ;;  %v3983_v10 = vor.u32 %v3982_v59, %v3981_v28  ;;  %v4518_v25 = vld [vmem:[%s11767_s9 + $0xc00] sm:$0xff]  ;;  %7603 = vmatpush3.bf16.msra.mxu1 %v7602_v62 }
 0x86f   :  { %v3952_v45 = vld [vmem:[#allocation2 + $0x14] ss:$32 sm:$0x20]  ;;  %v4030_v46 = vld [vmem:[#allocation2 + $0x19] ss:$32 sm:$0x10]  ;;  %v7606_v58 = vpack.c.bf16 %v4501_v50, %v4500_v61  ;;  %7605 = vmatprep.subr.bf16.mxu1 %v7604_v63 }
 0x870   :  { %v4062_v7 = vld [vmem:[#allocation2 + $0x1b] ss:$32 sm:$0x10]  ;;  %v3954_v54 = vld [vmem:[#allocation2 + $0x14] ss:$32 sm:$0x40]  ;;  %v4031_v22 = vor.u32 %v4030_v46, %v4029_v23  ;;  %v3953_v30 = vor.u32 %v3952_v45, %v3951_v21  ;;  %7575 = vmatpush3.bf16.msra.mxu0 %v7574_v35 }
 0x871   :  { %v3984_v17 = vld [vmem:[#allocation2 + $0x16] ss:$32 sm:$0x20]  ;;  %v3956_v2 = vld [vmem:[#allocation2 + $0x14] ss:$32 sm:$0x80]  ;;  %v4063_v5 = vor.u32 %v4062_v7, %v4061_v19  ;;  %7609 = vmatprep.subr.bf16.mxu0 %v7608_v16 }
 0x872   :  { %v3986_v44 = vld [vmem:[#allocation2 + $0x16] ss:$32 sm:$0x40]  ;;  %v4519_v31 = vld [vmem:[%s11767_s9 + $0xc08] sm:$0xff]  ;;  %v3985_v41 = vor.u32 %v3984_v17, %v3983_v10  ;;  %v4550_v9 = vld [vmem:[%s11767_s9 + $0xd00] sm:$0xff]  ;;  %v3955_v4 = vor.u32 %v3954_v54, %v3953_v30  ;;  %7607 = vmatpush3.bf16.msra.mxu1 %v7606_v58 }
 0x873   :  { %v4032_v49 = vld [vmem:[#allocation2 + $0x19] ss:$32 sm:$0x20]  ;;  %v3988_v3 = vld [vmem:[#allocation2 + $0x16] ss:$32 sm:$0x80]  ;;  %v7610_v51 = vpack.c.bf16 %v4519_v31, %v4518_v25  ;;  %7641 = vmatprep.subr.bf16.mxu1 %v7640_v26 }
 0x874   :  { %v4034_v29 = vld [vmem:[#allocation2 + $0x19] ss:$32 sm:$0x40]  ;;  %v4064_v15 = vld [vmem:[#allocation2 + $0x1b] ss:$32 sm:$0x20]  ;;  %v4033_v42 = vor.u32 %v4032_v49, %v4031_v22  ;;  %v3987_v57 = vor.u32 %v3986_v44, %v3985_v41  ;;  %v3957_v33 = vor.u32 %v3956_v2, %v3955_v4 }
 0x875   :  { %v4551_v48 = vld [vmem:[%s11767_s9 + $0xd08] sm:$0xff]  ;;  %v4536_v47 = vld [vmem:[%s11767_s9 + $0xc90] sm:$0xff]  ;;  %v4066_v36 = vld [vmem:[#allocation2 + $0x1b] ss:$32 sm:$0x40]  ;;  %v4065_v1 = vor.u32 %v4064_v15, %v4063_v5 }
 0x876   :  { %v4537_v39 = vld [vmem:[%s11767_s9 + $0xc98] sm:$0xff]  ;;  %v4568_v32 = vld [vmem:[%s11767_s9 + $0xd90] sm:$0xff]  ;;  %v4035_v37 = vor.u32 %v4034_v29, %v4033_v42  ;;  %v7642_v38 = vpack.c.bf16 %v4551_v48, %v4550_v9  ;;  %v3989_v24 = vor.u32 %v3988_v3, %v3987_v57  ;;  %v4538_v8 = vld [vmem:[%s11767_s9 + $0xca0] sm:$0xff]  ;;  %5418 = vmatmul.mubr.f32.vlgmr.msra.gmra.mrb[62].mxu0 %v3957_v33 }
 0x877   :  { %v4036_v11 = vld [vmem:[#allocation2 + $0x19] ss:$32 sm:$0x80]  ;;  %v4520_v20 = vld [vmem:[%s11767_s9 + $0xc10] sm:$0xff]  ;;  %v4067_v43 = vor.u32 %v4066_v36, %v4065_v1  ;;  %v7612_v13 = vpack.c.bf16 %v4537_v39, %v4536_v47  ;;  %v4539_v6 = vld [vmem:[%s11767_s9 + $0xca8] sm:$0xff]  ;;  %7611 = vmatpush3.bf16.msra.mxu0 %v7610_v51 }
 0x878   :  { %v4569_v12 = vld [vmem:[%s11767_s9 + $0xd98] sm:$0xff]  ;;  %v4552_v34 = vld [vmem:[%s11767_s9 + $0xd10] sm:$0xff]  ;;  %v4037_v52 = vor.u32 %v4036_v11, %v4035_v37  ;;  %v4570_v23 = vld [vmem:[%s11767_s9 + $0xda0] sm:$0xff]  ;;  %5488 = vmatmul.mubr.f32.vlgmr.msra.gmra.mrb[102].mxu1 %v3989_v24  ;;  %v7616_v45 = vpack.c.bf16 %v4539_v6, %v4538_v8 }
 0x879   :  { %v4068_v60 = vld [vmem:[#allocation2 + $0x1b] ss:$32 sm:$0x80]  ;;  %v7644_v59 = vpack.c.bf16 %v4569_v12, %v4568_v32  ;;  %v4571_v0 = vld [vmem:[%s11767_s9 + $0xda8] sm:$0xff]  ;;  %7643 = vmatpush3.bf16.msra.mxu1 %v7642_v38  ;;  %v4522_v46 = vld [vmem:[%s11767_s9 + $0xc20] sm:$0xff]  ;;  %7613 = vmatprep.subr.bf16.mxu0 %v7612_v13 }
 0x87a   :  { %v4521_v53 = vld [vmem:[%s11767_s9 + $0xc18] sm:$0xff]  ;;  %v4069_v40 = vor.u32 %v4068_v60, %v4067_v43  ;;  %5557 = vmatprep.mubr.f32.mxu0 %v4037_v52  ;;  %v4523_v19 = vld [vmem:[%s11767_s9 + $0xc28] sm:$0xff]  ;;  %v4554_v62 = vld [vmem:[%s11767_s9 + $0xd20] sm:$0xff]  ;;  %v7648_v56 = vpack.c.bf16 %v4571_v0, %v4570_v23 }
 0x87b   :  { %v4553_v28 = vld [vmem:[%s11767_s9 + $0xd18] sm:$0xff]  ;;  %v7614_v61 = vpack.c.bf16 %v4521_v53, %v4520_v20  ;;  %v4555_v21 = vld [vmem:[%s11767_s9 + $0xd28] sm:$0xff]  ;;  %v4540_v55 = vld [vmem:[%s11767_s9 + $0xcb0] sm:$0xff]  ;;  %7645 = vmatprep.subr.bf16.mxu1 %v7644_v59  ;;  %v7618_v54 = vpack.c.bf16 %v4523_v19, %v4522_v46 }
 0x87c   :  { %v7646_v50 = vpack.c.bf16 %v4553_v28, %v4552_v34  ;;  %5627 = vmatprep.mubr.f32.mxu1 %v4069_v40  ;;  %v4541_v14 = vld [vmem:[%s11767_s9 + $0xcb8] sm:$0xff]  ;;  %v4572_v7 = vld [vmem:[%s11767_s9 + $0xdb0] sm:$0xff]  ;;  %v7650_v27 = vpack.c.bf16 %v4555_v21, %v4554_v62  ;;  %v4542_v35 = vld [vmem:[%s11767_s9 + $0xcc0] sm:$0xff] }
 0x87d   :  { %v4573_v63 = vld [vmem:[%s11767_s9 + $0xdb8] sm:$0xff]  ;;  %7615 = vmatpush3.bf16.msra.mxu0 %v7614_v61  ;;  %v4524_v10 = vld [vmem:[%s11767_s9 + $0xc30] sm:$0xff]  ;;  %v7620_v18 = vpack.c.bf16 %v4541_v14, %v4540_v55  ;;  %v4543_v2 = vld [vmem:[%s11767_s9 + $0xcc8] sm:$0xff] }
 0x87e   :  { %v4525_v17 = vld [vmem:[%s11767_s9 + $0xc38] sm:$0xff]  ;;  %v4556_v44 = vld [vmem:[%s11767_s9 + $0xd30] sm:$0xff]  ;;  %7647 = vmatpush3.bf16.msra.mxu1 %v7646_v50  ;;  %7617 = vmatprep.subr.bf16.mxu0 %v7616_v45  ;;  %v7652_v25 = vpack.c.bf16 %v4573_v63, %v4572_v7  ;;  %v4574_v31 = vld [vmem:[%s11767_s9 + $0xdc0] sm:$0xff]  ;;  %v7624_v4 = vpack.c.bf16 %v4543_v2, %v4542_v35 }
 0x87f   :  { %v4557_v22 = vld [vmem:[%s11767_s9 + $0xd38] sm:$0xff]  ;;  %7649 = vmatprep.subr.bf16.mxu1 %v7648_v56  ;;  %v4575_v49 = vld [vmem:[%s11767_s9 + $0xdc8] sm:$0xff]  ;;  %v4526_v58 = vld [vmem:[%s11767_s9 + $0xc40] sm:$0xff]  ;;  %v7622_v16 = vpack.c.bf16 %v4525_v17, %v4524_v10 }
 0x880   :  { %v4007_v5 = vld [vmem:[#allocation2 + $0x18] ss:$32 sm:$0x1]  ;;  %v4527_v30 = vld [vmem:[%s11767_s9 + $0xc48] sm:$0xff]  ;;  %v4558_v29 = vld [vmem:[%s11767_s9 + $0xd40] sm:$0xff]  ;;  %v7654_v47 = vpack.c.bf16 %v4557_v22, %v4556_v44  ;;  %v7656_v32 = vpack.c.bf16 %v4575_v49, %v4574_v31 }
 0x881   :  { %v4039_v3 = vld [vmem:[#allocation2 + $0x1a] ss:$32 sm:$0x1]  ;;  %7619 = vmatpush3.bf16.msra.mxu0 %v7618_v54  ;;  %v4559_v15 = vld [vmem:[%s11767_s9 + $0xd48] sm:$0xff]  ;;  %v4544_v41 = vld [vmem:[%s11767_s9 + $0xcd0] sm:$0xff]  ;;  %v7626_v38 = vpack.c.bf16 %v4527_v30, %v4526_v58 }
 0x882   :  { %v4545_v26 = vld [vmem:[%s11767_s9 + $0xcd8] sm:$0xff]  ;;  %7651 = vmatpush3.bf16.msra.mxu1 %v7650_v27  ;;  %7621 = vmatprep.subr.bf16.mxu0 %v7620_v18  ;;  %v4576_v57 = vld [vmem:[%s11767_s9 + $0xdd0] sm:$0xff]  ;;  %v7658_v43 = vpack.c.bf16 %v4559_v15, %v4558_v29  ;;  %v4546_v28 = vld [vmem:[%s11767_s9 + $0xce0] sm:$0xff] }
 0x883   :  { %v4008_v9 = vld [vmem:[#allocation2 + $0x18] ss:$32 sm:$0x2]  ;;  %v4087_v48 = vld [vmem:[#allocation2 + $0x1d] ss:$32 sm:$0x1]  ;;  %7653 = vmatprep.subr.bf16.mxu1 %v7652_v25  ;;  %v7628_v13 = vpack.c.bf16 %v4545_v26, %v4544_v41 }
 0x884   :  { %v4009_v42 = vor.u32 %v4008_v9, %v4007_v5  ;;  %v4040_v36 = vld [vmem:[#allocation2 + $0x1a] ss:$32 sm:$0x2]  ;;  %v4119_v39 = vld [vmem:[#allocation2 + $0x1f] ss:$32 sm:$0x1] }
 0x885   :  { %v4577_v51 = vld [vmem:[%s11767_s9 + $0xdd8] sm:$0xff]  ;;  %v4041_v11 = vor.u32 %v4040_v36, %v4039_v3  ;;  %v4528_v12 = vld [vmem:[%s11767_s9 + $0xc50] sm:$0xff]  ;;  %7623 = vmatpush3.bf16.msra.mxu0 %v7622_v16  ;;  %v4547_v8 = vld [vmem:[%s11767_s9 + $0xce8] sm:$0xff] }
 0x886   :  { %v4088_v1 = vld [vmem:[#allocation2 + $0x1d] ss:$32 sm:$0x2]  ;;  %v4120_v37 = vld [vmem:[#allocation2 + $0x1f] ss:$32 sm:$0x2]  ;;  %7655 = vmatpush3.bf16.msra.mxu1 %v7654_v47  ;;  %7625 = vmatprep.subr.bf16.mxu0 %v7624_v4  ;;  %v7660_v59 = vpack.c.bf16 %v4577_v51, %v4576_v57  ;;  %v7632_v10 = vpack.c.bf16 %v4547_v8, %v4546_v28 }
 0x887   :  { %v4529_v20 = vld [vmem:[%s11767_s9 + $0xc58] sm:$0xff]  ;;  %v4089_v33 = vor.u32 %v4088_v1, %v4087_v48  ;;  %v4560_v60 = vld [vmem:[%s11767_s9 + $0xd50] sm:$0xff]  ;;  %v4121_v24 = vor.u32 %v4120_v37, %v4119_v39  ;;  %7657 = vmatprep.subr.bf16.mxu1 %v7656_v32  ;;  %v4578_v23 = vld [vmem:[%s11767_s9 + $0xde0] sm:$0xff] }
 0x888   :  { %v4561_v53 = vld [vmem:[%s11767_s9 + $0xd58] sm:$0xff]  ;;  %v4579_v0 = vld [vmem:[%s11767_s9 + $0xde8] sm:$0xff]  ;;  %v4530_v50 = vld [vmem:[%s11767_s9 + $0xc60] sm:$0xff]  ;;  %v7630_v62 = vpack.c.bf16 %v4529_v20, %v4528_v12 }
 0x889   :  { %v4010_v34 = vld [vmem:[#allocation2 + $0x18] ss:$32 sm:$0x4]  ;;  %v4042_v52 = vld [vmem:[#allocation2 + $0x1a] ss:$32 sm:$0x4]  ;;  %7627 = vmatpush3.bf16.msra.mxu0 %v7626_v38  ;;  %v7662_v54 = vpack.c.bf16 %v4561_v53, %v4560_v60  ;;  %v7664_v22 = vpack.c.bf16 %v4579_v0, %v4578_v23 }
 0x88a   :  { %v4011_v6 = vor.u32 %v4010_v34, %v4009_v42  ;;  %v4043_v40 = vor.u32 %v4042_v52, %v4041_v11  ;;  %v4090_v61 = vld [vmem:[#allocation2 + $0x1d] ss:$32 sm:$0x4]  ;;  %v4531_v45 = vld [vmem:[%s11767_s9 + $0xc68] sm:$0xff]  ;;  %v4562_v56 = vld [vmem:[%s11767_s9 + $0xd60] sm:$0xff]  ;;  %7659 = vmatpush3.bf16.msra.mxu1 %v7658_v43  ;;  %7629 = vmatprep.subr.bf16.mxu0 %v7628_v13 }
 0x88b   :  { %v4091_v46 = vor.u32 %v4090_v61, %v4089_v33  ;;  %v4122_v19 = vld [vmem:[#allocation2 + $0x1f] ss:$32 sm:$0x4]  ;;  %v4563_v21 = vld [vmem:[%s11767_s9 + $0xd68] sm:$0xff]  ;;  %v4548_v55 = vld [vmem:[%s11767_s9 + $0xcf0] sm:$0xff]  ;;  %7661 = vmatprep.subr.bf16.mxu1 %v7660_v59  ;;  %v7634_v3 = vpack.c.bf16 %v4531_v45, %v4530_v50 }
 0x88c   :  { %v4549_v14 = vld [vmem:[%s11767_s9 + $0xcf8] sm:$0xff]  ;;  %v4123_v63 = vor.u32 %v4122_v19, %v4121_v24  ;;  %v4580_v17 = vld [vmem:[%s11767_s9 + $0xdf0] sm:$0xff]  ;;  %v7666_v26 = vpack.c.bf16 %v4563_v21, %v4562_v56  ;;  %v4598_v57 = vld [vmem:[%s11767_s9 + $0xe80] sm:$0xff] }
 0x88d   :  { %v4012_v7 = vld [vmem:[#allocation2 + $0x18] ss:$32 sm:$0x8]  ;;  %v4044_v18 = vld [vmem:[#allocation2 + $0x1a] ss:$32 sm:$0x8]  ;;  %7631 = vmatpush3.bf16.msra.mxu0 %v7630_v62  ;;  %v7636_v9 = vpack.c.bf16 %v4549_v14, %v4548_v55 }
 0x88e   :  { %v4581_v44 = vld [vmem:[%s11767_s9 + $0xdf8] sm:$0xff]  ;;  %v4013_v27 = vor.u32 %v4012_v7, %v4011_v6  ;;  %v4045_v2 = vor.u32 %v4044_v18, %v4043_v40  ;;  %v4532_v31 = vld [vmem:[%s11767_s9 + $0xc70] sm:$0xff]  ;;  %7663 = vmatpush3.bf16.msra.mxu1 %v7662_v54  ;;  %7633 = vmatprep.subr.bf16.mxu0 %v7632_v10  ;;  %v4599_v51 = vld [vmem:[%s11767_s9 + $0xe88] sm:$0xff] }
 0x88f   :  { %v4014_v35 = vld [vmem:[#allocation2 + $0x18] ss:$32 sm:$0x10]  ;;  %v4092_v25 = vld [vmem:[#allocation2 + $0x1d] ss:$32 sm:$0x8]  ;;  %7665 = vmatprep.subr.bf16.mxu1 %v7664_v22  ;;  %v7668_v42 = vpack.c.bf16 %v4581_v44, %v4580_v17  ;;  %v7672_v28 = vpack.c.bf16 %v4599_v51, %v4598_v57 }
 0x890   :  { %v4533_v49 = vld [vmem:[%s11767_s9 + $0xc78] sm:$0xff]  ;;  %v4093_v58 = vor.u32 %v4092_v25, %v4091_v46  ;;  %v4564_v16 = vld [vmem:[%s11767_s9 + $0xd70] sm:$0xff]  ;;  %v4015_v48 = vor.u32 %v4014_v35, %v4013_v27  ;;  %v4630_v1 = vld [vmem:[%s11767_s9 + $0xf80] sm:$0xff] }
 0x891   :  { %v4046_v5 = vld [vmem:[#allocation2 + $0x1a] ss:$32 sm:$0x10]  ;;  %v4124_v30 = vld [vmem:[#allocation2 + $0x1f] ss:$32 sm:$0x8]  ;;  %7635 = vmatpush3.bf16.msra.mxu0 %v7634_v3  ;;  %v7638_v33 = vpack.c.bf16 %v4533_v49, %v4532_v31 }
 0x892   :  { %v4565_v29 = vld [vmem:[%s11767_s9 + $0xd78] sm:$0xff]  ;;  %v4125_v41 = vor.u32 %v4124_v30, %v4123_v63  ;;  %v4047_v39 = vor.u32 %v4046_v5, %v4045_v2  ;;  %v4631_v12 = vld [vmem:[%s11767_s9 + $0xf88] sm:$0xff]  ;;  %v4582_v38 = vld [vmem:[%s11767_s9 + $0xe00] sm:$0xff]  ;;  %7667 = vmatpush3.bf16.msra.mxu1 %v7666_v26  ;;  %7637 = vmatprep.subr.bf16.mxu0 %v7636_v9 }
 0x893   :  { %v4094_v15 = vld [vmem:[#allocation2 + $0x1d] ss:$32 sm:$0x10]  ;;  %v4016_v47 = vld [vmem:[#allocation2 + $0x18] ss:$32 sm:$0x20]  ;;  %v7670_v24 = vpack.c.bf16 %v4565_v29, %v4564_v16  ;;  %7669 = vmatprep.subr.bf16.mxu1 %v7668_v42  ;;  %v7704_v59 = vpack.c.bf16 %v4631_v12, %v4630_v1 }
 0x894   :  { %v4126_v4 = vld [vmem:[#allocation2 + $0x1f] ss:$32 sm:$0x10]  ;;  %v4018_v36 = vld [vmem:[#allocation2 + $0x18] ss:$32 sm:$0x40]  ;;  %v4095_v20 = vor.u32 %v4094_v15, %v4093_v58  ;;  %v4017_v43 = vor.u32 %v4016_v47, %v4015_v48 }
 0x895   :  { %v4048_v32 = vld [vmem:[#allocation2 + $0x1a] ss:$32 sm:$0x20]  ;;  %v4020_v37 = vld [vmem:[#allocation2 + $0x18] ss:$32 sm:$0x80]  ;;  %v4127_v34 = vor.u32 %v4126_v4, %v4125_v41  ;;  %7639 = vmatpush3.bf16.msra.mxu0 %v7638_v33 }
 0x896   :  { %v4050_v11 = vld [vmem:[#allocation2 + $0x1a] ss:$32 sm:$0x40]  ;;  %v4583_v60 = vld [vmem:[%s11767_s9 + $0xe08] sm:$0xff]  ;;  %v4049_v52 = vor.u32 %v4048_v32, %v4047_v39  ;;  %v4614_v0 = vld [vmem:[%s11767_s9 + $0xf00] sm:$0xff]  ;;  %v4019_v61 = vor.u32 %v4018_v36, %v4017_v43  ;;  %7671 = vmatpush3.bf16.msra.mxu1 %v7670_v24  ;;  %7673 = vmatprep.subr.bf16.mxu0 %v7672_v28 }
 0x897   :  { %v4096_v53 = vld [vmem:[#allocation2 + $0x1d] ss:$32 sm:$0x20]  ;;  %v4052_v13 = vld [vmem:[#allocation2 + $0x1a] ss:$32 sm:$0x80]  ;;  %v7674_v56 = vpack.c.bf16 %v4583_v60, %v4582_v38  ;;  %7705 = vmatprep.subr.bf16.mxu1 %v7704_v59 }
 0x898   :  { %v4098_v8 = vld [vmem:[#allocation2 + $0x1d] ss:$32 sm:$0x40]  ;;  %v4128_v6 = vld [vmem:[#allocation2 + $0x1f] ss:$32 sm:$0x20]  ;;  %v4097_v50 = vor.u32 %v4096_v53, %v4095_v20  ;;  %v4051_v62 = vor.u32 %v4050_v11, %v4049_v52  ;;  %v4021_v63 = vor.u32 %v4020_v37, %v4019_v61 }
 0x899   :  { %v4100_v23 = vld [vmem:[#allocation2 + $0x1d] ss:$32 sm:$0x80]  ;;  %v4615_v40 = vld [vmem:[%s11767_s9 + $0xf08] sm:$0xff]  ;;  %v4600_v46 = vld [vmem:[%s11767_s9 + $0xe90] sm:$0xff]  ;;  %v4129_v21 = vor.u32 %v4128_v6, %v4127_v34 }
 0x89a   :  { %v4130_v45 = vld [vmem:[#allocation2 + $0x1f] ss:$32 sm:$0x40]  ;;  %v4632_v14 = vld [vmem:[%s11767_s9 + $0xf90] sm:$0xff]  ;;  %v4099_v54 = vor.u32 %v4098_v8, %v4097_v50  ;;  %v7706_v10 = vpack.c.bf16 %v4615_v40, %v4614_v0  ;;  %v4053_v18 = vor.u32 %v4052_v13, %v4051_v62  ;;  %v4602_v25 = vld [vmem:[%s11767_s9 + $0xea0] sm:$0xff]  ;;  %5558 = vmatmul.mubr.f32.vlgmr.msra.gmra.mrb[64].mxu0 %v4021_v63 }
 0x89b   :  { %v4601_v19 = vld [vmem:[%s11767_s9 + $0xe98] sm:$0xff]  ;;  %v4584_v17 = vld [vmem:[%s11767_s9 + $0xe10] sm:$0xff]  ;;  %v4131_v22 = vor.u32 %v4130_v45, %v4129_v21  ;;  %v4603_v31 = vld [vmem:[%s11767_s9 + $0xea8] sm:$0xff]  ;;  %7675 = vmatpush3.bf16.msra.mxu0 %v7674_v56 }
 0x89c   :  { %v4132_v55 = vld [vmem:[#allocation2 + $0x1f] ss:$32 sm:$0x80]  ;;  %v4616_v27 = vld [vmem:[%s11767_s9 + $0xf10] sm:$0xff]  ;;  %v7676_v35 = vpack.c.bf16 %v4601_v19, %v4600_v46  ;;  %v4101_v49 = vor.u32 %v4100_v23, %v4099_v54  ;;  %v4634_v58 = vld [vmem:[%s11767_s9 + $0xfa0] sm:$0xff]  ;;  %5628 = vmatmul.mubr.f32.vlgmr.msra.gmra.mrb[104].mxu1 %v4053_v18  ;;  %v7680_v15 = vpack.c.bf16 %v4603_v31, %v4602_v25 }
 0x89d   :  { %v4633_v7 = vld [vmem:[%s11767_s9 + $0xf98] sm:$0xff]  ;;  %v4635_v30 = vld [vmem:[%s11767_s9 + $0xfa8] sm:$0xff]  ;;  %v4133_v3 = vor.u32 %v4132_v55, %v4131_v22  ;;  %7707 = vmatpush3.bf16.msra.mxu1 %v7706_v10  ;;  %v4586_v41 = vld [vmem:[%s11767_s9 + $0xe20] sm:$0xff] }
 0x89e   :  { %v4585_v44 = vld [vmem:[%s11767_s9 + $0xe18] sm:$0xff]  ;;  %v7708_v5 = vpack.c.bf16 %v4633_v7, %v4632_v14  ;;  %5697 = vmatprep.mubr.f32.mxu0 %v4101_v49  ;;  %v4587_v26 = vld [vmem:[%s11767_s9 + $0xe28] sm:$0xff]  ;;  %v4618_v9 = vld [vmem:[%s11767_s9 + $0xf20] sm:$0xff]  ;;  %7677 = vmatprep.subr.bf16.mxu0 %v7676_v35  ;;  %v7712_v48 = vpack.c.bf16 %v4635_v30, %v4634_v58 }
 0x89f   :  { %v4617_v2 = vld [vmem:[%s11767_s9 + $0xf18] sm:$0xff]  ;;  %v7678_v16 = vpack.c.bf16 %v4585_v44, %v4584_v17  ;;  %5767 = vmatprep.mubr.f32.mxu1 %v4133_v3  ;;  %v4619_v47 = vld [vmem:[%s11767_s9 + $0xf28] sm:$0xff]  ;;  %v4604_v4 = vld [vmem:[%s11767_s9 + $0xeb0] sm:$0xff]  ;;  %v7682_v32 = vpack.c.bf16 %v4587_v26, %v4586_v41 }
 0x8a0   :  { %v7710_v29 = vpack.c.bf16 %v4617_v2, %v4616_v27  ;;  %v4605_v42 = vld [vmem:[%s11767_s9 + $0xeb8] sm:$0xff]  ;;  %7709 = vmatprep.subr.bf16.mxu1 %v7708_v5  ;;  %v4636_v36 = vld [vmem:[%s11767_s9 + $0xfb0] sm:$0xff]  ;;  %v7714_v51 = vpack.c.bf16 %v4619_v47, %v4618_v9  ;;  %v4606_v37 = vld [vmem:[%s11767_s9 + $0xec0] sm:$0xff]  ;;  %v6205_v47 = vpop.f32.mrb[52].mxu0 }
 0x8a1   :  { %v4637_v39 = vld [vmem:[%s11767_s9 + $0xfb8] sm:$0xff]  ;;  %7679 = vmatpush3.bf16.msra.mxu0 %v7678_v16  ;;  %v4588_v57 = vld [vmem:[%s11767_s9 + $0xe30] sm:$0xff]  ;;  %v7684_v11 = vpack.c.bf16 %v4605_v42, %v4604_v4  ;;  %v4607_v38 = vld [vmem:[%s11767_s9 + $0xec8] sm:$0xff]  ;;  %v6240_v4 = vpop.f32.mrb[92].mxu1 }
 0x8a2   :  { %7711 = vmatpush3.bf16.msra.mxu1 %v7710_v29  ;;  %7681 = vmatprep.subr.bf16.mxu0 %v7680_v15  ;;  %v4589_v1 = vld [vmem:[%s11767_s9 + $0xe38] sm:$0xff]  ;;  %v4620_v12 = vld [vmem:[%s11767_s9 + $0xf30] sm:$0xff]  ;;  %v7716_v33 = vpack.c.bf16 %v4637_v39, %v4636_v36  ;;  %v4638_v53 = vld [vmem:[%s11767_s9 + $0xfc0] sm:$0xff]  ;;  %v7688_v6 = vpack.c.bf16 %v4607_v38, %v4606_v37 }
 0x8a3   :  { %v4621_v20 = vld [vmem:[%s11767_s9 + $0xf38] sm:$0xff]  ;;  %7713 = vmatprep.subr.bf16.mxu1 %v7712_v48  ;;  %v4639_v34 = vld [vmem:[%s11767_s9 + $0xfc8] sm:$0xff]  ;;  %v7686_v43 = vpack.c.bf16 %v4589_v1, %v4588_v57  ;;  %v4590_v13 = vld [vmem:[%s11767_s9 + $0xe40] sm:$0xff]  ;;  %v6206_v57 = vpop.f32.mrb[53].mxu0 }
 0x8a4   :  { %v4071_v60 = vld [vmem:[#allocation2 + $0x1c] ss:$32 sm:$0x1]  ;;  %v4103_v24 = vld [vmem:[#allocation2 + $0x1e] ss:$32 sm:$0x1]  ;;  %v7718_v8 = vpack.c.bf16 %v4621_v20, %v4620_v12  ;;  %v7720_v40 = vpack.c.bf16 %v4639_v34, %v4638_v53  ;;  %v6207_v12 = vadd.f32 %v6206_v57, %v6205_v47 }
 0x8a5   :  { %7683 = vmatpush3.bf16.msra.mxu0 %v7682_v32  ;;  %v4072_v28 = vld [vmem:[#allocation2 + $0x1c] ss:$32 sm:$0x2]  ;;  %v4591_v52 = vld [vmem:[%s11767_s9 + $0xe48] sm:$0xff]  ;;  %v4622_v59 = vld [vmem:[%s11767_s9 + $0xf40] sm:$0xff] }
 0x8a6   :  { %7715 = vmatpush3.bf16.msra.mxu1 %v7714_v51  ;;  %7685 = vmatprep.subr.bf16.mxu0 %v7684_v11  ;;  %v4073_v23 = vor.u32 %v4072_v28, %v4071_v60  ;;  %v4104_v0 = vld [vmem:[#allocation2 + $0x1e] ss:$32 sm:$0x2]  ;;  %v4623_v61 = vld [vmem:[%s11767_s9 + $0xf48] sm:$0xff]  ;;  %v4608_v50 = vld [vmem:[%s11767_s9 + $0xed0] sm:$0xff]  ;;  %v7690_v56 = vpack.c.bf16 %v4591_v52, %v4590_v13  ;;  %v6241_v51 = vpop.f32.mrb[93].mxu1 }
 0x8a7   :  { %7717 = vmatprep.subr.bf16.mxu1 %v7716_v33  ;;  %v4609_v45 = vld [vmem:[%s11767_s9 + $0xed8] sm:$0xff]  ;;  %v4105_v46 = vor.u32 %v4104_v0, %v4103_v24  ;;  %v4640_v19 = vld [vmem:[%s11767_s9 + $0xfd0] sm:$0xff]  ;;  %v7722_v7 = vpack.c.bf16 %v4623_v61, %v4622_v59  ;;  %v4610_v18 = vld [vmem:[%s11767_s9 + $0xee0] sm:$0xff]  ;;  %v6242_v20 = vadd.f32 %v6241_v51, %v6240_v4  ;;  %v11793_v4 = vmov 0.0  }
 0x8a8   :  { %v4641_v62 = vld [vmem:[%s11767_s9 + $0xfd8] sm:$0xff]  ;;  %v4592_v21 = vld [vmem:[%s11767_s9 + $0xe50] sm:$0xff]  ;;  %v7692_v63 = vpack.c.bf16 %v4609_v45, %v4608_v50  ;;  %v4611_v22 = vld [vmem:[%s11767_s9 + $0xee8] sm:$0xff] }
 0x8a9   :  { %7687 = vmatpush3.bf16.msra.mxu0 %v7686_v43  ;;  %v4593_v55 = vld [vmem:[%s11767_s9 + $0xe58] sm:$0xff]  ;;  %v4624_v54 = vld [vmem:[%s11767_s9 + $0xf50] sm:$0xff]  ;;  %v7724_v27 = vpack.c.bf16 %v4641_v62, %v4640_v19  ;;  %v4642_v35 = vld [vmem:[%s11767_s9 + $0xfe0] sm:$0xff]  ;;  %v7696_v15 = vpack.c.bf16 %v4611_v22, %v4610_v18 }
 0x8aa   :  { %v4074_v14 = vld [vmem:[#allocation2 + $0x1c] ss:$32 sm:$0x4]  ;;  %7719 = vmatpush3.bf16.msra.mxu1 %v7718_v8  ;;  %7689 = vmatprep.subr.bf16.mxu0 %v7688_v6  ;;  %v4106_v44 = vld [vmem:[#allocation2 + $0x1e] ss:$32 sm:$0x4]  ;;  %v7694_v5 = vpack.c.bf16 %v4593_v55, %v4592_v21 }
 0x8ab   :  { %v4625_v10 = vld [vmem:[%s11767_s9 + $0xf58] sm:$0xff]  ;;  %v4075_v17 = vor.u32 %v4074_v14, %v4073_v23  ;;  %7721 = vmatprep.subr.bf16.mxu1 %v7720_v40  ;;  %v4107_v2 = vor.u32 %v4106_v44, %v4105_v46  ;;  %v4643_v25 = vld [vmem:[%s11767_s9 + $0xfe8] sm:$0xff]  ;;  %v4594_v31 = vld [vmem:[%s11767_s9 + $0xe60] sm:$0xff] }
 0x8ac   :  { %v4595_v49 = vld [vmem:[%s11767_s9 + $0xe68] sm:$0xff]  ;;  %v4626_v58 = vld [vmem:[%s11767_s9 + $0xf60] sm:$0xff]  ;;  %v4076_v3 = vld [vmem:[#allocation2 + $0x1c] ss:$32 sm:$0x8]  ;;  %v7726_v29 = vpack.c.bf16 %v4625_v10, %v4624_v54  ;;  %v7728_v42 = vpack.c.bf16 %v4643_v25, %v4642_v35 }
 0x8ad   :  { %7691 = vmatpush3.bf16.msra.mxu0 %v7690_v56  ;;  %v4627_v30 = vld [vmem:[%s11767_s9 + $0xf68] sm:$0xff]  ;;  %v6010_v16 = vld [vmem:[%s11768_s10] ss:$0 sm:$0xff]  ;;  %v4612_v41 = vld [vmem:[%s11767_s9 + $0xef0] sm:$0xff]  ;;  %v4077_v9 = vor.u32 %v4076_v3, %v4075_v17  ;;  %v7698_v33 = vpack.c.bf16 %v4595_v49, %v4594_v31 }
 0x8ae   :  { %7723 = vmatpush3.bf16.msra.mxu1 %v7722_v7  ;;  %7693 = vmatprep.subr.bf16.mxu0 %v7692_v63  ;;  %v4613_v26 = vld [vmem:[%s11767_s9 + $0xef8] sm:$0xff]  ;;  %v4644_v36 = vld [vmem:[%s11767_s9 + $0xff0] sm:$0xff]  ;;  %v7730_v37 = vpack.c.bf16 %v4627_v30, %v4626_v58  ;;  %v4720_v24 = vadd.f32 %v6207_v12, %v6010_v16  ;;  %v5775_v47 = vld [vmem:[%s11769_s11 + $0x8] sm:$0xff] }
 0x8af   :  { %v4108_v48 = vld [vmem:[#allocation2 + $0x1e] ss:$32 sm:$0x8]  ;;  %7725 = vmatprep.subr.bf16.mxu1 %v7724_v27  ;;  %v4078_v39 = vld [vmem:[#allocation2 + $0x1c] ss:$32 sm:$0x10]  ;;  %v7700_v38 = vpack.c.bf16 %v4613_v26, %v4612_v41 }
 0x8b0   :  { %v4109_v32 = vor.u32 %v4108_v48, %v4107_v2  ;;  %v4645_v11 = vld [vmem:[%s11767_s9 + $0xff8] sm:$0xff]  ;;  %v4596_v60 = vld [vmem:[%s11767_s9 + $0xe70] sm:$0xff]  ;;  %v4079_v34 = vor.u32 %v4078_v39, %v4077_v9  ;;  %v4790_v59 = vadd.f32 %v6242_v20, %v4720_v24  ;;  %v7903_v9 = vmov 0.0|0.0   ;;  %v5774_v48 = vld [vmem:[%s11769_s11] sm:$0xff] }
 0x8b1   :  { %v4110_v1 = vld [vmem:[#allocation2 + $0x1e] ss:$32 sm:$0x10]  ;;  %7695 = vmatpush3.bf16.msra.mxu0 %v7694_v5  ;;  %v7732_v43 = vpack.c.bf16 %v4645_v11, %v4644_v36  ;;  %v4628_v13 = vld [vmem:[%s11767_s9 + $0xf70] sm:$0xff]  ;;  %v18_v36 = vstv %s11770_s12 }
 0x8b2   :  { %7727 = vmatpush3.bf16.msra.mxu1 %v7726_v29  ;;  %7697 = vmatprep.subr.bf16.mxu0 %v7696_v15  ;;  %v4597_v53 = vld [vmem:[%s11767_s9 + $0xe78] sm:$0xff]  ;;  %v4111_v6 = vor.u32 %v4110_v1, %v4109_v32  ;;  %19 = vst [vmem:[#allocation3] sm:$0x1] %v18_v36 }
 0x8b3   :  { %7729 = vmatprep.subr.bf16.mxu1 %v7728_v42  ;;  %v4629_v28 = vld [vmem:[%s11767_s9 + $0xf78] sm:$0xff]  ;;  %v7702_v23 = vpack.c.bf16 %v4597_v53, %v4596_v60  ;;  %v7737_v42 = vpack.c.bf16 %v5775_v47, %v5774_v48 }
 0x8b4   :  { %v4080_v8 = vld [vmem:[#allocation2 + $0x1c] ss:$32 sm:$0x20]  ;;  %v4112_v52 = vld [vmem:[#allocation2 + $0x1e] ss:$32 sm:$0x20]  ;;  %v7734_v40 = vpack.c.bf16 %v4629_v28, %v4628_v13 }
 0x8b5   :  { %7699 = vmatpush3.bf16.msra.mxu0 %v7698_v33  ;;  %v4082_v0 = vld [vmem:[#allocation2 + $0x1c] ss:$32 sm:$0x40]  ;;  %v4081_v61 = vor.u32 %v4080_v8, %v4079_v34  ;;  %v4114_v50 = vld [vmem:[#allocation2 + $0x1e] ss:$32 sm:$0x40]  ;;  %v4113_v46 = vor.u32 %v4112_v52, %v4111_v6 }
 0x8b6   :  { %7731 = vmatpush3.bf16.msra.mxu1 %v7730_v37  ;;  %7701 = vmatprep.subr.bf16.mxu0 %v7700_v38  ;;  %v4084_v45 = vld [vmem:[#allocation2 + $0x1c] ss:$32 sm:$0x80]  ;;  %v4116_v62 = vld [vmem:[#allocation2 + $0x1e] ss:$32 sm:$0x80] }
 0x8b7   :  { %7733 = vmatprep.subr.bf16.mxu1 %v7732_v43  ;;  %v4083_v19 = vor.u32 %v4082_v0, %v4081_v61  ;;  %v4115_v56 = vor.u32 %v4114_v50, %v4113_v46 }
 0x8b9   :  { %7703 = vmatpush3.bf16.msra.mxu0 %v7702_v23  ;;  %v4085_v21 = vor.u32 %v4084_v45, %v4083_v19  ;;  %v4117_v55 = vor.u32 %v4116_v62, %v4115_v56 }
 0x8ba   :  { %7735 = vmatpush3.bf16.msra.mxu1 %v7734_v40  ;;  %7736 = vmatprep.subr.bf16.mxu0 %v7903_v9 }
 0x8bc   :  { %5698 = vmatmul.mubr.f32.vlgmr.msra.gmra.mrb[66].mxu0 %v4085_v21  ;;  %v6275_v14 = vpop.f32.mrb[54].mxu0  ;;  %v6310_v7 = vpop.f32.mrb[94].mxu1 }
 0x8bd   :  { %5768 = vmatmul.mubr.f32.vlgmr.msra.gmra.mrb[106].mxu1 %v4117_v55  ;;  %v6276_v63 = vpop.f32.mrb[55].mxu0  ;;  %v6311_v54 = vpop.f32.mrb[95].mxu1  ;;  %6884 = vmatprep.mubr.msk.f32.mxu0 %vm7904_vm9, %v11793_v4  ;;  %v6011_v55 = vld [vmem:[#allocation3] ss:$0 sm:$0xff] }
 0x8be   :  { %v6277_v10 = vadd.f32 %v6276_v63, %v6275_v14  ;;  %v6312_v17 = vadd.f32 %v6311_v54, %v6310_v7  ;;  %7738 = vmatpush3.bf16.msra.mxu0 %v7737_v42 }
 0x8c0   :  { %v4860_v44 = vadd.f32 %v6277_v10, %v4790_v59 }
 0x8c2   :  { %v4930_v27 = vadd.f32 %v6312_v17, %v4860_v44 }
 0x8e0   :  { %v6345_v18 = vpop.f32.mrb[56].mxu0 }
 0x8e1   :  { %v6380_v22 = vpop.f32.mrb[96].mxu1  ;;  %v6346_v35 = vpop.f32.mrb[57].mxu0 }
 0x8e2   :  { %v6381_v2 = vpop.f32.mrb[97].mxu1  ;;  %v6347_v25 = vadd.f32 %v6346_v35, %v6345_v18 }
 0x8e3   :  { %v6382_v31 = vadd.f32 %v6381_v2, %v6380_v22 }
 0x8e4   :  { %v5000_v49 = vadd.f32 %v6347_v25, %v4930_v27 }
 0x8e6   :  { %v5070_v5 = vadd.f32 %v6382_v31, %v5000_v49 }
 0x903   :  { %v6415_v58 = vpop.f32.mrb[58].mxu0 }
 0x904   :  { %v6416_v3 = vpop.f32.mrb[59].mxu0 }
 0x905   :  { %v6450_v30 = vpop.f32.mrb[98].mxu1  ;;  %v6417_v16 = vadd.f32 %v6416_v3, %v6415_v58 }
 0x906   :  { %v6451_v29 = vpop.f32.mrb[99].mxu1 }
 0x907   :  { %v6452_v15 = vadd.f32 %v6451_v29, %v6450_v30  ;;  %v5140_v41 = vadd.f32 %v6417_v16, %v5070_v5 }
 0x909   :  { %v5210_v26 = vadd.f32 %v6452_v15, %v5140_v41 }
 0x926   :  { %v6485_v39 = vpop.f32.mrb[60].mxu0 }
 0x927   :  { %v6486_v57 = vpop.f32.mrb[61].mxu0 }
 0x928   :  { %v6520_v32 = vpop.f32.mrb[100].mxu1  ;;  %v6487_v51 = vadd.f32 %v6486_v57, %v6485_v39 }
 0x929   :  { %v6521_v11 = vpop.f32.mrb[101].mxu1 }
 0x92a   :  { %v6522_v1 = vadd.f32 %v6521_v11, %v6520_v32  ;;  %v5280_v12 = vadd.f32 %v6487_v51, %v5210_v26 }
 0x92c   :  { %v5350_v20 = vadd.f32 %v6522_v1, %v5280_v12 }
 0x949   :  { %v6555_v33 = vpop.f32.mrb[62].mxu0 }
 0x94a   :  { %v6556_v38 = vpop.f32.mrb[63].mxu0 }
 0x94b   :  { %v6590_v37 = vpop.f32.mrb[102].mxu1  ;;  %v6557_v60 = vadd.f32 %v6556_v38, %v6555_v33 }
 0x94c   :  { %v6591_v53 = vpop.f32.mrb[103].mxu1 }
 0x94d   :  { %v6592_v34 = vadd.f32 %v6591_v53, %v6590_v37  ;;  %v5420_v24 = vadd.f32 %v6557_v60, %v5350_v20 }
 0x94f   :  { %v5490_v43 = vadd.f32 %v6592_v34, %v5420_v24 }
 0x96d   :  { %v6625_v13 = vpop.f32.mrb[64].mxu0 }
 0x96e   :  { %v6626_v8 = vpop.f32.mrb[65].mxu0 }
 0x96f   :  { %v6660_v28 = vpop.f32.mrb[104].mxu1  ;;  %v6627_v6 = vadd.f32 %v6626_v8, %v6625_v13 }
 0x970   :  { %v6661_v52 = vpop.f32.mrb[105].mxu1 }
 0x971   :  { %v6662_v59 = vadd.f32 %v6661_v52, %v6660_v28  ;;  %v5560_v23 = vadd.f32 %v6627_v6, %v5490_v43 }
 0x973   :  { %v5630_v0 = vadd.f32 %v6662_v59, %v5560_v23 }
 0x98f   :  { %v6695_v40 = vpop.f32.mrb[66].mxu0 }
 0x990   :  { %v6730_v61 = vpop.f32.mrb[106].mxu1  ;;  %v6696_v50 = vpop.f32.mrb[67].mxu0 }
 0x991   :  { %v6697_v45 = vadd.f32 %v6696_v50, %v6695_v40  ;;  %v6731_v46 = vpop.f32.mrb[107].mxu1 }
 0x992   :  { %v6732_v19 = vadd.f32 %v6731_v46, %v6730_v61 }
 0x993   :  { %v5700_v62 = vadd.f32 %v6697_v45, %v5630_v0 }
 0x995   :  { %v5770_v56 = vadd.f32 %v6732_v19, %v5700_v62 }
 0x997   :  { %v5773_v21 = vmax.f32 %v5770_v56, 0.0 }
 0x999   :  { %6885 = vmatmul.mubr.msk.f32.vlgmr.msra.gmra.mrb[68].mxu0 %vm5783_vm10, %v5773_v21 }
 0xa6c   :  { %v5853_v14 = vpop.f32.mrb[68].mxu0 }
 0xa6d   :  { %v5854_v7 = vadd.f32 %v6011_v55, %v5853_v14  ;;  %v6886_v63 = vpop.f32.mrb[69].mxu0 }
 0xa6f   :  { %v5857_v54 = vand.u32 2147483647, %v5854_v7  ;;  %vm5861_vm11 = vcmp.ge.f32.partialorder %v5854_v7, 0.0 }
 0xa71   :  { %v5858_v10 = vsub.f32 0.0, %v5857_v54 }
 0xa73   :  { %v5859_v17 = vmul.f32 1.442695, %v5858_v10 }
 0xa75   :  { %7894 = vpow2.f32 %v5859_v17 }
 0xa7f   :  { %v7895_v44 = vpop.eup %7894 }
 0xa80   :  { %v5863_v27 = vadd.f32 1.0, %v7895_v44  ;;  %v5862_v22 = vsel %vm5861_vm11, 1.0, %v7895_v44 }
 0xa82   :  { %7896 = vrcp.f32 %v5863_v27 }
 0xa8c   :  { %v7897_v18 = vpop.eup %7896 }
 0xa8d   :  { %v5865_v35 = vmul.f32 %v7897_v18, %v5862_v22 }
 0xa8f   :  { %5866 = vst.msk [vmem:[%s11771_s13] sm:$0xff] %vm62_vm0, %v5865_v35 }

</bundles_post_ra>
